<compile_context>
chip_gen: v5e
topology: v5e:2x2
jax: 0.10.0
libtpu: 0.0.40
codegen_flags: <defaults>
</compile_context>

<pallas_src>
import jax
import jax.numpy as jnp
from jax.experimental import pallas as pl
from jax.experimental.pallas import tpu as pltpu

LANE = 128


def _round_up(v, m=LANE):
    return ((v + m - 1) // m) * m


# ----------------------------------------------------------------------------
# Fused Pallas kernel: one grid step == Gb graphs' full forward pass.
# ----------------------------------------------------------------------------
def _fused_gnn_kernel(ew_ref, x_ref, w_ref, b_ref, shift_ref, fcw_ref, fcb_ref,
                      out_ref):
    gb, n, _ = ew_ref.shape
    num_layers, fp, _ = w_ref.shape

    # ---- GCN normalized adjacency, built once per graph block (f32) --------
    # Single eye mask (one iota compare), shared across the Gb graphs.
    eye = (jax.lax.broadcasted_iota(jnp.int32, (n, n), 0)
           == jax.lax.broadcasted_iota(jnp.int32, (n, n), 1)).astype(jnp.float32)
    a_hat = jnp.abs(ew_ref[...]) + eye[None]                   # |A| + I, (Gb,N,N)
    # deg >= 1 thanks to the self loop -> no zero guard needed.
    # Column degrees via an axis=-2 reduce (avoids a transpose); identical to
    # row degrees for the symmetric (undirected connectome) adjacency.
    dinv_row = jax.lax.rsqrt(jnp.sum(a_hat, axis=-1, keepdims=True))   # (Gb,N,1)
    dinv_col = jax.lax.rsqrt(jnp.sum(a_hat, axis=-2, keepdims=True))   # (Gb,1,N)
    a_norm = (a_hat * dinv_row * dinv_col).astype(jnp.bfloat16)

    # ---- L GCN blocks; z stays resident; MXU operands bf16, accum f32 ------
    z_bf = x_ref[...].astype(jnp.bfloat16)                     # (Gb, N, Fin)
    z_f32 = None
    for li in range(num_layers):                               # static unrolled
        f_in = z_bf.shape[-1]
        m = jnp.einsum("gij,gjf->gif", a_norm, z_bf,
                       preferred_element_type=jnp.float32)     # (Gb, N, f_in)
        # One big feature-transform matmul: (Gb*N, f_in) @ (f_in, Fp).
        # W/b already carry the folded BatchNorm eval scale.
        h = jnp.dot(m.reshape(gb * n, f_in).astype(jnp.bfloat16),
                    w_ref[li, 0:f_in, :],
                    preferred_element_type=jnp.float32)
        h = h + b_ref[li]
        h = jnp.where(h >= 0.0, h, 0.2 * h)                    # LeakyReLU(0.2), f32 VPU
        h = h + shift_ref[li]                                  # BN shift; Dropout p=0
        z_f32 = h.reshape(gb, n, fp)
        z_bf = z_f32.astype(jnp.bfloat16)

    # ---- global_mean_pool (XLU sublane sum; 1/N folded into fcw) + Linear --
    pooled = jnp.sum(z_f32, axis=1)                            # (Gb, Fp), f32
    out_ref[...] = (jnp.dot(pooled.astype(jnp.bfloat16), fcw_ref[...],
                            preferred_element_type=jnp.float32)
                    + fcb_ref[...])


def _vmem_limit_bytes(gb, n, fin, fp, cp, num_layers):
    f32, bf16 = 4, 2
    stream_in = 2 * gb * n * (n + fin) * f32                 # double-buffered edge_w + x
    params = (num_layers * fp * fp * bf16 + 2 * num_layers * fp * f32
              + fp * cp * bf16 + cp * f32)                    # single-buffered weights
    out_buf = 2 * gb * cp * f32
    live = gb * n * (2 * n + 3 * fp) * f32                    # a_hat/a_norm/m/h/z
    est = 2 * (stream_in + live) + params + out_buf + (2 << 20)
    # Floor at the common 16 MiB scoped default; cap at v7x' 64 MiB physical.
    return int(min(max(est, 16 << 20), 64 << 20))


def fused_forward(edge_w, x, w_stack, b_stack, shift_stack, fcw, fcb, graph_block):
    b_pad, n, _ = edge_w.shape
    fin = x.shape[-1]
    num_layers, fp, _ = w_stack.shape
    cp = fcw.shape[-1]
    gb = graph_block
    assert b_pad % gb == 0
    grid = (b_pad // gb,)

    param_mode = pl.Buffered(1)        # grid-invariant: double-buffering is waste
    out = pl.pallas_call(
        _fused_gnn_kernel,
        out_shape=jax.ShapeDtypeStruct((b_pad, cp), jnp.float32),
        grid=grid,
        in_specs=[
            pl.BlockSpec((gb, n, n), lambda g: (g, 0, 0)),             # raw edges (f32)
            pl.BlockSpec((gb, n, fin), lambda g: (g, 0, 0)),           # node feats (f32)
            pl.BlockSpec((num_layers, fp, fp), lambda g: (0, 0, 0),
                         pipeline_mode=param_mode),                    # stacked W' (bf16)
            pl.BlockSpec((num_layers, 1, fp), lambda g: (0, 0, 0),
                         pipeline_mode=param_mode),                    # stacked b' (f32)
            pl.BlockSpec((num_layers, 1, fp), lambda g: (0, 0, 0),
                         pipeline_mode=param_mode),                    # BN shifts (f32)
            pl.BlockSpec((fp, cp), lambda g: (0, 0),
                         pipeline_mode=param_mode),                    # fc_w / N (bf16)
            pl.BlockSpec((1, cp), lambda g: (0, 0),
                         pipeline_mode=param_mode),                    # fc_b (f32)
        ],
        out_specs=pl.BlockSpec((gb, cp), lambda g: (g, 0)),
        compiler_params=pltpu.CompilerParams(
            dimension_semantics=("parallel",),
            vmem_limit_bytes=_vmem_limit_bytes(gb, n, fin, fp, cp, num_layers),
        ),
    )(edge_w, x, w_stack, b_stack, shift_stack, fcw, fcb)
    return out


# ----------------------------------------------------------------------------
# Parameter construction (PyTorch-equivalent, unfolded) and kernel packing.
# ----------------------------------------------------------------------------
def make_params(key, input_dim, hidden_dim, num_layers, num_classes):
    params = {"convs": []}
    bn_eps = 1e-5
    fan_in = input_dim
    keys = jax.random.split(key, num_layers + 1)
    for li in range(num_layers):
        kw, kb = jax.random.split(keys[li])
        w = jax.random.normal(kw, (fan_in, hidden_dim), jnp.float32) / jnp.sqrt(
            jnp.float32(fan_in))
        b = 0.01 * jax.random.normal(kb, (1, hidden_dim), jnp.float32)
        # BatchNorm1d eval with fresh stats: gamma=1, beta=0, mean=0, var=1.
        bn_scale = jnp.full((1, hidden_dim), 1.0 / jnp.sqrt(1.0 + bn_eps), jnp.float32)
        bn_shift = jnp.zeros((1, hidden_dim), jnp.float32)
        params["convs"].append(dict(w=w, b=b, bn_scale=bn_scale, bn_shift=bn_shift))
        fan_in = hidden_dim
    kw, kb = jax.random.split(keys[-1])
    # TODO(synk): BasicMLP depth/activation depend on model_cfg.mlp_config; a
    # single output Linear is implemented here.
    params["fc_w"] = jax.random.normal(
        kw, (hidden_dim, num_classes), jnp.float32) / jnp.sqrt(jnp.float32(hidden_dim))
    params["fc_b"] = 0.01 * jax.random.normal(kb, (1, num_classes), jnp.float32)
    return params


def pack_params(params, num_nodes):
    """Fold BN eval scale into W/b and 1/N mean-pool into fc_w; pad to 128
    lanes; stack layers; store MXU operands (W, fc_w) in bf16."""
    convs = params["convs"]
    fin0, hid = convs[0]["w"].shape
    fp = _round_up(max(fin0, hid))               # shared padded feature width
    ws, bs, shifts = [], [], []
    for layer in convs:
        # LeakyReLU(s*h) == s*LeakyReLU(h) only for s > 0 (holds: fresh gamma=1).
        # TODO(synk): a trained checkpoint with gamma <= 0 must keep BN unfused.
        w = layer["w"] * layer["bn_scale"]
        b = layer["b"] * layer["bn_scale"]
        fan_in, h = w.shape
        ws.append(jnp.zeros((fp, fp), jnp.float32).at[:fan_in, :h].set(w))
        bs.append(jnp.zeros((1, fp), jnp.float32).at[:, :h].set(b))
        shifts.append(jnp.zeros((1, fp), jnp.float32).at[:, :h].set(layer["bn_shift"]))
    c = params["fc_w"].shape[1]
    cp = _round_up(c)
    fcw = params["fc_w"] / jnp.float32(num_nodes)        # fold mean-pool 1/N
    return dict(
        w_stack=jnp.stack(ws).astype(jnp.bfloat16),      # (L, Fp, Fp) bf16
        b_stack=jnp.stack(bs),                           # (L, 1, Fp) f32
        shift_stack=jnp.stack(shifts),                   # (L, 1, Fp) f32
        fcw=jnp.zeros((fp, cp), jnp.float32).at[:hid, :c].set(fcw).astype(jnp.bfloat16),
        fcb=jnp.zeros((1, cp), jnp.float32).at[:, :c].set(params["fc_b"]),
        fp=fp, num_classes=c,
    )


def _pick_graph_block(batch, num_nodes):
    """Gb*N >= 256 fills the MXU M dim; keep grid extent >= 2 for v7x' 2 TCs."""
    gb = max(1, -(-256 // num_nodes))
    gb = min(gb, max(1, batch))
    while gb > 1 and -(-batch // gb) < 2:
        gb = max(1, gb // 2)
    return gb


def standart_gnn_forward(x, edge_weights, packed, graph_block=None):
    # NOTE: dense-batch formulation -- every graph has exactly N real nodes.
    b, n, _ = x.shape
    gb = graph_block or _pick_graph_block(b, n)
    b_pad = -(-b // gb) * gb
    if b_pad != b:                       # pad batch with empty graphs (edge_w=0)
        x = jnp.pad(x, ((0, b_pad - b), (0, 0), (0, 0)))
        edge_weights = jnp.pad(edge_weights, ((0, b_pad - b), (0, 0), (0, 0)))
    out = fused_forward(edge_weights, x, packed["w_stack"], packed["b_stack"],
                        packed["shift_stack"], packed["fcw"], packed["fcb"], gb)
    return out[:b, :packed["num_classes"]]


# ----------------------------------------------------------------------------
# Pure-JAX f32 reference (unfused, unpadded) for correctness checking.
# ----------------------------------------------------------------------------
def reference_forward(x, edge_weights, params):
    B, N, _ = edge_weights.shape
    a_hat = jnp.abs(edge_weights) + jnp.eye(N, dtype=jnp.float32)[None]
    deg = jnp.sum(a_hat, axis=-1)
    dinv = jax.lax.rsqrt(deg)
    adj = a_hat * dinv[:, :, None] * dinv[:, None, :]
    z = x
    for layer in params["convs"]:
        h = jnp.einsum("bij,bjf->bif", adj, z)
        h = jnp.einsum("bif,fh->bih", h, layer["w"]) + layer["b"][None]
        h = jnp.where(h >= 0.0, h, 0.2 * h)
        z = h * layer["bn_scale"][None] + layer["bn_shift"][None]
    pooled = jnp.mean(z, axis=1)
    return pooled @ params["fc_w"] + params["fc_b"]


# ----------------------------------------------------------------------------
if __name__ == "__main__":
    B, N, Fin, H, C, L = 32, 16, 16, 32, 2, 2     # Gb=16 -> grid=(2,), Gb*N=256

    key = jax.random.PRNGKey(0)
    kx, ke, kp = jax.random.split(key, 3)
    x = jax.random.normal(kx, (B, N, Fin), jnp.float32)
    edge_w = jax.random.normal(ke, (B, N, N), jnp.float32)
    edge_w = 0.5 * (edge_w + jnp.swapaxes(edge_w, 1, 2))   # symmetric connectome-like

    params = make_params(kp, Fin, H, L, C)
    packed = pack_params(params, N)

    out = standart_gnn_forward(x, edge_w, packed)
    out = jax.block_until_ready(out)

    ref = reference_forward(x, edge_w, params)
    assert out.shape == (B, C)
    # bf16 MXU operands (f32 accumulation) -> compare at bf16-level tolerance.
    assert jnp.allclose(out, ref, atol=3e-2, rtol=3e-2), (out, ref)
    print("KERNEL_OK")
</pallas_src>

<mosaic_0001>
module attributes {stable_mosaic.version = 11 : i64} {
  func.func @_fused_gnn_kernel(%arg0: i32, %arg1: memref<16x16x16xf32, #tpu.memory_space<vmem>>, %arg2: memref<16x16x16xf32, #tpu.memory_space<vmem>>, %arg3: memref<2x128x128xbf16, #tpu.memory_space<vmem>>, %arg4: memref<2x1x128xf32, #tpu.memory_space<vmem>>, %arg5: memref<2x1x128xf32, #tpu.memory_space<vmem>>, %arg6: memref<128x128xbf16, #tpu.memory_space<vmem>>, %arg7: memref<1x128xf32, #tpu.memory_space<vmem>>, %arg8: memref<16x128xf32, #tpu.memory_space<vmem>>) attributes {dimension_semantics = [#tpu.dimension_semantics<parallel>], iteration_bounds = array<i64: 2>, scalar_prefetch = 0 : i64, scratch_operands = 0 : i64, tpu.core_type = #tpu.core_type<tc>, window_params = [{transform_indices = @transform_0, window_bounds = array<i64: 16, 16, 16>}, {transform_indices = @transform_1, window_bounds = array<i64: 16, 16, 16>}, {pipeline_mode = #tpu.pipeline_mode<synchronous>, transform_indices = @transform_2, window_bounds = array<i64: 2, 128, 128>}, {pipeline_mode = #tpu.pipeline_mode<synchronous>, transform_indices = @transform_3, window_bounds = array<i64: 2, 1, 128>}, {pipeline_mode = #tpu.pipeline_mode<synchronous>, transform_indices = @transform_4, window_bounds = array<i64: 2, 1, 128>}, {pipeline_mode = #tpu.pipeline_mode<synchronous>, transform_indices = @transform_5, window_bounds = array<i64: 128, 128>}, {pipeline_mode = #tpu.pipeline_mode<synchronous>, transform_indices = @transform_6, window_bounds = array<i64: 1, 128>}, {transform_indices = @transform_7, window_bounds = array<i64: 16, 128>}]} {
    %0 = tpu.iota {dimensions = array<i32: 0>} : vector<16x16xi32>
    %1 = tpu.iota {dimensions = array<i32: 1>} : vector<16x16xi32>
    %2 = arith.cmpi eq, %0, %1 : vector<16x16xi32>
    %3 = arith.extui %2 : vector<16x16xi1> to vector<16x16xi32>
    %4 = arith.sitofp %3 : vector<16x16xi32> to vector<16x16xf32>
    %c0 = arith.constant 0 : index
    %c0_0 = arith.constant 0 : index
    %c0_1 = arith.constant 0 : index
    %5 = vector.load %arg1[%c0, %c0_0, %c0_1] : memref<16x16x16xf32, #tpu.memory_space<vmem>>, vector<16x16x16xf32>
    %6 = math.absf %5 : vector<16x16x16xf32>
    %7 = vector.shape_cast %4 : vector<16x16xf32> to vector<1x16x16xf32>
    %8 = vector.broadcast %7 : vector<1x16x16xf32> to vector<16x16x16xf32>
    %9 = arith.addf %6, %8 : vector<16x16x16xf32>
    %cst = arith.constant dense<0.000000e+00> : vector<16x16xf32>
    %10 = vector.multi_reduction <add>, %9, %cst [2] : vector<16x16x16xf32> to vector<16x16xf32>
    %11 = vector.shape_cast %10 : vector<16x16xf32> to vector<16x16x1xf32>
    %12 = math.rsqrt %11 : vector<16x16x1xf32>
    %cst_2 = arith.constant dense<0.000000e+00> : vector<16x16xf32>
    %13 = vector.multi_reduction <add>, %9, %cst_2 [1] : vector<16x16x16xf32> to vector<16x16xf32>
    %14 = vector.shape_cast %13 : vector<16x16xf32> to vector<16x1x16xf32>
    %15 = math.rsqrt %14 : vector<16x1x16xf32>
    %16 = vector.broadcast %12 : vector<16x16x1xf32> to vector<16x16x16xf32>
    %17 = arith.mulf %9, %16 : vector<16x16x16xf32>
    %18 = vector.broadcast %15 : vector<16x1x16xf32> to vector<16x16x16xf32>
    %19 = arith.mulf %17, %18 : vector<16x16x16xf32>
    %20 = arith.truncf %19 : vector<16x16x16xf32> to vector<16x16x16xbf16>
    %c0_3 = arith.constant 0 : index
    %c0_4 = arith.constant 0 : index
    %c0_5 = arith.constant 0 : index
    %21 = vector.load %arg2[%c0_3, %c0_4, %c0_5] : memref<16x16x16xf32, #tpu.memory_space<vmem>>, vector<16x16x16xf32>
    %22 = arith.truncf %21 : vector<16x16x16xf32> to vector<16x16x16xbf16>
    "tpu.trace_start"() <{level = 10 : i32, message = "gij,gjf->gif"}> : () -> ()
    %cst_6 = arith.constant dense<0.000000e+00> : vector<16x16x16xf32>
    %23 = tpu.matmul %20, %22, %cst_6 {dimension_numbers = #tpu.dot_dimension_numbers<[2], [1], [1], [2], [0, 0, 0, 1, 1, 2], [0], [0]>} : vector<16x16x16xbf16>, vector<16x16x16xbf16>, vector<16x16x16xf32> -> vector<16x16x16xf32>
    "tpu.trace_stop"() : () -> ()
    %24 = vector.shape_cast %23 : vector<16x16x16xf32> to vector<256x16xf32>
    %25 = arith.truncf %24 : vector<256x16xf32> to vector<256x16xbf16>
    %c0_7 = arith.constant 0 : index
    %c0_8 = arith.constant 0 : index
    %c0_9 = arith.constant 0 : index
    %26 = vector.load %arg3[%c0_7, %c0_8, %c0_9] : memref<2x128x128xbf16, #tpu.memory_space<vmem>>, vector<1x16x128xbf16>
    %27 = vector.shape_cast %26 : vector<1x16x128xbf16> to vector<16x128xbf16>
    %cst_10 = arith.constant dense<0.000000e+00> : vector<256x128xf32>
    %28 = tpu.matmul %25, %27, %cst_10 {dimension_numbers = #tpu.dot_dimension_numbers<[1], [0], [0], [1], [0, 0, 1, 1], [], []>} : vector<256x16xbf16>, vector<16x128xbf16>, vector<256x128xf32> -> vector<256x128xf32>
    %c0_11 = arith.constant 0 : index
    %c0_12 = arith.constant 0 : index
    %c0_13 = arith.constant 0 : index
    %29 = vector.load %arg4[%c0_11, %c0_12, %c0_13] : memref<2x1x128xf32, #tpu.memory_space<vmem>>, vector<1x1x128xf32>
    %30 = vector.shape_cast %29 : vector<1x1x128xf32> to vector<1x128xf32>
    %31 = vector.broadcast %30 : vector<1x128xf32> to vector<256x128xf32>
    %32 = arith.addf %28, %31 : vector<256x128xf32>
    %cst_14 = arith.constant 0.000000e+00 : f32
    %33 = vector.broadcast %cst_14 : f32 to vector<256x128xf32>
    %34 = arith.cmpf oge, %32, %33 : vector<256x128xf32>
    %cst_15 = arith.constant 2.000000e-01 : f32
    %35 = vector.broadcast %cst_15 : f32 to vector<256x128xf32>
    %36 = arith.mulf %35, %32 : vector<256x128xf32>
    %37 = arith.select %34, %32, %36 : vector<256x128xi1>, vector<256x128xf32>
    %c0_16 = arith.constant 0 : index
    %c0_17 = arith.constant 0 : index
    %c0_18 = arith.constant 0 : index
    %38 = vector.load %arg5[%c0_16, %c0_17, %c0_18] : memref<2x1x128xf32, #tpu.memory_space<vmem>>, vector<1x1x128xf32>
    %39 = vector.shape_cast %38 : vector<1x1x128xf32> to vector<1x128xf32>
    %40 = vector.broadcast %39 : vector<1x128xf32> to vector<256x128xf32>
    %41 = arith.addf %37, %40 : vector<256x128xf32>
    %42 = vector.shape_cast %41 : vector<256x128xf32> to vector<16x16x128xf32>
    %43 = arith.truncf %42 : vector<16x16x128xf32> to vector<16x16x128xbf16>
    "tpu.trace_start"() <{level = 10 : i32, message = "gij,gjf->gif"}> : () -> ()
    %cst_19 = arith.constant dense<0.000000e+00> : vector<16x16x128xf32>
    %44 = tpu.matmul %20, %43, %cst_19 {dimension_numbers = #tpu.dot_dimension_numbers<[2], [1], [1], [2], [0, 0, 0, 1, 1, 2], [0], [0]>} : vector<16x16x16xbf16>, vector<16x16x128xbf16>, vector<16x16x128xf32> -> vector<16x16x128xf32>
    "tpu.trace_stop"() : () -> ()
    %45 = vector.shape_cast %44 : vector<16x16x128xf32> to vector<256x128xf32>
    %46 = arith.truncf %45 : vector<256x128xf32> to vector<256x128xbf16>
    %c1 = arith.constant 1 : index
    %c0_20 = arith.constant 0 : index
    %c0_21 = arith.constant 0 : index
    %47 = vector.load %arg3[%c1, %c0_20, %c0_21] : memref<2x128x128xbf16, #tpu.memory_space<vmem>>, vector<1x128x128xbf16>
    %48 = vector.shape_cast %47 : vector<1x128x128xbf16> to vector<128x128xbf16>
    %cst_22 = arith.constant dense<0.000000e+00> : vector<256x128xf32>
    %49 = tpu.matmul %46, %48, %cst_22 {dimension_numbers = #tpu.dot_dimension_numbers<[1], [0], [0], [1], [0, 0, 1, 1], [], []>} : vector<256x128xbf16>, vector<128x128xbf16>, vector<256x128xf32> -> vector<256x128xf32>
    %c1_23 = arith.constant 1 : index
    %c0_24 = arith.constant 0 : index
    %c0_25 = arith.constant 0 : index
    %50 = vector.load %arg4[%c1_23, %c0_24, %c0_25] : memref<2x1x128xf32, #tpu.memory_space<vmem>>, vector<1x1x128xf32>
    %51 = vector.shape_cast %50 : vector<1x1x128xf32> to vector<1x128xf32>
    %52 = vector.broadcast %51 : vector<1x128xf32> to vector<256x128xf32>
    %53 = arith.addf %49, %52 : vector<256x128xf32>
    %cst_26 = arith.constant 0.000000e+00 : f32
    %54 = vector.broadcast %cst_26 : f32 to vector<256x128xf32>
    %55 = arith.cmpf oge, %53, %54 : vector<256x128xf32>
    %cst_27 = arith.constant 2.000000e-01 : f32
    %56 = vector.broadcast %cst_27 : f32 to vector<256x128xf32>
    %57 = arith.mulf %56, %53 : vector<256x128xf32>
    %58 = arith.select %55, %53, %57 : vector<256x128xi1>, vector<256x128xf32>
    %c1_28 = arith.constant 1 : index
    %c0_29 = arith.constant 0 : index
    %c0_30 = arith.constant 0 : index
    %59 = vector.load %arg5[%c1_28, %c0_29, %c0_30] : memref<2x1x128xf32, #tpu.memory_space<vmem>>, vector<1x1x128xf32>
    %60 = vector.shape_cast %59 : vector<1x1x128xf32> to vector<1x128xf32>
    %61 = vector.broadcast %60 : vector<1x128xf32> to vector<256x128xf32>
    %62 = arith.addf %58, %61 : vector<256x128xf32>
    %63 = vector.shape_cast %62 : vector<256x128xf32> to vector<16x16x128xf32>
    %cst_31 = arith.constant dense<0.000000e+00> : vector<16x128xf32>
    %64 = vector.multi_reduction <add>, %63, %cst_31 [1] : vector<16x16x128xf32> to vector<16x128xf32>
    %65 = arith.truncf %64 : vector<16x128xf32> to vector<16x128xbf16>
    %c0_32 = arith.constant 0 : index
    %c0_33 = arith.constant 0 : index
    %66 = vector.load %arg6[%c0_32, %c0_33] : memref<128x128xbf16, #tpu.memory_space<vmem>>, vector<128x128xbf16>
    %cst_34 = arith.constant dense<0.000000e+00> : vector<16x128xf32>
    %67 = tpu.matmul %65, %66, %cst_34 {dimension_numbers = #tpu.dot_dimension_numbers<[1], [0], [0], [1], [0, 0, 1, 1], [], []>} : vector<16x128xbf16>, vector<128x128xbf16>, vector<16x128xf32> -> vector<16x128xf32>
    %c0_35 = arith.constant 0 : index
    %c0_36 = arith.constant 0 : index
    %68 = vector.load %arg7[%c0_35, %c0_36] : memref<1x128xf32, #tpu.memory_space<vmem>>, vector<1x128xf32>
    %69 = vector.broadcast %68 : vector<1x128xf32> to vector<16x128xf32>
    %70 = arith.addf %67, %69 : vector<16x128xf32>
    %c0_37 = arith.constant 0 : index
    %c0_38 = arith.constant 0 : index
    %71 = vector.load %arg8[%c0_37, %c0_38] : memref<16x128xf32, #tpu.memory_space<vmem>>, vector<16x128xf32>
    tpu.vector_store %arg8[%c0_37, %c0_38], %70 {strides = array<i32>} : memref<16x128xf32, #tpu.memory_space<vmem>>, vector<16x128xf32>,
    return
  }
  func.func @transform_0(%arg0: i32) -> (i32, i32, i32) {
    %c0_i32 = arith.constant 0 : i32
    %c0_i32_0 = arith.constant 0 : i32
    %c0_i32_1 = arith.constant 0 : i32
    return %arg0, %c0_i32, %c0_i32_0 : i32, i32, i32
  }
  func.func @transform_1(%arg0: i32) -> (i32, i32, i32) {
    %c0_i32 = arith.constant 0 : i32
    %c0_i32_0 = arith.constant 0 : i32
    %c0_i32_1 = arith.constant 0 : i32
    return %arg0, %c0_i32, %c0_i32_0 : i32, i32, i32
  }
  func.func @transform_2(%arg0: i32) -> (i32, i32, i32) {
    %c0_i32 = arith.constant 0 : i32
    %c0_i32_0 = arith.constant 0 : i32
    %c0_i32_1 = arith.constant 0 : i32
    %c0_i32_2 = arith.constant 0 : i32
    return %c0_i32, %c0_i32_0, %c0_i32_1 : i32, i32, i32
  }
  func.func @transform_3(%arg0: i32) -> (i32, i32, i32) {
    %c0_i32 = arith.constant 0 : i32
    %c0_i32_0 = arith.constant 0 : i32
    %c0_i32_1 = arith.constant 0 : i32
    %c0_i32_2 = arith.constant 0 : i32
    return %c0_i32, %c0_i32_0, %c0_i32_1 : i32, i32, i32
  }
  func.func @transform_4(%arg0: i32) -> (i32, i32, i32) {
    %c0_i32 = arith.constant 0 : i32
    %c0_i32_0 = arith.constant 0 : i32
    %c0_i32_1 = arith.constant 0 : i32
    %c0_i32_2 = arith.constant 0 : i32
    return %c0_i32, %c0_i32_0, %c0_i32_1 : i32, i32, i32
  }
  func.func @transform_5(%arg0: i32) -> (i32, i32) {
    %c0_i32 = arith.constant 0 : i32
    %c0_i32_0 = arith.constant 0 : i32
    %c0_i32_1 = arith.constant 0 : i32
    return %c0_i32, %c0_i32_0 : i32, i32
  }
  func.func @transform_6(%arg0: i32) -> (i32, i32) {
    %c0_i32 = arith.constant 0 : i32
    %c0_i32_0 = arith.constant 0 : i32
    %c0_i32_1 = arith.constant 0 : i32
    return %c0_i32, %c0_i32_0 : i32, i32
  }
  func.func @transform_7(%arg0: i32) -> (i32, i32) {
    %c0_i32 = arith.constant 0 : i32
    %c0_i32_0 = arith.constant 0 : i32
    return %arg0, %c0_i32 : i32, i32
  }
}

</mosaic_0001>

<bundles_post_ra>
// kernel: tpu_custom_call.1
= control target key start
LH: loop header
LB: loop body
LE: loop exit
PB: predicated region body
PF: predicated region fallthrough
CT: control target
= control target key end

     0   :  { %12 = vsyncpa [#allocation3], 0  ;;  %s5211_s0 = inlined_call_operand.vmem [shape: f32[32,16,16], index: 0, kind: input, shape index: {}]   ;;  %s5212_s1 = inlined_call_operand.vmem [shape: f32[32,16,16], index: 1, kind: input, shape index: {}]   ;;  %s5213_s2 = inlined_call_operand.vmem [shape: bf16[2,128,128], index: 2, kind: input, shape index: {}]   ;;  %s5214_s3 = inlined_call_operand.vmem [shape: f32[2,1,128], index: 3, kind: input, shape index: {}]   ;;  %s5215_s4 = inlined_call_operand.vmem [shape: f32[2,1,128], index: 4, kind: input, shape index: {}]   ;;  %s5216_s5 = inlined_call_operand.vmem [shape: bf16[128,128], index: 5, kind: input, shape index: {}]   ;;  %s5217_s6 = inlined_call_operand.vmem [shape: f32[1,128], index: 6, kind: input, shape index: {}]   ;;  %s5218_s7 = inlined_call_operand.hbm [shape: f32[32,128], index: 7, kind: output, shape index: {}]  }
   0x1   :  { %14 = vsyncpa [#allocation3 + $0x1], 0  ;;  %s3466_s24 = smov 0   ;;  %s3468_s25 = smov 0  }
   0x2   :  { %s3470_s26 = smov 0   ;;  %s3472_s27 = smov 0  }
   0x3 LB: > { %s3026_s28 = sadd.s32 4294967295, %s3421_s27   ;;  %s3027_s29 = sadd.s32 4294967294, %s3421_s27   ;;  %s3421_s27 = sphi %s3472_s27, %s5378_s27   ;;  %s3417_s26 = sphi %s3470_s26, %s5377_s26   ;;  %s3413_s25 = sphi %s3468_s25, %s5376_s25   ;;  %s3409_s24 = sphi %s3466_s24, %s5375_s24  }
   0x4   : > { %s3489_s30 = sadd.s32 1, %s3421_s27   ;;  %s184_s8 = sadd.s32 1, %s3417_s26 }
   0x5   : > { %s181_s9 = ssub.s32 %s3421_s27, %s3489_s30  ;;  %p194_p0 = scmp.ne.s32.totalorder %s3417_s26, %s3413_s25 }
   0x6   : > { %p182_p1 = scmp.eq.s32.totalorder %s181_s9, 0  ;;  %p195_p2 = scmp.eq.s32.totalorder %s3026_s28, 1 }
   0x7   : > { %p200_p3 = scmp.ne.s32.totalorder %s3413_s25, %s3409_s24  ;;  %p201_p4 = scmp.eq.s32.totalorder %s3027_s29, 1 }
   0x8   : > { %s3499_s10 = scalar_select %p182_p1, %s3417_s26, %s184_s8  }
   0x9   : > { %p3501_p5 = por %p195_p2, %p194_p0  ;;  %p3505_p6 = por %p201_p4, %p200_p3 }
   0xa   : > { %p3030_p7 = scmp.ge.s32.totalorder %s3421_s27, 1  ;;  %p254_p8 = scmp.lt.s32.totalorder %s3421_s27, 3 }
   0xc   : > { %p255_p9 = pnand %p3030_p7, %p254_p8 }
   0xe   : > { %258 = sbr.rel (%p255_p9) target bundleno = 1136 (0x470), region = 48 }
  0x13   : > { %s3511_s13 = sshll.u32 %s3026_s28, 4  ;;  %v309_v0 = vlaneseq  ;;  %v3423_v4 = vmov 0.0   ;;  %vm416_vm2 = vcmask 130048   ;;  %s290_s22 = sand.u32 1, %s3413_s25  }
  0x14   : > { %p294_p10 = scmp.lt.s32.totalorder %s3511_s13, 31  ;;  %s3031_s23 = sshll.u32 %s290_s22, 4 }
  0x15   : > { %v310_v1 = vshrl.u32 %v309_v0, 7  ;;  %v313_v2 = vand.u32 127, %v309_v0  ;;  %s292_s8 = scalar_lea.vmem [#allocation2], %s3031_s23  ;;  %s3379_s28 = scalar_lea.hbm %s5218_s7, 32 }
  0x16   : > { %s3515_s14 = scalar_select %p294_p10, %s3511_s13, 31 }
  0x17   : > { %vm314_vm0 = vcmp.eq.s32.totalorder %v310_v1, %v313_v2  ;;  %v311_v3 = vadd.s32 8, %v310_v1  ;;  %s2950_s16 = sshll.u32 %s292_s8, 4  ;;  %s2951_s16 = int_to_ptr.vmem [resolvable:$true] %s2950_s16 }
  0x18   : > { %s3179_s15 = sshll.u32 %s3515_s14, 4  ;;  %v3525_v5 = vsel %vm314_vm0, 1.0, %v3423_v4 }
  0x19   : > { %s3523_s18 = scalar_lea.vmem %s5211_s0, %s3179_s15  ;;  %vm315_vm1 = vcmp.eq.s32.totalorder %v311_v3, %v313_v2  ;;  %s3766_s21 = scalar_lea.vmem %s5212_s1, %s3179_s15 }
  0x1a   : > { %v324_v6 = vld [vmem:[%s3523_s18 + $0x20] sm:$0xff]  ;;  %v322_v7 = vld [vmem:[%s3523_s18 + $0x10] sm:$0xff]  ;;  %v3530_v12 = vsel %vm315_vm1, 1.0, %v3423_v4  ;;  %v325_v13 = vld [vmem:[%s3523_s18 + $0x28] sm:$0xff]  ;;  %s2949_s15 = scalar_lea.hbm %s5218_s7, %s3511_s13 }
  0x1b   : > { %v320_v8 = vld [vmem:[%s3523_s18] sm:$0xff]  ;;  %v356_v9 = vand.u32 2147483647, %v324_v6  ;;  %v354_v10 = vand.u32 2147483647, %v322_v7  ;;  %v323_v14 = vld [vmem:[%s3523_s18 + $0x18] sm:$0xff] }
  0x1c   : > { %v352_v11 = vand.u32 2147483647, %v320_v8  ;;  %v321_v15 = vld [vmem:[%s3523_s18 + $0x8] sm:$0xff]  ;;  %v357_v19 = vand.u32 2147483647, %v325_v13  ;;  %v327_v20 = vld [vmem:[%s3523_s18 + $0x38] sm:$0xff] }
  0x1d   : > { %v3536_v16 = vadd.f32 %v3525_v5, %v356_v9  ;;  %v3539_v17 = vadd.f32 %v3525_v5, %v354_v10  ;;  %v326_v21 = vld [vmem:[%s3523_s18 + $0x30] sm:$0xff]  ;;  %v355_v22 = vand.u32 2147483647, %v323_v14  ;;  %v353_v23 = vand.u32 2147483647, %v321_v15  ;;  %v328_v29 = vld [vmem:[%s3523_s18 + $0x40] sm:$0xff] }
  0x1e   : > { %v3542_v18 = vadd.f32 %v3525_v5, %v352_v11  ;;  %v359_v24 = vand.u32 2147483647, %v327_v20  ;;  %v3553_v28 = vadd.f32 %v3530_v12, %v357_v19  ;;  %v329_v30 = vld [vmem:[%s3523_s18 + $0x48] sm:$0xff]  ;;  %v358_v33 = vand.u32 2147483647, %v326_v21  ;;  %v331_v41 = vld [vmem:[%s3523_s18 + $0x58] sm:$0xff] }
  0x1f   : > { %v429_v25 = vsel %vm416_vm2, %v3536_v16, 0.0  ;;  %v423_v26 = vsel %vm416_vm2, %v3539_v17, 0.0  ;;  %v3558_v31 = vadd.f32 %v3530_v12, %v355_v22  ;;  %v3561_v32 = vadd.f32 %v3530_v12, %v353_v23  ;;  %v330_v42 = vld [vmem:[%s3523_s18 + $0x50] sm:$0xff]  ;;  %v333_v52 = vld [vmem:[%s3523_s18 + $0x68] sm:$0xff]  ;;  %v332_v60 = vld [vmem:[%s3523_s18 + $0x60] sm:$0xff]  ;;  %s2952_s17 = sshll.u32 %s2949_s15, 4  ;;  %s2953_s17 = int_to_ptr.hbm [resolvable:$true] %s2952_s17 }
  0x20   : > { %v417_v27 = vsel %vm416_vm2, %v3542_v18, 0.0  ;;  %430 = vadd.xlane.f32.xlu2 %v429_v25  ;;  %424 = vadd.xlane.f32.xlu1 %v423_v26  ;;  %v432_v34 = vsel %vm416_vm2, %v3553_v28, 0.0  ;;  %v3566_v35 = vadd.f32 %v3530_v12, %v359_v24  ;;  %v360_v36 = vand.u32 2147483647, %v328_v29  ;;  %v336_v2 = vld [vmem:[%s3523_s18 + $0x80] sm:$0xff]  ;;  %v337_v6 = vld [vmem:[%s3523_s18 + $0x88] sm:$0xff] }
  0x21   : > { %418 = vadd.xlane.f32.xlu0 %v417_v27  ;;  %v361_v37 = vand.u32 2147483647, %v329_v30  ;;  %v3568_v38 = vadd.f32 %v432_v34, %v429_v25  ;;  %v426_v39 = vsel %vm416_vm2, %v3558_v31, 0.0  ;;  %v420_v40 = vsel %vm416_vm2, %v3561_v32, 0.0  ;;  %v335_v13 = vld [vmem:[%s3523_s18 + $0x78] sm:$0xff]  ;;  %v334_v14 = vld [vmem:[%s3523_s18 + $0x70] sm:$0xff] }
  0x22   : > { %v3576_v43 = vadd.f32 %v426_v39, %v423_v26  ;;  %v3578_v44 = vadd.f32 %v420_v40, %v417_v27  ;;  %v3581_v45 = vadd.f32 %v3525_v5, %v358_v33  ;;  %v3584_v46 = vadd.f32 %v3525_v5, %v360_v36  ;;  %v345_v26 = vld [vmem:[%s3523_s18 + $0xc8] sm:$0xff]  ;;  %v344_v27 = vld [vmem:[%s3523_s18 + $0xc0] sm:$0xff]  ;;  %s3373_s19 = sshra.s32 %s2953_s17, 4  ;;  %s3374_s19 = int_to_ptr.hbm [resolvable:$true] %s3373_s19 }
  0x23   : > { %v3587_v47 = vadd.f32 %v3530_v12, %v361_v37  ;;  %v363_v48 = vand.u32 2147483647, %v331_v41  ;;  %v362_v49 = vand.u32 2147483647, %v330_v42  ;;  %v438_v50 = vsel %vm416_vm2, %v3566_v35, 0.0  ;;  %s3375_s20 = scalar_lea.hbm %s3374_s19, 16  ;;  %p3380_p0 = scmp.lt.s32.totalorder %s3374_s19, %s5218_s7 }
  0x24   : > { %v435_v51 = vsel %vm416_vm2, %v3581_v45, 0.0  ;;  %v441_v54 = vsel %vm416_vm2, %v3584_v46, 0.0  ;;  %v365_v59 = vand.u32 2147483647, %v333_v52  ;;  %v364_v1 = vand.u32 2147483647, %v332_v60  ;;  %p3376_p11 = scmp.ne.s32.totalorder %s3374_s19, %s3375_s20  ;;  %p3381_p1 = scmp.lt.s32.totalorder %s3379_s28, %s3375_s20 }
  0x25   : > { %5252 = vst [vmem:[#allocation5_spill] sm:$0xff] %v3587_v47  ;;  %v3594_v53 = vadd.f32 %v438_v50, %v435_v51  ;;  %v444_v55 = vsel %vm416_vm2, %v3587_v47, 0.0  ;;  %v3601_v56 = vadd.f32 %v3530_v12, %v363_v48  ;;  %v3606_v58 = vadd.f32 %v3525_v5, %v362_v49 }
  0x26   : > { %v3603_v57 = vadd.f32 %v444_v55, %v441_v54  ;;  %v3614_v0 = vadd.f32 %v3530_v12, %v365_v59  ;;  %v3618_v3 = vadd.f32 %v3525_v5, %v364_v1  ;;  %v368_v4 = vand.u32 2147483647, %v336_v2  ;;  %p3377_p12 = pnand %p3376_p11, %p3501_p5  ;;  %p3382_p2 = por %p3381_p1, %p3380_p0 }
  0x27   : > { %5253 = vst [vmem:[#allocation6_spill] sm:$0xff] %v3601_v56  ;;  %v450_v61 = vsel %vm416_vm2, %v3601_v56, 0.0  ;;  %v447_v62 = vsel %vm416_vm2, %v3606_v58, 0.0  ;;  %v369_v11 = vand.u32 2147483647, %v337_v6  ;;  %v848_v48 = vrot.slane %v3568_v38, 4 }
  0x28   : > { %5254 = vst [vmem:[#allocation7_spill] sm:$0xff] %v3606_v58  ;;  %433 = vadd.xlane.f32.xlu2 %v432_v34  ;;  %427 = vadd.xlane.f32.xlu1 %v426_v39  ;;  %v868_v63 = vadd.f32 %v450_v61, %v447_v62  ;;  %v456_v7 = vsel %vm416_vm2, %v3614_v0, 0.0  ;;  %v453_v8 = vsel %vm416_vm2, %v3618_v3, 0.0  ;;  %v3626_v10 = vadd.f32 %v3525_v5, %v368_v4  ;;  %p3378_p13 = pneg %p3377_p12 }
  0x29   : > { %421 = vadd.xlane.f32.xlu0 %v420_v40  ;;  %5255 = vst [vmem:[#allocation8_spill] sm:$0xff] %v3614_v0  ;;  %v875_v9 = vadd.f32 %v456_v7, %v453_v8  ;;  %v3631_v15 = vadd.f32 %v3530_v12, %v369_v11  ;;  %v367_v19 = vand.u32 2147483647, %v335_v13  ;;  %v366_v20 = vand.u32 2147483647, %v334_v14 }
  0x2a   : > { %5256 = vst [vmem:[#allocation9_spill] sm:$0xff] %v3618_v3  ;;  %v465_v21 = vsel %vm416_vm2, %v3626_v10, 0.0  ;;  %v377_v33 = vand.u32 2147483647, %v345_v26  ;;  %v376_v36 = vand.u32 2147483647, %v344_v27  ;;  %p3383_p3 = pnand %p3382_p2, %p3378_p13 }
  0x2b   : > { %5257 = vst [vmem:[#allocation10_spill] sm:$0xff] %v3626_v10  ;;  %v468_v22 = vsel %vm416_vm2, %v3631_v15, 0.0  ;;  %v3638_v23 = vadd.f32 %v3530_v12, %v367_v19  ;;  %v3641_v25 = vadd.f32 %v3525_v5, %v366_v20  ;;  %v841_v49 = vrot.slane %v3576_v43, 4 }
  0x2c   : > { %5258 = vst [vmem:[#allocation11_spill] sm:$0xff] %v3631_v15  ;;  %v889_v24 = vadd.f32 %v468_v22, %v465_v21  ;;  %v3652_v37 = vadd.f32 %v3530_v12, %v377_v33  ;;  %v3655_v39 = vadd.f32 %v3525_v5, %v376_v36  ;;  %v869_v59 = vrot.slane %v868_v63, 4 }
  0x2d   : > { %5259 = vst [vmem:[#allocation12_spill] sm:$0xff] %v3638_v23  ;;  %v462_v29 = vsel %vm416_vm2, %v3638_v23, 0.0  ;;  %v459_v30 = vsel %vm416_vm2, %v3641_v25, 0.0  ;;  %v842_v52 = vadd.f32 %v841_v49, %v3576_v43  ;;  %v855_v4 = vrot.slane %v3594_v53, 4 }
  0x2e   : > { %5260 = vst [vmem:[#allocation13_spill] sm:$0xff] %v3641_v25  ;;  %v3649_v34 = vadd.f32 %v462_v29, %v459_v30  ;;  %v492_v40 = vsel %vm416_vm2, %v3652_v37, 0.0  ;;  %v489_v41 = vsel %vm416_vm2, %v3655_v39, 0.0  ;;  %v870_v6 = vadd.f32 %v869_v59, %v868_v63  ;;  %v339_v63 = vld [vmem:[%s3523_s18 + $0x98] sm:$0xff] }
  0x2f   : > { %5261 = vst [vmem:[#allocation14_spill] sm:$0xff] %v3652_v37  ;;  %v3661_v42 = vadd.f32 %v492_v40, %v489_v41  ;;  %v371_v36 = vand.u32 2147483647, %v339_v63 }
  0x30   : > { %439 = vadd.xlane.f32.xlu1 %v438_v50  ;;  %442 = vadd.xlane.f32.xlu2 %v441_v54  ;;  %5262 = vst [vmem:[#allocation15_spill] sm:$0xff] %v3655_v39  ;;  %v834_v50 = vrot.slane %v3578_v44, 4  ;;  %v871_v13 = vrot.slane %v870_v6, 2 }
  0x31   : > { %436 = vadd.xlane.f32.xlu0 %v435_v51  ;;  %v849_v51 = vadd.f32 %v848_v48, %v3568_v38 }
  0x32   : > { %v835_v54 = vadd.f32 %v834_v50, %v3578_v44  ;;  %v856_v44 = vadd.f32 %v855_v4, %v3594_v53  ;;  %v872_v27 = vadd.f32 %v871_v13, %v870_v6  ;;  %v3685_v50 = vadd.f32 %v3530_v12, %v371_v36  ;;  %v341_v4 = vld [vmem:[%s3523_s18 + $0xa8] sm:$0xff]  ;;  %v342_v6 = vld [vmem:[%s3523_s18 + $0xb0] sm:$0xff] }
  0x33   : > { %v850_v60 = vrot.slane %v849_v51, 2 }
  0x34   : > { %v836_v1 = vrot.slane %v835_v54, 2  ;;  %5264 = vst [vmem:[#allocation17_spill] sm:$0xff] %v3685_v50  ;;  %v474_v59 = vsel %vm416_vm2, %v3685_v50, 0.0 }
  0x36   : > { %v837_v43 = vadd.f32 %v836_v1, %v835_v54  ;;  %v883_v54 = vrot.slane %v3649_v34, 4 }
  0x38   : > { %451 = vadd.xlane.f32.xlu2 %v450_v61  ;;  %448 = vadd.xlane.f32.xlu1 %v447_v62  ;;  %v876_v61 = vrot.slane %v875_v9, 4  ;;  %v843_v62 = vrot.slane %v842_v52, 2 }
  0x39   : > { %445 = vadd.xlane.f32.xlu0 %v444_v55  ;;  %v862_v55 = vrot.slane %v3603_v57, 4 }
  0x3a   : > { %v877_v38 = vadd.f32 %v876_v61, %v875_v9 }
  0x3b   : > { %v863_v2 = vadd.f32 %v862_v55, %v3603_v57  ;;  %v857_v57 = vrot.slane %v856_v44, 2 }
  0x3c   : > { %v878_v19 = vrot.slane %v877_v38, 2 }
  0x3d   : > { %v864_v11 = vrot.slane %v863_v2, 2 }
  0x3e   : > { %v879_v33 = vadd.f32 %v878_v19, %v877_v38  ;;  %v373_v38 = vand.u32 2147483647, %v341_v4 }
  0x3f   : > { %v865_v26 = vadd.f32 %v864_v11, %v863_v2  ;;  %v884_v2 = vadd.f32 %v883_v54, %v3649_v34  ;;  %v340_v11 = vld [vmem:[%s3523_s18 + $0xa0] sm:$0xff] }
  0x40   : > { %457 = vadd.xlane.f32.xlu1 %v456_v7  ;;  %466 = vadd.xlane.f32.xlu2 %v465_v21  ;;  %v851_v7 = vadd.f32 %v850_v60, %v849_v51  ;;  %v890_v21 = vrot.slane %v889_v24, 4  ;;  %v858_v51 = vadd.f32 %v857_v57, %v856_v44  ;;  %v880_v55 = vrot.slane %v879_v33, 1 }
  0x41   : > { %454 = vadd.xlane.f32.xlu0 %v453_v8  ;;  %v844_v8 = vadd.f32 %v843_v62, %v842_v52  ;;  %v866_v48 = vrot.slane %v865_v26, 1  ;;  %v873_v52 = vrot.slane %v872_v27, 1  ;;  %v3709_v13 = vadd.f32 %v3530_v12, %v373_v38  ;;  %v343_v38 = vld [vmem:[%s3523_s18 + $0xb8] sm:$0xff] }
  0x42   : > { %v852_v14 = vrot.slane %v851_v7, 1  ;;  %v859_v62 = vrot.slane %v858_v51, 1  ;;  %v372_v19 = vand.u32 2147483647, %v340_v11 }
  0x43   : > { %v845_v20 = vrot.slane %v844_v8, 1  ;;  %v3695_v61 = vadd.f32 %v866_v48, %v865_v26  ;;  %v3697_v1 = vadd.f32 %v873_v52, %v872_v27  ;;  %5265 = vst [vmem:[#allocation18_spill] sm:$0xff] %v3709_v13  ;;  %v480_v26 = vsel %vm416_vm2, %v3709_v13, 0.0  ;;  %v347_v52 = vld [vmem:[%s3523_s18 + $0xd8] sm:$0xff] }
  0x44   : > { %v3729_v27 = vadd.f32 %v3525_v5, %v372_v19 }
  0x46   : > { %5267 = vst [vmem:[#allocation20_spill] sm:$0xff] %v3729_v27 }
  0x48   : > { %463 = vadd.xlane.f32.xlu2 %v462_v29  ;;  %460 = vadd.xlane.f32.xlu1 %v459_v30  ;;  %v338_v29 = vld [vmem:[%s3523_s18 + $0x90] sm:$0xff]  ;;  %v3675_v30 = vadd.f32 %v852_v14, %v851_v7  ;;  %v3702_v7 = vadd.f32 %v880_v55, %v879_v33  ;;  %v918_v33 = vrot.slane %v3661_v42, 4 }
  0x49   : > { %469 = vadd.xlane.f32.xlu0 %v468_v22  ;;  %v838_v22 = vrot.slane %v837_v43, 1  ;;  %v370_v9 = vand.u32 2147483647, %v338_v29 }
  0x4a   : > { %3263 = vrsqrt.f32 %v3675_v30  ;;  %v919_v11 = vadd.f32 %v918_v33, %v3661_v42  ;;  %vm971_vm7 = vweird.f32 %v3675_v30 }
  0x4b   : > { %v3679_v53 = vadd.f32 %v838_v22, %v837_v43  ;;  %v3682_v49 = vadd.f32 %v3525_v5, %v370_v9  ;;  %v477_v9 = vsel %vm416_vm2, %v3729_v27, 0.0  ;;  %v1205_v27 = vld [vmem:[%s3766_s21 + $0x20] sm:$0xff] }
  0x4d   : > { %5263 = vst [vmem:[#allocation16_spill] sm:$0xff] %v3682_v49  ;;  %vm951_vm3 = vweird.f32 %v3679_v53 }
  0x50   : > { %493 = vadd.xlane.f32.xlu1 %v492_v40  ;;  %v3677_v40 = vadd.f32 %v845_v20, %v844_v8  ;;  %v374_v8 = vand.u32 2147483647, %v342_v6  ;;  %v3705_v44 = vpop.eup %3263  ;;  %v3716_v20 = vadd.f32 %v859_v62, %v858_v51  ;;  %v346_v51 = vld [vmem:[%s3523_s18 + $0xd0] sm:$0xff] }
  0x51   : > { %490 = vadd.xlane.f32.xlu0 %v489_v41  ;;  %v891_v41 = vadd.f32 %v890_v21, %v889_v24  ;;  %v471_v24 = vsel %vm416_vm2, %v3682_v49, 0.0  ;;  %v885_v21 = vrot.slane %v884_v2, 2  ;;  %v966_v29 = vmul.f32 %v3705_v44, %v3675_v30 }
  0x52   : > { %3265 = vrsqrt.f32 %v3677_v40  ;;  %472 = vadd.xlane.f32.xlu2 %v471_v24  ;;  %v3712_v14 = vadd.f32 %v3525_v5, %v374_v8  ;;  %v378_v55 = vand.u32 2147483647, %v346_v51  ;;  %v3772_v33 = vadd.f32 %v474_v59, %v471_v24 }
  0x53   : > { %v892_v60 = vrot.slane %v891_v41, 2  ;;  %3267 = vrsqrt.f32 %v3679_v53  ;;  %v886_v48 = vadd.f32 %v885_v21, %v884_v2  ;;  %v967_v4 = vmul.f32 %v3705_v44, %v966_v29 }
  0x54   : > { %3269 = vrsqrt.f32 %v3695_v61  ;;  %5266 = vst [vmem:[#allocation19_spill] sm:$0xff] %v3712_v14  ;;  %v3726_v57 = vsel %vm416_vm2, %v3712_v14, 0.0  ;;  %v3756_v2 = vadd.f32 %v3525_v5, %v378_v55  ;;  %v375_v21 = vand.u32 2147483647, %v343_v38 }
  0x55   : > { %v893_v43 = vadd.f32 %v892_v60, %v891_v41  ;;  %3271 = vrsqrt.f32 %v3697_v1  ;;  %v379_v60 = vand.u32 2147483647, %v347_v52  ;;  %v3774_v51 = vadd.f32 %v480_v26, %v477_v9 }
  0x56   : > { %3273 = vrsqrt.f32 %v3702_v7  ;;  %5271 = vst [vmem:[#allocation24_spill] sm:$0xff] %v3756_v2  ;;  %v495_v52 = vsel %vm416_vm2, %v3756_v2, 0.0  ;;  %v3787_v24 = vadd.f32 %v3530_v12, %v375_v21  ;;  %v920_v38 = vrot.slane %v919_v11, 2  ;;  %v1204_v2 = vld [vmem:[%s3766_s21 + $0x18] sm:$0xff] }
  0x57   : > { %v894_v63 = vrot.slane %v893_v43, 1  ;;  %3275 = vrsqrt.f32 %v3716_v20  ;;  %v3759_v19 = vadd.f32 %v3530_v12, %v379_v60  ;;  %v1236_v37 = vpack.c.bf16 %v1204_v2, %v1204_v2 }
  0x58   : > { %v3714_v34 = vpop.eup %3265  ;;  %478 = vadd.xlane.f32.xlu1 %v477_v9  ;;  %5273 = vst [vmem:[#allocation26_spill] sm:$0xff] %v3787_v24  ;;  %v1203_v9 = vld [vmem:[%s3766_s21 + $0x10] sm:$0xff]  ;;  %v3803_v21 = vsel %vm416_vm2, %v3787_v24, 0.0  ;;  %v921_v2 = vadd.f32 %v920_v38, %v919_v11  ;;  %vm972_vm14 = vweird.f32 %v3705_v44 }
  0x59   : > { %475 = vadd.xlane.f32.xlu0 %v474_v59  ;;  %v3719_v22 = vpop.eup %3267  ;;  %v956_v36 = vmul.f32 %v3714_v34, %v3677_v40  ;;  %v3749_v6 = vadd.f32 %v894_v63, %v893_v43  ;;  %5272 = vst [vmem:[#allocation25_spill] sm:$0xff] %v3759_v19  ;;  %v887_v63 = vrot.slane %v886_v48, 1  ;;  %v498_v55 = vsel %vm416_vm2, %v3759_v19, 0.0  ;;  %v1201_v59 = vld [vmem:[%s3766_s21] sm:$0xff] }
  0x5a   : > { %481 = vadd.xlane.f32.xlu2 %v480_v26  ;;  %v946_v41 = vmul.f32 %v3719_v22, %v3679_v53  ;;  %v3744_v54 = vpop.eup %3269  ;;  %v1202_v26 = vld [vmem:[%s3766_s21 + $0x8] sm:$0xff]  ;;  %v1233_v14 = vpack.c.bf16 %v1201_v59, %v1201_v59  ;;  %v1235_v39 = vpack.c.bf16 %v1203_v9, %v1203_v9  ;;  %v1301_v0 = vunpack.c.l.b16 %v1236_v37 }
  0x5b   : > { %v3746_v62 = vpop.eup %3271  ;;  %5269 = vst [vmem:[#allocation22_spill] sm:$0xff] %v3749_v6  ;;  %v957_v43 = vmul.f32 %v3714_v34, %v956_v36  ;;  %v986_v29 = vmul.f32 %v3744_v54, %v3695_v61  ;;  %3277 = vrsqrt.f32 %v3749_v6  ;;  %v1234_v19 = vpack.c.bf16 %v1202_v26, %v1202_v26 }
  0x5c   : > { %5268 = vst [vmem:[#allocation21_spill] sm:$0xff] %v3746_v62  ;;  %v3752_v8 = vpop.eup %3273  ;;  %v947_v42 = vmul.f32 %v3719_v22, %v946_v41  ;;  %v996_v41 = vmul.f32 %v3746_v62, %v3697_v1  ;;  %v3795_v13 = vadd.f32 %v887_v63, %v886_v48  ;;  %v1206_v48 = vld [vmem:[%s3766_s21 + $0x28] sm:$0xff]  ;;  %v1237_v63 = vpack.c.bf16 %v1205_v27, %v1205_v27 }
  0x5d   : > { %5270 = vst [vmem:[#allocation23_spill] sm:$0xff] %v3752_v8  ;;  %v3780_v36 = vpop.eup %3275  ;;  %v1006_v60 = vmul.f32 %v3752_v8, %v3702_v7  ;;  %v987_v26 = vmul.f32 %v3744_v54, %v986_v29  ;;  %v1272_v9 = vunpack.c.l.b16 %v1233_v14  ;;  %v1273_v10 = vunpack.c.l.b16 %v1234_v19 }
  0x5e   : > { %5274 = vst [vmem:[#allocation27_spill] sm:$0xff] %v3795_v13  ;;  %v948_v25 = vmul.f32 0.5, %v947_v42  ;;  %v976_v23 = vmul.f32 %v3780_v36, %v3716_v20  ;;  %v997_v15 = vmul.f32 %v3746_v62, %v996_v41  ;;  %v3816_v42 = vadd.f32 %v498_v55, %v495_v52 }
  0x5f   : > { %v1007_v24 = vmul.f32 %v3752_v8, %v1006_v60  ;;  %v1300_v3 = vunpack.c.l.b16 %v1235_v39  ;;  %v1238_v56 = vpack.c.bf16 %v1206_v48, %v1206_v48  ;;  %v1274_v27 = vpack.c.b16 %v1273_v10, %v1272_v9  ;;  %v349_v8 = vld [vmem:[%s3523_s18 + $0xe8] sm:$0xff] }
  0x60   : > { %487 = vadd.xlane.f32.xlu1 %v3803_v21  ;;  %v1328_v29 = vunpack.c.l.b16 %v1237_v63  ;;  %v968_v41 = vmul.f32 0.5, %v967_v4  ;;  %v977_v14 = vmul.f32 %v3780_v36, %v976_v23  ;;  %v3827_v19 = vmul.f32 0.5, %v987_v26 }
  0x61   : > { %484 = vadd.xlane.f32.xlu0 %v3726_v57  ;;  %v3819_v58 = vpop.eup %3277  ;;  %v1302_v11 = vpack.c.b16 %v1301_v0, %v1300_v3  ;;  %v1329_v60 = vunpack.c.l.b16 %v1238_v56  ;;  %v922_v39 = vrot.slane %v921_v2, 1  ;;  %1286 = vmatpush.bf16.msra.mxu0 %v1274_v27  ;;  %v949_v37 = vsub.f32 1.5, %v948_v25 }
  0x62   : > { %496 = vadd.xlane.f32.xlu2 %v495_v52  ;;  %5275 = vst [vmem:[#allocation28_spill] sm:$0xff] %v3819_v58  ;;  %v3825_v52 = vmul.f32 0.5, %v957_v43  ;;  %v3831_v48 = vmul.f32 0.5, %v1007_v24  ;;  %v1026_v23 = vmul.f32 %v3819_v58, %v3749_v6  ;;  %vm952_vm4 = vweird.f32 %v3719_v22 }
  0x63   : > { %1314 = vmatpush.bf16.msra.mxu1 %v1302_v11  ;;  %v1330_v56 = vpack.c.b16 %v1329_v60, %v1328_v29  ;;  %v3850_v43 = vmul.f32 0.5, %v977_v14  ;;  %v3858_v9 = vadd.f32 %v922_v39, %v921_v2  ;;  %v969_v27 = vsub.f32 1.5, %v968_v41  ;;  %vm953_vm5 = vmor %vm951_vm3, %vm952_vm4 }
  0x64   : > { %5277 = vst [vmem:[#allocation30_spill] sm:$0xff] %v3831_v48  ;;  %v950_v29 = vmul.f32 %v3719_v22, %v949_v37  ;;  %v3871_v39 = vmul.f32 %v3819_v58, %v1026_v23  ;;  %v897_v41 = vrot.slane %v3772_v33, 4  ;;  %v3876_v37 = vadd.f32 %v3803_v21, %v3726_v57  ;;  %vm973_vm4 = vmor %vm971_vm7, %vm972_vm14 }
  0x65   : > { %1342 = vmatpush.bf16.msra.mxu2 %v1330_v56  ;;  %v970_v11 = vmul.f32 %v3705_v44, %v969_v27  ;;  %v381_v47 = vand.u32 2147483647, %v349_v8 }
  0x66   : > { %v3890_v57 = vsel %vm953_vm5, %v3719_v22, %v950_v29  ;;  %v898_v27 = vadd.f32 %v897_v41, %v3772_v33 }
  0x68   : > { %v899_v62 = vrot.slane %v898_v27, 2 }
  0x69   : > { %499 = vadd.xlane.f32.xlu0 %v498_v55  ;;  %v3829_v55 = vmul.f32 0.5, %v997_v15 }
  0x6b   : > { %5276 = vst [vmem:[#allocation29_spill] sm:$0xff] %v3829_v55 }
  0x93   : > { %v3797_v50 = vpop.xlane.xlu2 %430  ;;  %v3799_v49 = vpop.xlane.xlu1 %424 }
  0x94   : > { %3279 = vrsqrt.f32 %v3797_v50  ;;  %v3808_v59 = vpop.xlane.xlu0 %418  ;;  %vm559_vm6 = vweird.f32 %v3797_v50  ;;  %vm539_vm15 = vweird.f32 %v3799_v49 }
  0x95   : > { %3281 = vrsqrt.f32 %v3808_v59  ;;  %vm519_vm13 = vweird.f32 %v3808_v59 }
  0x96   : > { %3283 = vrsqrt.f32 %v3795_v13 }
  0x97   : > { %3285 = vrsqrt.f32 %v3799_v49 }
  0x9a   : > { %v3823_v38 = vpop.eup %3279 }
  0x9b   : > { %v554_v10 = vmul.f32 %v3823_v38, %v3797_v50  ;;  %v3835_v4 = vpop.xlane.xlu2 %433  ;;  %v3837_v0 = vpop.xlane.xlu1 %427  ;;  %vm560_vm8 = vweird.f32 %v3823_v38 }
  0x9c   : > { %v3839_v3 = vpop.eup %3281  ;;  %3287 = vrsqrt.f32 %v3835_v4  ;;  %v3844_v15 = vpop.xlane.xlu0 %421  ;;  %vm569_vm10 = vweird.f32 %v3835_v4  ;;  %vm3916_vm12 = vmor %vm559_vm6, %vm560_vm8  ;;  %vm549_vm8 = vweird.f32 %v3837_v0 }
  0x9d   : > { %v3848_v25 = vpop.eup %3283  ;;  %v555_v24 = vmul.f32 %v3823_v38, %v554_v10  ;;  %v514_v63 = vmul.f32 %v3839_v3, %v3808_v59  ;;  %3289 = vrsqrt.f32 %v3837_v0  ;;  %vm520_vm9 = vweird.f32 %v3839_v3 }
  0x9e   : > { %v3856_v26 = vpop.eup %3285  ;;  %3291 = vrsqrt.f32 %v3844_v15  ;;  %v3880_v56 = vmul.f32 %v3848_v25, %v3795_v13  ;;  %vm3931_vm0 = vmor %vm519_vm13, %vm520_vm9  ;;  %vm529_vm5 = vweird.f32 %v3844_v15  ;;  %vm961_vm13 = vweird.f32 %v3677_v40 }
  0x9f   : > { %v556_v60 = vmul.f32 0.5, %v555_v24  ;;  %v515_v10 = vmul.f32 %v3839_v3, %v514_v63  ;;  %v534_v24 = vmul.f32 %v3856_v26, %v3799_v49  ;;  %v904_v63 = vrot.slane %v3774_v51, 4 }
  0xa0   : > { %3293 = vrsqrt.f32 %v3858_v9  ;;  %vm540_vm7 = vweird.f32 %v3856_v26  ;;  %v1017_v49 = vmul.f32 %v3848_v25, %v3880_v56  ;;  %v959_v56 = vsub.f32 1.5, %v3825_v52 }
  0xa1   : > { %v516_v53 = vmul.f32 0.5, %v515_v10  ;;  %v557_v23 = vsub.f32 1.5, %v556_v60  ;;  %v535_v29 = vmul.f32 %v3856_v26, %v534_v24  ;;  %v905_v48 = vadd.f32 %v904_v63, %v3774_v51 }
  0xa2   : > { %v3885_v2 = vpop.eup %3287 }
  0xa3   : > { %v3892_v21 = vpop.eup %3289  ;;  %v517_v14 = vsub.f32 1.5, %v516_v53  ;;  %v564_v10 = vmul.f32 %v3885_v2, %v3835_v4  ;;  %v3897_v13 = vpop.xlane.xlu1 %439  ;;  %v558_v55 = vmul.f32 %v3823_v38, %v557_v23  ;;  %vm570_vm11 = vweird.f32 %v3885_v2 }
  0xa4   : > { %v3292_v58 = vpop.eup %3291  ;;  %v544_v22 = vmul.f32 %v3892_v21, %v3837_v0  ;;  %3295 = vrsqrt.f32 %v3897_v13  ;;  %v536_v50 = vmul.f32 0.5, %v535_v29  ;;  %vm3944_vm1 = vmor %vm569_vm10, %vm570_vm11  ;;  %v906_v29 = vrot.slane %v905_v48, 2 }
  0xa5   : > { %v565_v60 = vmul.f32 %v3885_v2, %v564_v10  ;;  %v524_v53 = vmul.f32 %v3292_v58, %v3844_v15  ;;  %v518_v41 = vmul.f32 %v3839_v3, %v517_v14  ;;  %v3922_v10 = vpop.xlane.xlu0 %436  ;;  %v562_v8 = vsel %vm3916_vm12, %v3823_v38, %v558_v55  ;;  %v348_v55 = vld [vmem:[%s3523_s18 + $0xe0] sm:$0xff]  ;;  %vm3989_vm10 = vmor %vm539_vm15, %vm540_vm7 }
  0xa6   : > { %v545_v51 = vmul.f32 %v3892_v21, %v544_v22  ;;  %v3924_v23 = vpop.eup %3293  ;;  %vm530_vm3 = vweird.f32 %v3292_v58  ;;  %3297 = vrsqrt.f32 %v3922_v10  ;;  %v3959_v4 = vadd.f32 %v899_v62, %v898_v27 }
  0xa7   : > { %v566_v24 = vmul.f32 0.5, %v565_v60  ;;  %v525_v63 = vmul.f32 %v3292_v58, %v524_v53  ;;  %v3964_v14 = vadd.f32 %v3530_v12, %v381_v47  ;;  %vm531_vm6 = vmor %vm529_vm5, %vm530_vm3  ;;  %v974_v62 = vsel %vm973_vm4, %v3705_v44, %v970_v11 }
  0xa8   : > { %v546_v33 = vmul.f32 0.5, %v545_v51  ;;  %v380_v27 = vand.u32 2147483647, %v348_v55  ;;  %vm550_vm9 = vweird.f32 %v3892_v21  ;;  %v901_v0 = vrot.slane %v3959_v4, 1 }
  0xa9   : > { %v567_v22 = vsub.f32 1.5, %v566_v24  ;;  %v526_v60 = vmul.f32 0.5, %v525_v63  ;;  %v522_v24 = vsel %vm3931_vm0, %v3839_v3, %v518_v41  ;;  %v1109_v3 = vmul.f32 %v562_v8, %v3536_v16  ;;  %vm4004_vm11 = vmor %vm549_vm8, %vm550_vm9 }
  0xaa   : > { %v3935_v53 = vpop.eup %3295  ;;  %v537_v41 = vsub.f32 1.5, %v536_v50  ;;  %v547_v47 = vsub.f32 1.5, %v546_v33  ;;  %v925_v16 = vrot.slane %v3816_v42, 4  ;;  %v3994_v59 = vadd.f32 %v3525_v5, %v380_v27 }
  0xab   : > { %v568_v63 = vmul.f32 %v3885_v2, %v567_v22  ;;  %v527_v38 = vsub.f32 1.5, %v526_v60  ;;  %v584_v6 = vmul.f32 %v3935_v53, %v3897_v13  ;;  %v1105_v22 = vmul.f32 %v522_v24, %v3542_v18 }
  0xac   : > { %v3976_v50 = vpop.eup %3297  ;;  %v538_v44 = vmul.f32 %v3856_v26, %v537_v41  ;;  %v1141_v11 = vmul.f32 %v1109_v3, %v974_v62  ;;  %v501_v41 = vsel %vm416_vm2, %v3994_v59, 0.0  ;;  %vm589_vm12 = vweird.f32 %v3897_v13 }
  0xad   : > { %v572_v51 = vsel %vm3944_vm1, %v3885_v2, %v568_v63  ;;  %v528_v30 = vmul.f32 %v3292_v58, %v527_v38  ;;  %v585_v18 = vmul.f32 %v3935_v53, %v584_v6  ;;  %v1137_v24 = vmul.f32 %v1105_v22, %v3890_v57  ;;  %502 = vadd.xlane.f32.xlu1 %v501_v41  ;;  %v4044_v8 = vpop.xlane.xlu0 %445 }
  0xae   : > { %v1110_v15 = vmul.f32 %v572_v51, %v3553_v28  ;;  %v504_v28 = vsel %vm416_vm2, %v3964_v14, 0.0  ;;  %v548_v63 = vmul.f32 %v3892_v21, %v547_v47  ;;  %v1173_v38 = vpack.c.bf16 %v1141_v11, %v1141_v11 }
  0xaf   : > { %v532_v60 = vsel %vm531_vm6, %v3292_v58, %v528_v30  ;;  %v574_v58 = vmul.f32 %v3976_v50, %v3922_v10  ;;  %505 = vadd.xlane.f32.xlu2 %v504_v28  ;;  %v542_v51 = vsel %vm3989_vm10, %v3856_v26, %v538_v44  ;;  %vm590_vm14 = vweird.f32 %v3935_v53 }
  0xb0   : > { %v1106_v2 = vmul.f32 %v532_v60, %v3561_v32  ;;  %v907_v32 = vadd.f32 %v906_v29, %v905_v48  ;;  %v1142_v6 = vmul.f32 %v1110_v15, %v974_v62  ;;  %v586_v29 = vmul.f32 0.5, %v585_v18  ;;  %vm4060_vm4 = vmor %vm589_vm12, %vm590_vm14  ;;  %v350_v48 = vld [vmem:[%s3523_s18 + $0xf0] sm:$0xff] }
  0xb1   : > { %v575_v33 = vmul.f32 %v3976_v50, %v574_v58  ;;  %v1323_v30 = vunpack.c.l.b16 %v1173_v38  ;;  %v4015_v62 = vadd.f32 %v504_v28, %v501_v41  ;;  %v552_v27 = vsel %vm4004_vm11, %v3892_v21, %v548_v63  ;;  %v1208_v63 = vld [vmem:[%s3766_s21 + $0x38] sm:$0xff] }
  0xb2   : > { %v1138_v55 = vmul.f32 %v1106_v2, %v3890_v57  ;;  %v1174_v3 = vpack.c.bf16 %v1142_v6, %v1142_v6  ;;  %v1169_v57 = vpack.c.bf16 %v1137_v24, %v1137_v24  ;;  %v908_v47 = vrot.slane %v907_v32, 1 }
  0xb3   : > { %v576_v22 = vmul.f32 0.5, %v575_v33  ;;  %v926_v60 = vadd.f32 %v925_v16, %v3816_v42  ;;  %v1107_v26 = vmul.f32 %v542_v51, %v3539_v17  ;;  %v587_v18 = vsub.f32 1.5, %v586_v29  ;;  %v4032_v17 = vpop.xlane.xlu2 %442  ;;  %v351_v33 = vld [vmem:[%s3523_s18 + $0xf8] sm:$0xff]  ;;  %s2938_s18 = scalar_lea.sflag [#allocation3], %s290_s22 }
  0xb4   : > { %v1324_v15 = vunpack.c.l.b16 %v1174_v3  ;;  %v1170_v2 = vpack.c.bf16 %v1138_v55, %v1138_v55  ;;  %v1267_v44 = vunpack.c.l.b16 %v1169_v57  ;;  %v960_v28 = vmul.f32 %v3714_v34, %v959_v56 }
  0xb5   : > { %v1108_v11 = vmul.f32 %v552_v27, %v3558_v31  ;;  %v577_v42 = vsub.f32 1.5, %v576_v22  ;;  %vm962_vm15 = vweird.f32 %v3714_v34  ;;  %v4035_v21 = vmul.f32 0.5, %v3871_v39  ;;  %v1207_v39 = vld [vmem:[%s3766_s21 + $0x30] sm:$0xff] }
  0xb6   : > { %v4023_v52 = vpack.c.b16 %v1324_v15, %v1323_v30  ;;  %v1268_v58 = vunpack.c.l.b16 %v1170_v2  ;;  %v4037_v16 = vmul.f32 0.5, %v1017_v49  ;;  %v4040_v31 = vadd.f32 %v901_v0, %v3959_v4  ;;  %vm963_vm0 = vmor %vm961_vm13, %vm962_vm15 }
  0xb7   : > { %v1066_v6 = vmul.f32 %v3924_v23, %v3858_v9  ;;  %v588_v24 = vmul.f32 %v3935_v53, %v587_v18  ;;  %vm579_vm1 = vweird.f32 %v3922_v10  ;;  %vm580_vm3 = vweird.f32 %v3976_v50 }
  0xb8   : > { %3042 = vmatmul.msk.bf16.vlgmr.msra.gmra.mxu2 %vm416_vm2, %v4023_v52  ;;  %v4042_v40 = vpack.c.b16 %v1268_v58, %v1267_v44  ;;  %v4054_v4 = vadd.f32 %v908_v47, %v907_v32  ;;  %v927_v55 = vrot.slane %v926_v60, 2  ;;  %v964_v49 = vsel %vm963_vm0, %v3714_v34, %v960_v28  ;;  %vm4076_vm5 = vmor %vm579_vm1, %vm580_vm3 }
  0xb9   : > { %3299 = vrsqrt.f32 %v4032_v17  ;;  %v578_v32 = vmul.f32 %v3976_v50, %v577_v42  ;;  %v1139_v29 = vmul.f32 %v1107_v26, %v964_v49  ;;  %v1140_v3 = vmul.f32 %v1108_v11, %v964_v49 }
  0xba   : > { %3040 = vmatmul.msk.bf16.vlgmr.msra.gmra.mxu0 %vm416_vm2, %v4042_v40  ;;  %3301 = vrsqrt.f32 %v4044_v8  ;;  %v1239_v34 = vpack.c.bf16 %v1207_v39, %v1207_v39  ;;  %v1240_v41 = vpack.c.bf16 %v1208_v63, %v1208_v63  ;;  %v383_v51 = vand.u32 2147483647, %v351_v33 }
  0xbb   : > { %3303 = vrsqrt.f32 %v4040_v31  ;;  %v592_v30 = vsel %vm4060_vm4, %v3935_v53, %v588_v24  ;;  %v1171_v57 = vpack.c.bf16 %v1139_v29, %v1139_v29  ;;  %v1172_v56 = vpack.c.bf16 %v1140_v3, %v1140_v3  ;;  %v4114_v63 = vpop.xlane.xlu2 %451 }
  0xbc   : > { %v382_v0 = vand.u32 2147483647, %v350_v48  ;;  %v1356_v22 = vunpack.c.l.b16 %v1239_v34  ;;  %v1357_v15 = vunpack.c.l.b16 %v1240_v41  ;;  %v4084_v27 = vadd.f32 %v3530_v12, %v383_v51  ;;  %v1209_v41 = vld [vmem:[%s3766_s21 + $0x40] sm:$0xff] }
  0xbd   : > { %v979_v10 = vsub.f32 1.5, %v3850_v43  ;;  %vm991_vm6 = vweird.f32 %v3695_v61  ;;  %v582_v47 = vsel %vm4076_vm5, %v3976_v50, %v578_v32  ;;  %v1295_v2 = vunpack.c.l.b16 %v1171_v57 }
  0xbe   : > { %v1296_v26 = vunpack.c.l.b16 %v1172_v56  ;;  %v4092_v53 = vadd.f32 %v3525_v5, %v382_v0  ;;  %v928_v44 = vadd.f32 %v927_v55, %v926_v60  ;;  %v911_v58 = vrot.slane %v3876_v37, 4 }
  0xbf   : > { %v4094_v18 = vpop.eup %3299  ;;  %v1358_v12 = vpack.c.b16 %v1357_v15, %v1356_v22  ;;  %v510_v43 = vsel %vm416_vm2, %v4084_v27, 0.0  ;;  %v1067_v11 = vmul.f32 %v3924_v23, %v1066_v6  ;;  %3305 = vrsqrt.f32 %v4054_v4 }
  0xc0   : > { %v4099_v28 = vpop.eup %3301  ;;  %v4103_v50 = vpack.c.b16 %v1296_v26, %v1295_v2  ;;  %v594_v5 = vmul.f32 %v4094_v18, %v4032_v17  ;;  %511 = vadd.xlane.f32.xlu1 %v510_v43  ;;  %v1112_v60 = vmul.f32 %v592_v30, %v3566_v35  ;;  %v1111_v24 = vmul.f32 %v582_v47, %v3581_v45  ;;  %v1210_v47 = vld [vmem:[%s3766_s21 + $0x48] sm:$0xff]  ;;  %v4165_v2 = vpop.xlane.xlu0 %454 }
  0xc1   : > { %v4107_v42 = vpop.eup %3303  ;;  %v604_v39 = vmul.f32 %v4099_v28, %v4044_v8  ;;  %1370 = vmatpush.bf16.msra.mxu3 %v1358_v12  ;;  %v980_v6 = vmul.f32 %v3780_v36, %v979_v10  ;;  %v507_v38 = vsel %vm416_vm2, %v4092_v53, 0.0  ;;  %vm981_vm7 = vweird.f32 %v3716_v20  ;;  %v4130_v20 = vpop.xlane.xlu1 %448 }
  0xc2   : > { %3041 = vmatmul.msk.bf16.vlgmr.msra.gmra.mxu1 %vm416_vm2, %v4103_v50  ;;  %v595_v33 = vmul.f32 %v4094_v18, %v594_v5  ;;  %vm982_vm8 = vweird.f32 %v3780_v36  ;;  %v929_v35 = vrot.slane %v928_v44, 1  ;;  %v912_v45 = vadd.f32 %v911_v58, %v3876_v37  ;;  %508 = vadd.xlane.f32.xlu0 %v507_v38 }
  0xc3   : > { %v605_v55 = vmul.f32 %v4099_v28, %v604_v39  ;;  %v4125_v49 = vadd.f32 %v510_v43, %v507_v38  ;;  %vm599_vm9 = vweird.f32 %v4032_v17  ;;  %vm600_vm10 = vweird.f32 %v4094_v18  ;;  %vm983_vm11 = vmor %vm981_vm7, %vm982_vm8  ;;  %v5298_v38 = vld [vmem:[#allocation5_spill] sm:$0xff] }
  0xc4   : > { %v596_v48 = vmul.f32 0.5, %v595_v33  ;;  %3307 = vrsqrt.f32 %v4114_v63  ;;  %vm609_vm12 = vweird.f32 %v4044_v8  ;;  %vm610_vm13 = vweird.f32 %v4099_v28  ;;  %vm4147_vm0 = vmor %vm599_vm9, %vm600_vm10 }
  0xc5   : > { %v606_v32 = vmul.f32 0.5, %v605_v55  ;;  %v984_v37 = vsel %vm983_vm11, %v3780_v36, %v980_v6  ;;  %v4135_v29 = vpop.eup %3305  ;;  %vm992_vm14 = vweird.f32 %v3744_v54  ;;  %vm1001_vm15 = vweird.f32 %v3697_v1  ;;  %vm4160_vm1 = vmor %vm609_vm12, %vm610_vm13  ;;  %v5297_v6 = vld [vmem:[#allocation22_spill] sm:$0xff] }
  0xc6   : > { %v597_v3 = vsub.f32 1.5, %v596_v48  ;;  %v1143_v13 = vmul.f32 %v1111_v24, %v984_v37  ;;  %v1144_v34 = vmul.f32 %v1112_v60, %v984_v37  ;;  %v1029_v51 = vsub.f32 1.5, %v4035_v21  ;;  %vm993_vm3 = vmor %vm991_vm6, %vm992_vm14 }
  0xc7   : > { %v4141_v30 = vmul.f32 0.5, %v1067_v11  ;;  %v607_v57 = vsub.f32 1.5, %v606_v32  ;;  %3309 = vrsqrt.f32 %v4130_v20  ;;  %v5294_v56 = vsub.f32 1.5, %v3827_v19 }
  0xc8   : > { %v598_v22 = vmul.f32 %v4094_v18, %v597_v3  ;;  %v1175_v17 = vpack.c.bf16 %v1143_v13, %v1143_v13  ;;  %v1176_v10 = vpack.c.bf16 %v1144_v34, %v1144_v34  ;;  %v1019_v26 = vsub.f32 1.5, %v4037_v16  ;;  %v5299_v3 = vld [vmem:[#allocation21_spill] sm:$0xff]  ;;  %v5327_v16 = vld [vmem:[#allocation10_spill] sm:$0xff] }
  0xc9   : > { %v990_v0 = vmul.f32 %v3744_v54, %v5294_v56  ;;  %v4168_v19 = vadd.f32 %v929_v35, %v928_v44  ;;  %v608_v8 = vmul.f32 %v4099_v28, %v607_v57  ;;  %v1241_v58 = vpack.c.bf16 %v1209_v41, %v1209_v41  ;;  %v4204_v32 = vpop.xlane.xlu1 %457 }
  0xca   : > { %v4175_v12 = vpop.eup %3307  ;;  %vm1011_vm4 = vweird.f32 %v3702_v7  ;;  %v913_v43 = vrot.slane %v912_v45, 2  ;;  %v602_v11 = vsel %vm4147_vm0, %v4094_v18, %v598_v22  ;;  %v1351_v5 = vunpack.c.l.b16 %v1175_v17 }
  0xcb   : > { %v1352_v44 = vunpack.c.l.b16 %v1176_v10  ;;  %v1069_v60 = vsub.f32 1.5, %v4141_v30  ;;  %v1113_v24 = vmul.f32 %v602_v11, %v3584_v46  ;;  %v612_v61 = vsel %vm4160_vm1, %v4099_v28, %v608_v8  ;;  %v4223_v10 = vpop.xlane.xlu2 %466  ;;  %v4235_v11 = vpop.xlane.xlu0 %469 }
  0xcc   : > { %v1242_v39 = vpack.c.bf16 %v1210_v47, %v1210_v47  ;;  %vm1031_vm5 = vweird.f32 %v5297_v6  ;;  %v994_v33 = vsel %vm993_vm3, %v3744_v54, %v990_v0  ;;  %v1114_v35 = vmul.f32 %v612_v61, %v5298_v38  ;;  %v5300_v0 = vld [vmem:[#allocation29_spill] sm:$0xff] }
  0xcd   : > { %v4189_v55 = vpack.c.b16 %v1352_v44, %v1351_v5  ;;  %v624_v18 = vmul.f32 %v4175_v12, %v4114_v63  ;;  %v4193_v48 = vpop.eup %3309  ;;  %v4197_v46 = vmul.f32 %v4107_v42, %v4040_v31  ;;  %v4201_v28 = vmul.f32 %v4135_v29, %v4054_v4 }
  0xce   : > { %3311 = vrsqrt.f32 %v4168_v19  ;;  %v1384_v54 = vunpack.c.l.b16 %v1241_v58  ;;  %v4206_v37 = vadd.f32 %v913_v43, %v912_v45  ;;  %vm1002_vm6 = vweird.f32 %v5299_v3  ;;  %v5304_v43 = vld [vmem:[#allocation23_spill] sm:$0xff] }
  0xcf   : > { %3043 = vmatmul.msk.bf16.vlgmr.msra.gmra.mxu3 %vm416_vm2, %v4189_v55  ;;  %v625_v13 = vmul.f32 %v4175_v12, %v624_v18  ;;  %v614_v34 = vmul.f32 %v4193_v48, %v4130_v20  ;;  %v1145_v41 = vmul.f32 %v1113_v24, %v994_v33  ;;  %v1146_v36 = vmul.f32 %v1114_v35, %v994_v33  ;;  %vm4229_vm11 = vmor %vm1001_vm15, %vm1002_vm6  ;;  %v5307_v24 = vld [vmem:[#allocation30_spill] sm:$0xff]  ;;  %v1211_v35 = vld [vmem:[%s3766_s21 + $0x50] sm:$0xff] }
  0xd0   : > { %vm629_vm7 = vweird.f32 %v4114_v63  ;;  %v1385_v57 = vunpack.c.l.b16 %v1242_v39  ;;  %vm630_vm8 = vweird.f32 %v4175_v12  ;;  %3313 = vrsqrt.f32 %v4204_v32 }
  0xd1   : > { %v626_v56 = vmul.f32 0.5, %v625_v13  ;;  %v615_v45 = vmul.f32 %v4193_v48, %v614_v34  ;;  %v5301_v22 = vsub.f32 1.5, %v5300_v0  ;;  %vm619_vm9 = vweird.f32 %v4130_v20  ;;  %vm4244_vm13 = vmor %vm629_vm7, %vm630_vm8  ;;  %v5311_v13 = vld [vmem:[#allocation28_spill] sm:$0xff] }
  0xd2   : > { %vm620_vm10 = vweird.f32 %v4193_v48  ;;  %v1386_v17 = vpack.c.b16 %v1385_v57, %v1384_v54  ;;  %vm1012_vm12 = vweird.f32 %v5304_v43  ;;  %3315 = vrsqrt.f32 %v4165_v2  ;;  %v1212_v57 = vld [vmem:[%s3766_s21 + $0x58] sm:$0xff] }
  0xd3   : > { %v1000_v15 = vmul.f32 %v5299_v3, %v5301_v22  ;;  %v627_v8 = vsub.f32 1.5, %v626_v56  ;;  %v616_v58 = vmul.f32 0.5, %v615_v45  ;;  %v915_v44 = vrot.slane %v4206_v37, 1  ;;  %vm4257_vm14 = vmor %vm619_vm9, %vm620_vm10  ;;  %v4323_v63 = vpop.xlane.xlu2 %463 }
  0xd4   : > { %v4237_v5 = vpop.eup %3311  ;;  %1398 = vmatpush.bf16.msrb.mxu0 %v1386_v17  ;;  %v5308_v61 = vsub.f32 1.5, %v5307_v24  ;;  %v1177_v33 = vpack.c.bf16 %v1145_v41, %v1145_v41  ;;  %v1178_v38 = vpack.c.bf16 %v1146_v36, %v1146_v36  ;;  %vm1032_vm15 = vweird.f32 %v5311_v13  ;;  %vm4268_vm0 = vmor %vm1011_vm4, %vm1012_vm12 }
  0xd5   : > { %v628_v18 = vmul.f32 %v4175_v12, %v627_v8  ;;  %v617_v54 = vsub.f32 1.5, %v616_v58  ;;  %3317 = vrsqrt.f32 %v4223_v10  ;;  %v932_v34 = vrot.slane %v4015_v62, 4  ;;  %vm1033_vm3 = vmor %vm1031_vm5, %vm1032_vm15 }
  0xd6   : > { %v1010_v39 = vmul.f32 %v5304_v43, %v5308_v61  ;;  %v1379_v36 = vunpack.c.l.b16 %v1177_v33  ;;  %v1380_v20 = vunpack.c.l.b16 %v1178_v38  ;;  %3319 = vrsqrt.f32 %v4235_v11  ;;  %v4274_v56 = vpop.eup %3313  ;;  %v5315_v61 = vld [vmem:[#allocation6_spill] sm:$0xff] }
  0xd7   : > { %v1004_v45 = vsel %vm4229_vm11, %v5299_v3, %v1000_v15  ;;  %v618_v0 = vmul.f32 %v4193_v48, %v617_v54  ;;  %v1030_v7 = vmul.f32 %v5311_v13, %v1029_v51  ;;  %v1243_v22 = vpack.c.bf16 %v1211_v35, %v1211_v35  ;;  %v5314_v15 = vld [vmem:[#allocation7_spill] sm:$0xff] }
  0xd8   : > { %v632_v17 = vsel %vm4244_vm13, %v4175_v12, %v628_v18  ;;  %v644_v8 = vmul.f32 %v4274_v56, %v4204_v32  ;;  %vm649_vm1 = vweird.f32 %v4204_v32  ;;  %v4289_v58 = vpack.c.b16 %v1380_v20, %v1379_v36  ;;  %v4295_v21 = vpop.eup %3315  ;;  %v1213_v32 = vld [vmem:[%s3766_s21 + $0x60] sm:$0xff] }
  0xd9   : > { %v622_v51 = vsel %vm4257_vm14, %v4193_v48, %v618_v0  ;;  %v4303_v12 = vsel %vm4268_vm0, %v5304_v43, %v1010_v39  ;;  %vm639_vm4 = vweird.f32 %v4165_v2  ;;  %v1244_v3 = vpack.c.bf16 %v1212_v57, %v1212_v57 }
  0xda   : > { %v1115_v47 = vmul.f32 %v622_v51, %v5314_v15  ;;  %v645_v1 = vmul.f32 %v4274_v56, %v644_v8  ;;  %v634_v6 = vmul.f32 %v4295_v21, %v4165_v2  ;;  %3044 = vmatmul.msk.bf16.vlgmr.msrb.gmra.mxu0 %vm416_vm2, %v4289_v58  ;;  %v1412_v24 = vunpack.c.l.b16 %v1243_v22  ;;  %v5321_v2 = vld [vmem:[#allocation8_spill] sm:$0xff] }
  0xdb   : > { %v4312_v48 = vpop.eup %3317  ;;  %v1116_v33 = vmul.f32 %v632_v17, %v5315_v61  ;;  %v4316_v43 = vsel %vm1033_vm3, %v5311_v13, %v1030_v7  ;;  %vm679_vm5 = vweird.f32 %v4223_v10  ;;  %v1413_v39 = vunpack.c.l.b16 %v1244_v3  ;;  %v4329_v7 = vpop.xlane.xlu1 %460  ;;  %v5318_v3 = vld [vmem:[#allocation27_spill] sm:$0xff] }
  0xdc   : > { %v3320_v38 = vpop.eup %3319  ;;  %v646_v35 = vmul.f32 0.5, %v645_v1  ;;  %vm650_vm6 = vweird.f32 %v4274_v56  ;;  %v635_v18 = vmul.f32 %v4295_v21, %v634_v6  ;;  %v674_v54 = vmul.f32 %v4312_v48, %v4223_v10  ;;  %v1214_v1 = vld [vmem:[%s3766_s21 + $0x68] sm:$0xff] }
  0xdd   : > { %v1147_v41 = vmul.f32 %v1115_v47, %v1004_v45  ;;  %vm640_vm7 = vweird.f32 %v4295_v21  ;;  %v684_v13 = vmul.f32 %v3320_v38, %v4235_v11  ;;  %vm689_vm8 = vweird.f32 %v4235_v11  ;;  %vm4333_vm9 = vmor %vm649_vm1, %vm650_vm6 }
  0xde   : > { %v647_v36 = vsub.f32 1.5, %v646_v35  ;;  %v636_v20 = vmul.f32 0.5, %v635_v18  ;;  %v675_v57 = vmul.f32 %v4312_v48, %v674_v54  ;;  %v1414_v0 = vpack.c.b16 %v1413_v39, %v1412_v24  ;;  %vm4351_vm12 = vmor %vm639_vm4, %vm640_vm7 }
  0xdf   : > { %v1148_v22 = vmul.f32 %v1116_v33, %v1004_v45  ;;  %v685_v8 = vmul.f32 %v3320_v38, %v684_v13  ;;  %v4340_v51 = vmul.f32 %v3848_v25, %v1019_v26  ;;  %3321 = vrsqrt.f32 %v4323_v63 }
  0xe0   : > { %vm1021_vm10 = vweird.f32 %v5318_v3  ;;  %v648_v15 = vmul.f32 %v4274_v56, %v647_v36  ;;  %v637_v45 = vsub.f32 1.5, %v636_v20  ;;  %v676_v47 = vmul.f32 0.5, %v675_v57  ;;  %1426 = vmatpush.bf16.msrb.mxu1 %v1414_v0 }
  0xe1   : > { %vm680_vm11 = vweird.f32 %v4312_v48  ;;  %v686_v26 = vmul.f32 0.5, %v685_v8  ;;  %vm690_vm13 = vweird.f32 %v3320_v38  ;;  %vm1022_vm14 = vweird.f32 %v3848_v25 }
  0xe2   : > { %3323 = vrsqrt.f32 %v4329_v7  ;;  %v652_v6 = vsel %vm4333_vm9, %v4274_v56, %v648_v15  ;;  %v638_v24 = vmul.f32 %v4295_v21, %v637_v45  ;;  %v677_v61 = vsub.f32 1.5, %v676_v47  ;;  %vm4365_vm15 = vmor %vm679_vm5, %vm680_vm11 }
  0xe3   : > { %v1179_v33 = vpack.c.bf16 %v1147_v41, %v1147_v41  ;;  %v1118_v39 = vmul.f32 %v652_v6, %v5321_v2  ;;  %v687_v18 = vsub.f32 1.5, %v686_v26  ;;  %v1180_v54 = vpack.c.bf16 %v1148_v22, %v1148_v22  ;;  %vm4376_vm0 = vmor %vm689_vm8, %vm690_vm13  ;;  %v5326_v22 = vld [vmem:[#allocation9_spill] sm:$0xff] }
  0xe4   : > { %v1245_v13 = vpack.c.bf16 %v1213_v32, %v1213_v32  ;;  %v642_v36 = vsel %vm4351_vm12, %v4295_v21, %v638_v24  ;;  %v678_v56 = vmul.f32 %v4312_v48, %v677_v61  ;;  %v1246_v20 = vpack.c.bf16 %v1214_v1, %v1214_v1  ;;  %v5328_v24 = vld [vmem:[#allocation11_spill] sm:$0xff]  ;;  %vm4417_vm5 = vmor %vm1021_vm10, %vm1022_vm14  ;;  %v5336_v41 = vld [vmem:[#allocation13_spill] sm:$0xff] }
  0xe5   : > { %v1407_v10 = vunpack.c.l.b16 %v1179_v33  ;;  %v4380_v57 = vpop.eup %3321  ;;  %v1150_v0 = vmul.f32 %v1118_v39, %v4303_v12  ;;  %v1117_v17 = vmul.f32 %v642_v36, %v5326_v22  ;;  %v688_v8 = vmul.f32 %v3320_v38, %v687_v18  ;;  %v4411_v36 = vpop.xlane.xlu1 %493 }
  0xe6   : > { %v1408_v15 = vunpack.c.l.b16 %v1180_v54  ;;  %v682_v21 = vsel %vm4365_vm15, %v4312_v48, %v678_v56  ;;  %v664_v11 = vmul.f32 %v4380_v57, %v4323_v63  ;;  %vm669_vm1 = vweird.f32 %v4323_v63 }
  0xe7   : > { %v1440_v45 = vunpack.c.l.b16 %v1245_v13  ;;  %v1149_v32 = vmul.f32 %v1117_v17, %v4303_v12  ;;  %v1121_v26 = vmul.f32 %v682_v21, %v5327_v16  ;;  %v692_v1 = vsel %vm4376_vm0, %v3320_v38, %v688_v8  ;;  %v4406_v38 = vpop.xlane.xlu0 %490  ;;  %v1217_v8 = vld [vmem:[%s3766_s21 + $0x80] sm:$0xff]  ;;  %v1216_v16 = vld [vmem:[%s3766_s21 + $0x78] sm:$0xff] }
  0xe8   : > { %v4390_v47 = vpop.eup %3323  ;;  %v4396_v6 = vpack.c.b16 %v1408_v15, %v1407_v10  ;;  %v1122_v61 = vmul.f32 %v692_v1, %v5328_v24  ;;  %v665_v48 = vmul.f32 %v4380_v57, %v664_v11  ;;  %vm659_vm3 = vweird.f32 %v4329_v7  ;;  %v1218_v15 = vld [vmem:[%s3766_s21 + $0x88] sm:$0xff] }
  0xe9   : > { %v654_v33 = vmul.f32 %v4390_v47, %v4329_v7  ;;  %v1153_v2 = vmul.f32 %v1121_v26, %v4316_v43  ;;  %v1441_v12 = vunpack.c.l.b16 %v1246_v20  ;;  %v1181_v39 = vpack.c.bf16 %v1149_v32, %v1149_v32  ;;  %v5335_v7 = vld [vmem:[#allocation12_spill] sm:$0xff] }
  0xea   : > { %3045 = vmatmul.msk.bf16.vlgmr.msrb.gmra.mxu1 %vm416_vm2, %v4396_v6  ;;  %v1182_v35 = vpack.c.bf16 %v1150_v0, %v1150_v0  ;;  %v1154_v18 = vmul.f32 %v1122_v61, %v4316_v43  ;;  %v666_v54 = vmul.f32 0.5, %v665_v48  ;;  %vm670_vm4 = vweird.f32 %v4380_v57 }
  0xeb   : > { %v655_v13 = vmul.f32 %v4390_v47, %v654_v33  ;;  %v1185_v56 = vpack.c.bf16 %v1153_v2, %v1153_v2  ;;  %v1442_v10 = vpack.c.b16 %v1441_v12, %v1440_v45  ;;  %v1435_v20 = vunpack.c.l.b16 %v1181_v39  ;;  %vm4437_vm7 = vmor %vm669_vm1, %vm670_vm4  ;;  %v4473_v39 = vpop.xlane.xlu2 %472 }
  0xec   : > { %v1436_v43 = vunpack.c.l.b16 %v1182_v35  ;;  %v1186_v0 = vpack.c.bf16 %v1154_v18, %v1154_v18  ;;  %v667_v22 = vsub.f32 1.5, %v666_v54  ;;  %vm660_vm6 = vweird.f32 %v4390_v47 }
  0xed   : > { %v656_v17 = vmul.f32 0.5, %v655_v13  ;;  %v4426_v21 = vmul.f32 %v4107_v42, %v4197_v46  ;;  %v4431_v3 = vadd.f32 %v915_v44, %v4206_v37  ;;  %1454 = vmatpush.bf16.msrb.mxu2 %v1442_v10  ;;  %3325 = vrsqrt.f32 %v4411_v36  ;;  %v1215_v46 = vld [vmem:[%s3766_s21 + $0x70] sm:$0xff]  ;;  %vm4461_vm9 = vmor %vm659_vm3, %vm660_vm6 }
  0xee   : > { %v4441_v45 = vpack.c.b16 %v1436_v43, %v1435_v20  ;;  %v4448_v32 = vadd.f32 %v932_v34, %v4015_v62  ;;  %v1024_v37 = vsel %vm4417_vm5, %v3848_v25, %v4340_v51  ;;  %v668_v44 = vmul.f32 %v4380_v57, %v667_v22 }
  0xef   : > { %v657_v63 = vsub.f32 1.5, %v656_v17  ;;  %vm1071_vm8 = vweird.f32 %v3858_v9  ;;  %v1491_v26 = vunpack.c.l.b16 %v1185_v56  ;;  %3327 = vrsqrt.f32 %v4406_v38  ;;  %v4475_v35 = vpop.xlane.xlu0 %475  ;;  %v1225_v17 = vld [vmem:[%s3766_s21 + $0xc0] sm:$0xff] }
  0xf0   : > { %v1249_v62 = vpack.c.bf16 %v1217_v8, %v1217_v8  ;;  %v1250_v34 = vpack.c.bf16 %v1218_v15, %v1218_v15  ;;  %v1492_v25 = vunpack.c.l.b16 %v1186_v0  ;;  %v672_v51 = vsel %vm4437_vm7, %v4380_v57, %v668_v44  ;;  %3046 = vmatmul.msk.bf16.vlgmr.msrb.gmra.mxu2 %vm416_vm2, %v4441_v45  ;;  %v1226_v44 = vld [vmem:[%s3766_s21 + $0xc8] sm:$0xff] }
  0xf1   : > { %v658_v24 = vmul.f32 %v4390_v47, %v657_v63  ;;  %v1247_v61 = vpack.c.bf16 %v1215_v46, %v1215_v46  ;;  %v1120_v48 = vmul.f32 %v672_v51, %v5335_v7  ;;  %v1248_v12 = vpack.c.bf16 %v1216_v16, %v1216_v16 }
  0xf2   : > { %v1496_v33 = vunpack.c.l.b16 %v1249_v62  ;;  %v1497_v2 = vunpack.c.l.b16 %v1250_v34  ;;  %v1047_v18 = vmul.f32 %v4135_v29, %v4201_v28  ;;  %3329 = vrsqrt.f32 %v4431_v3 }
  0xf3   : > { %v662_v57 = vsel %vm4461_vm9, %v4390_v47, %v658_v24  ;;  %v1468_v54 = vunpack.c.l.b16 %v1247_v61  ;;  %v4483_v13 = vpop.eup %3325  ;;  %v1152_v56 = vmul.f32 %v1120_v48, %v1024_v37  ;;  %v1469_v43 = vunpack.c.l.b16 %v1248_v12  ;;  %v4513_v24 = vpop.xlane.xlu2 %481 }
  0xf4   : > { %v1119_v10 = vmul.f32 %v662_v57, %v5336_v41  ;;  %v1498_v20 = vpack.c.b16 %v1497_v2, %v1496_v33  ;;  %v934_v0 = vrot.slane %v4448_v32, 2  ;;  %v764_v28 = vmul.f32 %v4483_v13, %v4411_v36 }
  0xf5   : > { %v4489_v22 = vpack.c.b16 %v1492_v25, %v1491_v26  ;;  %3331 = vrsqrt.f32 %v4473_v39  ;;  %v4493_v47 = vpop.eup %3327  ;;  %v1070_v15 = vmul.f32 %v3924_v23, %v1069_v60  ;;  %v1470_v11 = vpack.c.b16 %v1469_v43, %v1468_v54 }
  0xf6   : > { %v1151_v8 = vmul.f32 %v1119_v10, %v1024_v37  ;;  %1510 = vmatpush.bf16.msra.mxu0 %v1498_v20  ;;  %v1184_v46 = vpack.c.bf16 %v1152_v56, %v1152_v56  ;;  %vm1072_vm10 = vweird.f32 %v3924_v23  ;;  %v765_v63 = vmul.f32 %v4483_v13, %v764_v28 }
  0xf7   : > { %v754_v16 = vmul.f32 %v4493_v47, %v4406_v38  ;;  %3333 = vrsqrt.f32 %v4475_v35  ;;  %vm769_vm11 = vweird.f32 %v4411_v36  ;;  %1482 = vmatpush.bf16.msrb.mxu3 %v1470_v11  ;;  %v1257_v26 = vpack.c.bf16 %v1225_v17, %v1225_v17  ;;  %v4515_v61 = vpop.xlane.xlu0 %484  ;;  %vm4523_vm15 = vmor %vm1071_vm8, %vm1072_vm10  ;;  %v4548_v36 = vpop.xlane.xlu1 %478 }
  0xf8   : > { %v1183_v37 = vpack.c.bf16 %v1151_v8, %v1151_v8  ;;  %v1464_v30 = vunpack.c.l.b16 %v1184_v46  ;;  %v4505_v60 = vpop.eup %3329  ;;  %v766_v1 = vmul.f32 0.5, %v765_v63  ;;  %vm770_vm12 = vweird.f32 %v4483_v13 }
  0xf9   : > { %v755_v62 = vmul.f32 %v4493_v47, %v754_v16  ;;  %3048 = vmatmul.msk.bf16.vlgmr.msra.gmra.mxu0 %vm416_vm2, %v4489_v22  ;;  %v1258_v34 = vpack.c.bf16 %v1226_v44, %v1226_v44  ;;  %vm759_vm13 = vweird.f32 %v4406_v38  ;;  %vm760_vm14 = vweird.f32 %v4493_v47  ;;  %vm4535_vm0 = vmor %vm769_vm11, %vm770_vm12  ;;  %v5343_v44 = vld [vmem:[#allocation14_spill] sm:$0xff] }
  0xfa   : > { %v1463_v25 = vunpack.c.l.b16 %v1183_v37  ;;  %v1608_v51 = vunpack.c.l.b16 %v1257_v26  ;;  %v767_v33 = vsub.f32 1.5, %v766_v1  ;;  %3335 = vrsqrt.f32 %v4513_v24  ;;  %vm4558_vm3 = vmor %vm759_vm13, %vm760_vm14 }
  0xfb   : > { %v4517_v7 = vpop.eup %3331  ;;  %v756_v2 = vmul.f32 0.5, %v755_v62  ;;  %v1609_v12 = vunpack.c.l.b16 %v1258_v34  ;;  %v1038_v57 = vmul.f32 0.5, %v4426_v21  ;;  %v1076_v54 = vmul.f32 %v4237_v5, %v4168_v19  ;;  %v5344_v62 = vld [vmem:[#allocation15_spill] sm:$0xff]  ;;  %v4585_v48 = vpop.xlane.xlu2 %496 }
  0xfc   : > { %v4539_v56 = vpack.c.b16 %v1464_v30, %v1463_v25  ;;  %v694_v41 = vmul.f32 %v4517_v7, %v4473_v39  ;;  %vm1041_vm1 = vweird.f32 %v4040_v31  ;;  %v935_v21 = vadd.f32 %v934_v0, %v4448_v32 }
  0xfd   : > { %v4543_v10 = vpop.eup %3333  ;;  %v768_v20 = vmul.f32 %v4483_v13, %v767_v33  ;;  %v757_v43 = vsub.f32 1.5, %v756_v2  ;;  %v1610_v28 = vpack.c.b16 %v1609_v12, %v1608_v51  ;;  %v4550_v17 = vmul.f32 0.5, %v1047_v18 }
  0xfe   : > { %v1056_v8 = vmul.f32 %v4505_v60, %v4431_v3  ;;  %3047 = vmatmul.msk.bf16.vlgmr.msrb.gmra.mxu3 %vm416_vm2, %v4539_v56  ;;  %v695_v32 = vmul.f32 %v4517_v7, %v694_v41  ;;  %v704_v18 = vmul.f32 %v4543_v10, %v4475_v35  ;;  %v1074_v0 = vsel %vm4523_vm15, %v3924_v23, %v1070_v15 }
  0xff   : > { %v772_v38 = vsel %vm4535_vm0, %v4483_v13, %v768_v20  ;;  %v758_v46 = vmul.f32 %v4493_v47, %v757_v43  ;;  %1622 = vmatpush.bf16.msrb.mxu0 %v1610_v28  ;;  %3337 = vrsqrt.f32 %v4515_v61  ;;  %v1039_v26 = vsub.f32 1.5, %v1038_v57  ;;  %v4587_v33 = vpop.xlane.xlu0 %499 }
 0x100   : > { %v1130_v63 = vmul.f32 %v772_v38, %v5343_v44  ;;  %v696_v16 = vmul.f32 0.5, %v695_v32  ;;  %v705_v37 = vmul.f32 %v4543_v10, %v704_v18  ;;  %3339 = vrsqrt.f32 %v4548_v36  ;;  %v4578_v30 = vpop.eup %3335 }
 0x101   : > { %v1077_v23 = vmul.f32 %v4237_v5, %v1076_v54  ;;  %v936_v15 = vrot.slane %v935_v21, 1  ;;  %v762_v13 = vsel %vm4558_vm3, %v4493_v47, %v758_v46  ;;  %vm699_vm4 = vweird.f32 %v4473_v39 }
 0x102   : > { %v1162_v1 = vmul.f32 %v1130_v63, %v1074_v0  ;;  %v1129_v34 = vmul.f32 %v762_v13, %v5344_v62  ;;  %v697_v25 = vsub.f32 1.5, %v696_v16  ;;  %v706_v51 = vmul.f32 0.5, %v705_v37 }
 0x103   : > { %vm700_vm5 = vweird.f32 %v4517_v7  ;;  %v724_v2 = vmul.f32 %v4578_v30, %v4513_v24  ;;  %3341 = vrsqrt.f32 %v4585_v48  ;;  %v1057_v47 = vmul.f32 %v4505_v60, %v1056_v8 }
 0x104   : > { %v1194_v12 = vpack.c.bf16 %v1162_v1, %v1162_v1  ;;  %v1161_v57 = vmul.f32 %v1129_v34, %v1074_v0  ;;  %v707_v54 = vsub.f32 1.5, %v706_v51  ;;  %vm1051_vm6 = vweird.f32 %v4054_v4  ;;  %vm4608_vm8 = vmor %vm699_vm4, %vm700_vm5 }
 0x105   : > { %v4595_v9 = vpop.eup %3337  ;;  %vm1042_vm7 = vweird.f32 %v4107_v42  ;;  %v698_v41 = vmul.f32 %v4517_v7, %v697_v25  ;;  %v725_v20 = vmul.f32 %v4578_v30, %v724_v2  ;;  %3343 = vrsqrt.f32 %v4587_v33  ;;  %v5349_v2 = vld [vmem:[#allocation16_spill] sm:$0xff] }
 0x106   : > { %v4602_v43 = vpop.eup %3339  ;;  %v1604_v28 = vunpack.c.l.b16 %v1194_v12  ;;  %v1193_v11 = vpack.c.bf16 %v1161_v57, %v1161_v57  ;;  %vm709_vm9 = vweird.f32 %v4475_v35  ;;  %vm710_vm10 = vweird.f32 %v4543_v10  ;;  %vm1043_vm11 = vmor %vm1041_vm1, %vm1042_vm7 }
 0x107   : > { %v1049_v32 = vsub.f32 1.5, %v4550_v17  ;;  %v939_v18 = vrot.slane %v4125_v49, 4  ;;  %v1040_v0 = vmul.f32 %v4107_v42, %v1039_v26  ;;  %v726_v38 = vmul.f32 0.5, %v725_v20  ;;  %vm4637_vm12 = vmor %vm709_vm9, %vm710_vm10 }
 0x108   : > { %v4617_v46 = vmul.f32 0.5, %v1077_v23  ;;  %v1603_v44 = vunpack.c.l.b16 %v1193_v11  ;;  %v708_v39 = vmul.f32 %v4543_v10, %v707_v54  ;;  %v714_v63 = vmul.f32 %v4602_v43, %v4548_v36  ;;  %v4671_v54 = vpop.xlane.xlu1 %487 }
 0x109   : > { %v4626_v16 = vpop.eup %3341  ;;  %v4628_v17 = vmul.f32 0.5, %v1057_v47  ;;  %v4630_v37 = vadd.f32 %v936_v15, %v935_v21  ;;  %v702_v26 = vsel %vm4608_vm8, %v4517_v7, %v698_v41  ;;  %v734_v23 = vmul.f32 %v4595_v9, %v4515_v61  ;;  %v5350_v41 = vld [vmem:[#allocation17_spill] sm:$0xff] }
 0x10a   : > { %v727_v13 = vsub.f32 1.5, %v726_v38  ;;  %v4643_v1 = vpack.c.b16 %v1604_v28, %v1603_v44  ;;  %v715_v62 = vmul.f32 %v4602_v43, %v714_v63  ;;  %v774_v21 = vmul.f32 %v4626_v16, %v4585_v48 }
 0x10b   : > { %v4648_v15 = vpop.eup %3343  ;;  %v4651_v7 = vadd.f32 %v939_v18, %v4125_v49  ;;  %v1044_v35 = vsel %vm1043_vm11, %v4107_v42, %v1040_v0  ;;  %vm729_vm13 = vweird.f32 %v4513_v24  ;;  %vm730_vm14 = vweird.f32 %v4578_v30 }
 0x10c   : > { %v712_v34 = vsel %vm4637_vm12, %v4543_v10, %v708_v39  ;;  %3052 = vmatmul.msk.bf16.vlgmr.msrb.gmra.mxu0 %vm416_vm2, %v4643_v1  ;;  %v716_v25 = vmul.f32 0.5, %v715_v62  ;;  %v775_v51 = vmul.f32 %v4626_v16, %v774_v21  ;;  %v784_v49 = vmul.f32 %v4648_v15, %v4587_v33  ;;  %vm4679_vm3 = vmor %vm729_vm13, %vm730_vm14 }
 0x10d   : > { %v1123_v47 = vmul.f32 %v702_v26, %v5349_v2  ;;  %vm1052_vm15 = vweird.f32 %v4135_v29  ;;  %v735_v42 = vmul.f32 %v4595_v9, %v734_v23  ;;  %vm719_vm0 = vweird.f32 %v4548_v36  ;;  %v1220_v2 = vld [vmem:[%s3766_s21 + $0x98] sm:$0xff] }
 0x10e   : > { %v728_v12 = vmul.f32 %v4578_v30, %v727_v13  ;;  %v717_v10 = vsub.f32 1.5, %v716_v25  ;;  %vm720_vm1 = vweird.f32 %v4602_v43  ;;  %v785_v57 = vmul.f32 %v4648_v15, %v784_v49  ;;  %vm1053_vm4 = vmor %vm1051_vm6, %vm1052_vm15  ;;  %v5355_v13 = vld [vmem:[#allocation18_spill] sm:$0xff]  ;;  %v1219_v49 = vld [vmem:[%s3766_s21 + $0x90] sm:$0xff] }
 0x10f   : > { %v1124_v20 = vmul.f32 %v712_v34, %v5350_v41  ;;  %v1050_v28 = vmul.f32 %v4135_v29, %v1049_v32  ;;  %v776_v8 = vmul.f32 0.5, %v775_v51  ;;  %3345 = vrsqrt.f32 %v4671_v54  ;;  %vm4693_vm7 = vmor %vm719_vm0, %vm720_vm1  ;;  %v5356_v34 = vld [vmem:[#allocation20_spill] sm:$0xff] }
 0x110   : > { %v718_v18 = vmul.f32 %v4602_v43, %v717_v10  ;;  %v786_v0 = vmul.f32 0.5, %v785_v57  ;;  %v1079_v38 = vsub.f32 1.5, %v4617_v46  ;;  %vm1081_vm5 = vweird.f32 %v4168_v19 }
 0x111   : > { %v1155_v32 = vmul.f32 %v1123_v47, %v1044_v35  ;;  %v736_v44 = vmul.f32 0.5, %v735_v42  ;;  %v1059_v4 = vsub.f32 1.5, %v4628_v17  ;;  %3347 = vrsqrt.f32 %v4630_v37 }
 0x112   : > { %v941_v39 = vrot.slane %v4651_v7, 2  ;;  %v732_v46 = vsel %vm4679_vm3, %v4578_v30, %v728_v12  ;;  %vm1061_vm6 = vweird.f32 %v4431_v3  ;;  %v1156_v63 = vmul.f32 %v1124_v20, %v1044_v35 }
 0x113   : > { %v1054_v26 = vsel %vm1053_vm4, %v4135_v29, %v1050_v28  ;;  %vm1062_vm8 = vweird.f32 %v4505_v60  ;;  %v777_v36 = vsub.f32 1.5, %v776_v8  ;;  %vm739_vm9 = vweird.f32 %v4515_v61 }
 0x114   : > { %v722_v17 = vsel %vm4693_vm7, %v4602_v43, %v718_v18  ;;  %vm779_vm10 = vweird.f32 %v4585_v48  ;;  %v787_v31 = vsub.f32 1.5, %v786_v0  ;;  %v1187_v23 = vpack.c.bf16 %v1155_v32, %v1155_v32 }
 0x115   : > { %v4711_v30 = vpop.eup %3345  ;;  %v1126_v62 = vmul.f32 %v732_v46, %v5355_v13  ;;  %v737_v29 = vsub.f32 1.5, %v736_v44  ;;  %vm780_vm11 = vweird.f32 %v4626_v16  ;;  %v1080_v21 = vmul.f32 %v4237_v5, %v1079_v38 }
 0x116   : > { %vm789_vm12 = vweird.f32 %v4587_v33  ;;  %vm790_vm13 = vweird.f32 %v4648_v15  ;;  %v744_v43 = vmul.f32 %v4711_v30, %v4671_v54  ;;  %v1188_v35 = vpack.c.bf16 %v1156_v63, %v1156_v63  ;;  %vm4730_vm0 = vmor %vm779_vm10, %vm780_vm11 }
 0x117   : > { %v1125_v25 = vmul.f32 %v722_v17, %v5356_v34  ;;  %vm1082_vm14 = vweird.f32 %v4237_v5  ;;  %v778_v51 = vmul.f32 %v4626_v16, %v777_v36  ;;  %v4725_v47 = vpop.eup %3347  ;;  %vm740_vm15 = vweird.f32 %v4595_v9  ;;  %vm4741_vm1 = vmor %vm789_vm12, %vm790_vm13  ;;  %v1221_v34 = vld [vmem:[%s3766_s21 + $0xa0] sm:$0xff] }
 0x118   : > { %v788_v12 = vmul.f32 %v4648_v15, %v787_v31  ;;  %v745_v10 = vmul.f32 %v4711_v30, %v744_v43  ;;  %v1251_v57 = vpack.c.bf16 %v1219_v49, %v1219_v49  ;;  %v1519_v41 = vunpack.c.l.b16 %v1187_v23  ;;  %vm4751_vm7 = vmor %vm739_vm9, %vm740_vm15  ;;  %v5366_v31 = vld [vmem:[#allocation25_spill] sm:$0xff]  ;;  %v5367_v43 = vld [vmem:[#allocation19_spill] sm:$0xff] }
 0x119   : > { %v1158_v20 = vmul.f32 %v1126_v62, %v1054_v26  ;;  %v738_v28 = vmul.f32 %v4595_v9, %v737_v29  ;;  %v1252_v48 = vpack.c.bf16 %v1220_v2, %v1220_v2  ;;  %vm749_vm3 = vweird.f32 %v4671_v54  ;;  %vm1083_vm10 = vmor %vm1081_vm5, %vm1082_vm14 }
 0x11a   : > { %v746_v8 = vmul.f32 0.5, %v745_v10  ;;  %vm750_vm4 = vweird.f32 %v4711_v30  ;;  %v1524_v18 = vunpack.c.l.b16 %v1251_v57  ;;  %v1520_v0 = vunpack.c.l.b16 %v1188_v35  ;;  %vm1063_vm5 = vmor %vm1061_vm6, %vm1062_vm8  ;;  %v5368_v10 = vld [vmem:[#allocation26_spill] sm:$0xff] }
 0x11b   : > { %v1157_v33 = vmul.f32 %v1125_v25, %v1054_v26  ;;  %v782_v32 = vsel %vm4730_vm0, %v4626_v16, %v778_v51  ;;  %v1525_v44 = vunpack.c.l.b16 %v1252_v48  ;;  %v1086_v54 = vmul.f32 %v4725_v47, %v4630_v37  ;;  %vm4769_vm9 = vmor %vm749_vm3, %vm750_vm4  ;;  %v1222_v25 = vld [vmem:[%s3766_s21 + $0xa8] sm:$0xff] }
 0x11c   : > { %v792_v61 = vsel %vm4741_vm1, %v4648_v15, %v788_v12  ;;  %v747_v24 = vsub.f32 1.5, %v746_v8  ;;  %v942_v46 = vadd.f32 %v941_v39, %v4651_v7  ;;  %v1060_v63 = vmul.f32 %v4505_v60, %v1059_v4  ;;  %v5365_v15 = vld [vmem:[#allocation24_spill] sm:$0xff] }
 0x11d   : > { %v1526_v26 = vpack.c.b16 %v1525_v44, %v1524_v18  ;;  %v1190_v36 = vpack.c.bf16 %v1158_v20, %v1158_v20  ;;  %v742_v19 = vsel %vm4751_vm7, %v4595_v9, %v738_v28  ;;  %v1131_v7 = vmul.f32 %v782_v32, %v5365_v15  ;;  %v1228_v32 = vld [vmem:[%s3766_s21 + $0xd8] sm:$0xff] }
 0x11e   : > { %v748_v4 = vmul.f32 %v4711_v30, %v747_v24  ;;  %v1189_v39 = vpack.c.bf16 %v1157_v33, %v1157_v33  ;;  %v1084_v17 = vsel %vm1083_vm10, %v4237_v5, %v1080_v21  ;;  %v1132_v23 = vmul.f32 %v792_v61, %v5366_v31  ;;  %v1227_v33 = vld [vmem:[%s3766_s21 + $0xd0] sm:$0xff]  ;;  %v1224_v31 = vld [vmem:[%s3766_s21 + $0xb8] sm:$0xff] }
 0x11f   : > { %1538 = vmatpush.bf16.msra.mxu1 %v1526_v26  ;;  %v4784_v13 = vpack.c.b16 %v1520_v0, %v1519_v41  ;;  %v1087_v3 = vmul.f32 %v4725_v47, %v1086_v54  ;;  %v943_v29 = vrot.slane %v942_v46, 1  ;;  %v1064_v9 = vsel %vm1063_vm5, %v4505_v60, %v1060_v63 }
 0x120   : > { %v752_v62 = vsel %vm4769_vm9, %v4711_v30, %v748_v4  ;;  %v1127_v35 = vmul.f32 %v742_v19, %v5367_v43  ;;  %v1548_v51 = vunpack.c.l.b16 %v1190_v36  ;;  %v1163_v5 = vmul.f32 %v1131_v7, %v1084_v17  ;;  %v4799_v48 = vpop.xlane.xlu1 %502 }
 0x121   : > { %v1253_v49 = vpack.c.bf16 %v1221_v34, %v1221_v34  ;;  %v1254_v2 = vpack.c.bf16 %v1222_v25, %v1222_v25  ;;  %v1547_v42 = vunpack.c.l.b16 %v1189_v39  ;;  %v1164_v12 = vmul.f32 %v1132_v23, %v1084_v17  ;;  %v1223_v17 = vld [vmem:[%s3766_s21 + $0xb0] sm:$0xff] }
 0x122   : > { %v506_v21 = vpop.xlane.xlu2 %505  ;;  %3049 = vmatmul.msk.bf16.vlgmr.msra.gmra.mxu1 %vm416_vm2, %v4784_v13  ;;  %v1128_v30 = vmul.f32 %v752_v62, %v5368_v10  ;;  %v1088_v60 = vmul.f32 0.5, %v1087_v3  ;;  %v1159_v20 = vmul.f32 %v1127_v35, %v1064_v9  ;;  %v4797_v28 = vadd.f32 %v943_v29, %v942_v46  ;;  %v3181_v35 = vld [vmem:[%s5213_s2] sm:$0xff] }
 0x123   : > { %3349 = vrsqrt.f32 %v506_v21  ;;  %v1552_v57 = vunpack.c.l.b16 %v1253_v49  ;;  %v1553_v41 = vunpack.c.l.b16 %v1254_v2  ;;  %v1195_v11 = vpack.c.bf16 %v1163_v5, %v1163_v5  ;;  %1796 = vmatpush.bf16.msra.mxu0 %v3181_v35 }
 0x124   : > { %v1196_v18 = vpack.c.bf16 %v1164_v12, %v1164_v12  ;;  %v1160_v0 = vmul.f32 %v1128_v30, %v1064_v9  ;;  %3351 = vrsqrt.f32 %v4799_v48  ;;  %v4802_v38 = vpack.c.b16 %v1548_v51, %v1547_v42  ;;  %v1229_v30 = vld [vmem:[%s3766_s21 + $0xe0] sm:$0xff] }
 0x125   : > { %v1554_v8 = vpack.c.b16 %v1553_v41, %v1552_v57  ;;  %v1089_v44 = vsub.f32 1.5, %v1088_v60  ;;  %v1259_v54 = vpack.c.bf16 %v1227_v33, %v1227_v33  ;;  %v1260_v61 = vpack.c.bf16 %v1228_v32, %v1228_v32  ;;  %v1230_v60 = vld [vmem:[%s3766_s21 + $0xe8] sm:$0xff]  ;;  %v1232_v33 = vld [vmem:[%s3766_s21 + $0xf8] sm:$0xff] }
 0x126   : > { %v1191_v46 = vpack.c.bf16 %v1159_v20, %v1159_v20  ;;  %3353 = vrsqrt.f32 %v4797_v28  ;;  %v1631_v36 = vunpack.c.l.b16 %v1195_v11  ;;  %v1632_v19 = vunpack.c.l.b16 %v1196_v18 }
 0x127   : > { %1566 = vmatpush.bf16.msra.mxu2 %v1554_v8  ;;  %v1636_v16 = vunpack.c.l.b16 %v1259_v54  ;;  %v1637_v26 = vunpack.c.l.b16 %v1260_v61  ;;  %v1192_v15 = vpack.c.bf16 %v1160_v0, %v1160_v0  ;;  %vm1091_vm6 = vweird.f32 %v4630_v37  ;;  %v1231_v0 = vld [vmem:[%s3766_s21 + $0xf0] sm:$0xff] }
 0x128   : > { %v1090_v7 = vmul.f32 %v4725_v47, %v1089_v44  ;;  %v1575_v3 = vunpack.c.l.b16 %v1191_v46  ;;  %vm1092_vm8 = vweird.f32 %v4725_v47  ;;  %v1255_v62 = vpack.c.bf16 %v1223_v17, %v1223_v17 }
 0x129   : > { %v3350_v24 = vpop.eup %3349  ;;  %v1638_v39 = vpack.c.b16 %v1637_v26, %v1636_v16  ;;  %v1256_v29 = vpack.c.bf16 %v1224_v31, %v1224_v31  ;;  %vm809_vm11 = vweird.f32 %v506_v21  ;;  %v1576_v34 = vunpack.c.l.b16 %v1192_v15  ;;  %vm4824_vm13 = vmor %vm1091_vm6, %vm1092_vm8 }
 0x12a   : > { %v804_v63 = vmul.f32 %v3350_v24, %v506_v21  ;;  %3050 = vmatmul.msk.bf16.vlgmr.msra.gmra.mxu2 %vm416_vm2, %v4802_v38  ;;  %v3352_v23 = vpop.eup %3351  ;;  %vm810_vm12 = vweird.f32 %v3350_v24  ;;  %v4818_v25 = vpack.c.b16 %v1632_v19, %v1631_v36  ;;  %v1580_v51 = vunpack.c.l.b16 %v1255_v62 }
 0x12b   : > { %v794_v43 = vmul.f32 %v3352_v23, %v4799_v48  ;;  %1650 = vmatpush.bf16.msrb.mxu1 %v1638_v39  ;;  %v1581_v5 = vunpack.c.l.b16 %v1256_v29  ;;  %vm4828_vm14 = vmor %vm809_vm11, %vm810_vm12  ;;  %vm799_vm15 = vweird.f32 %v4799_v48  ;;  %vm800_vm0 = vweird.f32 %v3352_v23 }
 0x12c   : > { %v805_v4 = vmul.f32 %v3350_v24, %v804_v63  ;;  %v4820_v49 = vpop.eup %3353  ;;  %v1261_v41 = vpack.c.bf16 %v1229_v30, %v1229_v30  ;;  %v1262_v20 = vpack.c.bf16 %v1230_v60, %v1230_v60  ;;  %v1094_v8 = vsel %vm4824_vm13, %v4725_v47, %v1090_v7  ;;  %vm4852_vm1 = vmor %vm799_vm15, %vm800_vm0 }
 0x12d   : > { %v795_v42 = vmul.f32 %v3352_v23, %v794_v43  ;;  %v1582_v10 = vpack.c.b16 %v1581_v5, %v1580_v51  ;;  %v1096_v11 = vmul.f32 %v4820_v49, %v4797_v28  ;;  %v4842_v18 = vpack.c.b16 %v1576_v34, %v1575_v3 }
 0x12e   : > { %v806_v9 = vmul.f32 0.5, %v805_v4  ;;  %v1664_v54 = vunpack.c.l.b16 %v1261_v41  ;;  %v1665_v61 = vunpack.c.l.b16 %v1262_v20  ;;  %v1263_v16 = vpack.c.bf16 %v1231_v0, %v1231_v0 }
 0x12f   : > { %v796_v57 = vmul.f32 0.5, %v795_v42  ;;  %1594 = vmatpush.bf16.msra.mxu3 %v1582_v10  ;;  %v1264_v26 = vpack.c.bf16 %v1232_v33, %v1232_v33  ;;  %v1097_v19 = vmul.f32 %v4820_v49, %v1096_v11  ;;  %vm1101_vm3 = vweird.f32 %v4797_v28 }
 0x130   : > { %v807_v2 = vsub.f32 1.5, %v806_v9  ;;  %vm1102_vm4 = vweird.f32 %v4820_v49 }
 0x131   : > { %v797_v44 = vsub.f32 1.5, %v796_v57  ;;  %v1693_v7 = vunpack.c.l.b16 %v1264_v26  ;;  %v1098_v62 = vmul.f32 0.5, %v1097_v19  ;;  %vm1103_vm9 = vmor %vm1101_vm3, %vm1102_vm4 }
 0x132   : > { %v808_v37 = vmul.f32 %v3350_v24, %v807_v2  ;;  %3053 = vmatmul.msk.bf16.vlgmr.msrb.gmra.mxu1 %vm416_vm2, %v4818_v25  ;;  %3051 = vmatmul.msk.bf16.vlgmr.msra.gmra.mxu3 %vm416_vm2, %v4842_v18 }
 0x133   : > { %v512_v47 = vpop.xlane.xlu1 %511  ;;  %v798_v36 = vmul.f32 %v3352_v23, %v797_v44  ;;  %v1099_v21 = vsub.f32 1.5, %v1098_v62 }
 0x134   : > { %v812_v32 = vsel %vm4828_vm14, %v3350_v24, %v808_v37  ;;  %3355 = vrsqrt.f32 %v512_v47  ;;  %v1666_v24 = vpack.c.b16 %v1665_v61, %v1664_v54  ;;  %vm829_vm7 = vweird.f32 %v512_v47 }
 0x135   : > { %v1134_v46 = vmul.f32 %v812_v32, %v3964_v14  ;;  %v1692_v14 = vunpack.c.l.b16 %v1263_v16  ;;  %v802_v48 = vsel %vm4852_vm1, %v3352_v23, %v798_v36  ;;  %v509_v39 = vpop.xlane.xlu0 %508  ;;  %v1100_v37 = vmul.f32 %v4820_v49, %v1099_v21 }
 0x136   : > { %1678 = vmatpush.bf16.msrb.mxu2 %v1666_v24  ;;  %v1133_v31 = vmul.f32 %v802_v48, %v3994_v59  ;;  %3357 = vrsqrt.f32 %v509_v39  ;;  %vm819_vm6 = vweird.f32 %v509_v39 }
 0x137   : > { %v1166_v15 = vmul.f32 %v1134_v46, %v1094_v8  ;;  %v1288_v4 = vpop.f32.mrf.mxu0  ;;  %v1694_v3 = vpack.c.b16 %v1693_v7, %v1692_v14  ;;  %v1104_v11 = vsel %vm1103_vm9, %v4820_v49, %v1100_v37 }
 0x138   : > { %v1165_v29 = vmul.f32 %v1133_v31, %v1094_v8 }
 0x139   : > { %v1198_v17 = vpack.c.bf16 %v1166_v15, %v1166_v15  ;;  %1706 = vmatpush.bf16.msrb.mxu3 %v1694_v3 }
 0x13a   : > { %v3356_v9 = vpop.eup %3355  ;;  %v1197_v34 = vpack.c.bf16 %v1165_v29, %v1165_v29 }
 0x13b   : > { %v1660_v43 = vunpack.c.l.b16 %v1198_v17  ;;  %v824_v51 = vmul.f32 %v3356_v9, %v512_v47  ;;  %vm830_vm10 = vweird.f32 %v3356_v9  ;;  %v1344_v49 = vpop.f32.mrf.mxu2 }
 0x13c   : > { %v3358_v5 = vpop.eup %3357  ;;  %v1659_v2 = vunpack.c.l.b16 %v1197_v34  ;;  %vm831_vm5 = vmor %vm829_vm7, %vm830_vm10 }
 0x13d   : > { %3199 = vmatpush.bf16.msra.mxu3 %v3181_v35  ;;  %v825_v23 = vmul.f32 %v3356_v9, %v824_v51  ;;  %v814_v59 = vmul.f32 %v3358_v5, %v509_v39  ;;  %vm820_vm8 = vweird.f32 %v3358_v5 }
 0x13e   : > { %v4864_v30 = vpack.c.b16 %v1660_v43, %v1659_v2  ;;  %vm821_vm11 = vmor %vm819_vm6, %vm820_vm8 }
 0x13f   : > { %v1290_v42 = vpop.f32.mrf.mxu0  ;;  %v826_v12 = vmul.f32 0.5, %v825_v23  ;;  %v815_v60 = vmul.f32 %v3358_v5, %v814_v59  ;;  %v1316_v28 = vpop.f32.mrf.mxu1 }
 0x140   : > { %v1713_v10 = vpack.c.bf16 %v1290_v42, %v1288_v4  ;;  %3054 = vmatmul.msk.bf16.vlgmr.msrb.gmra.mxu2 %vm416_vm2, %v4864_v30 }
 0x141   : > { %v827_v35 = vsub.f32 1.5, %v826_v12  ;;  %v816_v57 = vmul.f32 0.5, %v815_v60 }
 0x142   : > { %3060 = vmatmul.msk.bf16.vlgmr.msra.gmra.mxu0 %vm416_vm2, %v1713_v10 }
 0x143   : > { %v828_v41 = vmul.f32 %v3356_v9, %v827_v35  ;;  %v817_v20 = vsub.f32 1.5, %v816_v57  ;;  %v4892_v35 = vld [vmem:[%s5214_s3] ss:$0 sm:$0xff] }
 0x145   : > { %v832_v8 = vsel %vm831_vm5, %v3356_v9, %v828_v41  ;;  %v818_v33 = vmul.f32 %v3358_v5, %v817_v20 }
 0x146   : > { %v1136_v0 = vmul.f32 %v832_v8, %v4084_v27  ;;  %v1346_v27 = vpop.f32.mrf.mxu2 }
 0x147   : > { %v822_v44 = vsel %vm821_vm11, %v3358_v5, %v818_v33  ;;  %v1318_v63 = vpop.f32.mrf.mxu1  ;;  %v1715_v19 = vpack.c.bf16 %v1346_v27, %v1344_v49 }
 0x148   : > { %v1168_v32 = vmul.f32 %v1136_v0, %v1104_v11  ;;  %v1135_v54 = vmul.f32 %v822_v44, %v4092_v53  ;;  %v1714_v36 = vpack.c.bf16 %v1318_v63, %v1316_v28 }
 0x14a   : > { %v1200_v61 = vpack.c.bf16 %v1168_v32, %v1168_v32  ;;  %v1167_v46 = vmul.f32 %v1135_v54, %v1104_v11  ;;  %v4899_v11 = vld [vmem:[%s5215_s4] ss:$0 sm:$0xff] }
 0x14c   : > { %v1688_v47 = vunpack.c.l.b16 %v1200_v61  ;;  %v1199_v16 = vpack.c.bf16 %v1167_v46, %v1167_v46 }
 0x14e   : > { %v1687_v26 = vunpack.c.l.b16 %v1199_v16 }
 0x150   : > { %v4873_v24 = vpack.c.b16 %v1688_v47, %v1687_v26 }
 0x152   : > { %3061 = vmatmul.msk.bf16.gmra.mxu0 %vm416_vm2, %v1714_v36  ;;  %3055 = vmatmul.msk.bf16.vlgmr.msrb.gmra.mxu3 %vm416_vm2, %v4873_v24  ;;  %v1372_v53 = vpop.f32.mrf.mxu3 }
 0x157   : > { %v1400_v7 = vpop.f32.mrf.mxu0 }
 0x15a   : > { %v1374_v15 = vpop.f32.mrf.mxu3 }
 0x15b   : > { %v1716_v14 = vpack.c.bf16 %v1374_v15, %v1372_v53 }
 0x15f   : > { %v1402_v48 = vpop.f32.mrf.mxu0 }
 0x160   : > { %v1717_v4 = vpack.c.bf16 %v1402_v48, %v1400_v7 }
 0x162   : > { %3062 = vmatmul.msk.bf16.gmra.mxu0 %vm416_vm2, %v1715_v19 }
 0x167   : > { %v1428_v39 = vpop.f32.mrf.mxu1 }
 0x16f   : > { %v1430_v17 = vpop.f32.mrf.mxu1 }
 0x170   : > { %v1718_v31 = vpack.c.bf16 %v1430_v17, %v1428_v39 }
 0x172   : > { %3063 = vmatmul.msk.bf16.gmra.mxu0 %vm416_vm2, %v1716_v14 }
 0x173   : > { %v1456_v3 = vpop.f32.mrf.mxu2 }
 0x176   : > { %v1512_v62 = vpop.f32.mrf.mxu0 }
 0x17b   : > { %v1458_v29 = vpop.f32.mrf.mxu2 }
 0x17c   : > { %v1719_v43 = vpack.c.bf16 %v1458_v29, %v1456_v3 }
 0x17e   : > { %v1514_v51 = vpop.f32.mrf.mxu0 }
 0x17f   : > { %v1721_v57 = vpack.c.bf16 %v1514_v51, %v1512_v62 }
 0x181   : > { %v1484_v34 = vpop.f32.mrf.mxu3 }
 0x182   : > { %3064 = vmatmul.msk.bf16.gmra.mxu0 %vm416_vm2, %v1717_v4 }
 0x189   : > { %v1486_v21 = vpop.f32.mrf.mxu3  ;;  %v4883_v2 = vpop.f32.mrf.mxu0 }
 0x18a   : > { %v1720_v59 = vpack.c.bf16 %v1486_v21, %v1484_v34 }
 0x191   : > { %v4886_v10 = vpop.f32.mrf.mxu0 }
 0x192   : > { %3065 = vmatmul.msk.bf16.gmra.mxu0 %vm416_vm2, %v1718_v31 }
 0x19f   : > { %v1540_v9 = vpop.f32.mrf.mxu1 }
 0x1a2   : > { %3066 = vmatmul.msk.bf16.gmra.mxu0 %vm416_vm2, %v1719_v43 }
 0x1a7   : > { %v1542_v5 = vpop.f32.mrf.mxu1 }
 0x1a8   : > { %v1722_v19 = vpack.c.bf16 %v1542_v5, %v1540_v9 }
 0x1ad   : > { %v1568_v42 = vpop.f32.mrf.mxu2 }
 0x1af   : > { %v1652_v23 = vpop.f32.mrf.mxu1 }
 0x1b2   : > { %3067 = vmatmul.msk.bf16.gmra.mxu0 %vm416_vm2, %v1720_v59 }
 0x1b5   : > { %v1570_v37 = vpop.f32.mrf.mxu2  ;;  %v4901_v8 = vpop.f32.mrf.mxu3 }
 0x1b6   : > { %v1723_v21 = vpack.c.bf16 %v1570_v37, %v1568_v42 }
 0x1b7   : > { %v1654_v12 = vpop.f32.mrf.mxu1 }
 0x1b8   : > { %v1726_v60 = vpack.c.bf16 %v1654_v12, %v1652_v23 }
 0x1ba   : > { %3073 = vmatmul.msk.bf16.vlgmr.msra.gmra.mxu3 %vm416_vm2, %v1726_v60 }
 0x1bd   : > { %v1598_v27 = vpop.f32.mrf.mxu3 }
 0x1bf   : > { %v1798_v28 = vpop.f32.mrf.mxu0 }
 0x1c0   : > { %v1799_v41 = vadd.f32 %v4892_v35, %v1798_v28 }
 0x1c2   : > { %v1910_v20 = vmul.f32 0.2, %v1799_v41  ;;  %3068 = vmatmul.msk.bf16.gmra.mxu0 %vm416_vm2, %v1721_v57  ;;  %vm1878_vm12 = vcmp.ge.f32.partialorder %v1799_v41, 0.0 }
 0x1c3   : > { %v1680_v0 = vpop.f32.mrf.mxu2 }
 0x1c4   : > { %v1942_v33 = vsel %vm1878_vm12, %v1799_v41, %v1910_v20 }
 0x1c5   : > { %v1978_v54 = vadd.f32 %v4899_v11, %v1942_v33 }
 0x1c7   : > { %v1800_v32 = vpop.f32.mrf.mxu0  ;;  %v2010_v63 = vpack.c.bf16 %v1978_v54, %v1978_v54 }
 0x1c8   : > { %v1801_v44 = vadd.f32 %v4892_v35, %v1800_v32 }
 0x1c9   : > { %v2044_v15 = vunpack.c.l.b16 %v2010_v63 }
 0x1ca   : > { %vm1879_vm13 = vcmp.ge.f32.partialorder %v1801_v44, 0.0  ;;  %v1911_v61 = vmul.f32 0.2, %v1801_v44 }
 0x1cb   : > { %v1682_v16 = vpop.f32.mrf.mxu2 }
 0x1cc   : > { %v1943_v46 = vsel %vm1879_vm13, %v1801_v44, %v1911_v61  ;;  %v1727_v26 = vpack.c.bf16 %v1682_v16, %v1680_v0  ;;  %v1724_v61 = vpack.c.bf16 %v1598_v27, %v4901_v8 }
 0x1cd   : > { %v1979_v47 = vadd.f32 %v4899_v11, %v1943_v46 }
 0x1ce   : > { %3074 = vmatmul.msk.bf16.gmra.mxu3 %vm416_vm2, %v1727_v26 }
 0x1cf   : > { %v2011_v36 = vpack.c.bf16 %v1979_v47, %v1979_v47  ;;  %v1803_v49 = vpop.f32.mrf.mxu0 }
 0x1d0   : > { %v1804_v53 = vadd.f32 %v4892_v35, %v1803_v49 }
 0x1d1   : > { %v2045_v14 = vunpack.c.l.b16 %v2011_v36 }
 0x1d2   : > { %v1912_v7 = vmul.f32 0.2, %v1804_v53  ;;  %3069 = vmatmul.msk.bf16.gmra.mxu0 %vm416_vm2, %v1722_v19  ;;  %vm1880_vm14 = vcmp.ge.f32.partialorder %v1804_v53, 0.0 }
 0x1d3   : > { %v2046_v48 = vpack.c.b16 %v2045_v14, %v2044_v15 }
 0x1d4   : > { %v1944_v4 = vsel %vm1880_vm14, %v1804_v53, %v1912_v7 }
 0x1d5   : > { %2055 = vmatpush.bf16.msra.mxu1 %v2046_v48  ;;  %v1708_v17 = vpop.f32.mrf.mxu3  ;;  %v1980_v3 = vadd.f32 %v4899_v11, %v1944_v4  ;;  %v1725_v48 = vpack.c.bf16 %v4886_v10, %v4883_v2 }
 0x1d7   : > { %v1805_v39 = vpop.f32.mrf.mxu0  ;;  %v2012_v9 = vpack.c.bf16 %v1980_v3, %v1980_v3 }
 0x1d8   : > { %v1806_v31 = vadd.f32 %v4892_v35, %v1805_v39  ;;  %3076 = vmatmul.msk.bf16.vlgmr.msra.gmra.mxu1 %vm416_vm2, %v4042_v40 }
 0x1d9   : > { %v2064_v12 = vunpack.c.l.b16 %v2012_v9 }
 0x1da   : > { %vm1881_vm15 = vcmp.ge.f32.partialorder %v1806_v31, 0.0  ;;  %v1913_v62 = vmul.f32 0.2, %v1806_v31 }
 0x1dc   : > { %v1945_v29 = vsel %vm1881_vm15, %v1806_v31, %v1913_v62 }
 0x1dd   : > { %v1981_v43 = vadd.f32 %v4899_v11, %v1945_v29  ;;  %v1710_v5 = vpop.f32.mrf.mxu3 }
 0x1de   : > { %v1728_v59 = vpack.c.bf16 %v1710_v5, %v1708_v17 }
 0x1df   : > { %v2013_v34 = vpack.c.bf16 %v1981_v43, %v1981_v43  ;;  %v1808_v51 = vpop.f32.mrf.mxu0 }
 0x1e0   : > { %v1809_v23 = vadd.f32 %v4892_v35, %v1808_v51  ;;  %3075 = vmatmul.msk.bf16.gmra.mxu3 %vm416_vm2, %v1728_v59 }
 0x1e1   : > { %v2065_v60 = vunpack.c.l.b16 %v2013_v34 }
 0x1e2   : > { %v1914_v28 = vmul.f32 0.2, %v1809_v23  ;;  %3070 = vmatmul.msk.bf16.gmra.mxu0 %vm416_vm2, %v1723_v21  ;;  %vm1882_vm0 = vcmp.ge.f32.partialorder %v1809_v23, 0.0 }
 0x1e3   : > { %v2066_v40 = vpack.c.b16 %v2065_v60, %v2064_v12 }
 0x1e4   : > { %v1946_v57 = vsel %vm1882_vm0, %v1809_v23, %v1914_v28 }
 0x1e5   : > { %2075 = vmatpush.bf16.msra.mxu2 %v2066_v40  ;;  %v1982_v42 = vadd.f32 %v4899_v11, %v1946_v57 }
 0x1e7   : > { %v1810_v41 = vpop.f32.mrf.mxu0  ;;  %v2014_v33 = vpack.c.bf16 %v1982_v42, %v1982_v42 }
 0x1e8   : > { %v1811_v20 = vadd.f32 %v4892_v35, %v1810_v41  ;;  %3077 = vmatmul.msk.bf16.vlgmr.msra.gmra.mxu2 %vm416_vm2, %v4103_v50 }
 0x1e9   : > { %v2084_v63 = vunpack.c.l.b16 %v2014_v33 }
 0x1ea   : > { %vm1883_vm1 = vcmp.ge.f32.partialorder %v1811_v20, 0.0  ;;  %v1915_v37 = vmul.f32 0.2, %v1811_v20 }
 0x1ec   : > { %v1947_v0 = vsel %vm1883_vm1, %v1811_v20, %v1915_v37 }
 0x1ed   : > { %v1983_v32 = vadd.f32 %v4899_v11, %v1947_v0 }
 0x1ef   : > { %v2015_v44 = vpack.c.bf16 %v1983_v32, %v1983_v32  ;;  %v1813_v54 = vpop.f32.mrf.mxu0 }
 0x1f0   : > { %v1814_v46 = vadd.f32 %v4892_v35, %v1813_v54 }
 0x1f1   : > { %v2085_v47 = vunpack.c.l.b16 %v2015_v44 }
 0x1f2   : > { %v1916_v16 = vmul.f32 0.2, %v1814_v46  ;;  %3071 = vmatmul.msk.bf16.gmra.mxu0 %vm416_vm2, %v1724_v61  ;;  %vm1884_vm3 = vcmp.ge.f32.partialorder %v1814_v46, 0.0 }
 0x1f3   : > { %v2086_v50 = vpack.c.b16 %v2085_v47, %v2084_v63 }
 0x1f4   : > { %v1948_v26 = vsel %vm1884_vm3, %v1814_v46, %v1916_v16 }
 0x1f5   : > { %2095 = vmatpush.bf16.msrb.mxu3 %v2086_v50  ;;  %v1984_v19 = vadd.f32 %v4899_v11, %v1948_v26 }
 0x1f7   : > { %v1815_v36 = vpop.f32.mrf.mxu0  ;;  %v2016_v53 = vpack.c.bf16 %v1984_v19, %v1984_v19 }
 0x1f8   : > { %v1816_v49 = vadd.f32 %v4892_v35, %v1815_v36  ;;  %3078 = vmatmul.msk.bf16.vlgmr.msrb.gmra.mxu3 %vm416_vm2, %v4023_v52 }
 0x1f9   : > { %v2104_v39 = vunpack.c.l.b16 %v2016_v53 }
 0x1fa   : > { %vm1885_vm4 = vcmp.ge.f32.partialorder %v1816_v49, 0.0  ;;  %v1917_v8 = vmul.f32 0.2, %v1816_v49 }
 0x1fc   : > { %v1949_v27 = vsel %vm1885_vm4, %v1816_v49, %v1917_v8 }
 0x1fd   : > { %v1985_v15 = vadd.f32 %v4899_v11, %v1949_v27 }
 0x1ff   : > { %v2017_v14 = vpack.c.bf16 %v1985_v15, %v1985_v15  ;;  %v1818_v7 = vpop.f32.mrf.mxu0 }
 0x200   : > { %v1819_v4 = vadd.f32 %v4892_v35, %v1818_v7 }
 0x201   : > { %v2105_v17 = vunpack.c.l.b16 %v2017_v14 }
 0x202   : > { %v1918_v31 = vmul.f32 0.2, %v1819_v4  ;;  %3072 = vmatmul.msk.bf16.gmra.mxu0 %vm416_vm2, %v1725_v48  ;;  %vm1886_vm7 = vcmp.ge.f32.partialorder %v1819_v4, 0.0 }
 0x203   : > { %v2106_v52 = vpack.c.b16 %v2105_v17, %v2104_v39 }
 0x204   : > { %v1950_v3 = vsel %vm1886_vm7, %v1819_v4, %v1918_v31 }
 0x205   : > { %2115 = vmatpush.bf16.msrb.mxu1 %v2106_v52  ;;  %v1986_v9 = vadd.f32 %v4899_v11, %v1950_v3 }
 0x207   : > { %v1820_v62 = vpop.f32.mrf.mxu0  ;;  %v2018_v43 = vpack.c.bf16 %v1986_v9, %v1986_v9 }
 0x208   : > { %v1821_v29 = vadd.f32 %v4892_v35, %v1820_v62  ;;  %3079 = vmatmul.msk.bf16.vlgmr.msrb.gmra.mxu1 %vm416_vm2, %v4189_v55 }
 0x209   : > { %v2124_v23 = vunpack.c.l.b16 %v2018_v43 }
 0x20a   : > { %vm1887_vm10 = vcmp.ge.f32.partialorder %v1821_v29, 0.0  ;;  %v1919_v2 = vmul.f32 0.2, %v1821_v29 }
 0x20c   : > { %v1951_v10 = vsel %vm1887_vm10, %v1821_v29, %v1919_v2 }
 0x20d   : > { %v1987_v34 = vadd.f32 %v4899_v11, %v1951_v10 }
 0x20f   : > { %v2019_v51 = vpack.c.bf16 %v1987_v34, %v1987_v34  ;;  %v1823_v5 = vpop.f32.mrf.mxu0 }
 0x210   : > { %v1824_v21 = vadd.f32 %v4892_v35, %v1823_v5 }
 0x211   : > { %v2125_v59 = vunpack.c.l.b16 %v2019_v51 }
 0x212   : > { %v1920_v12 = vmul.f32 0.2, %v1824_v21  ;;  %vm1888_vm9 = vcmp.ge.f32.partialorder %v1824_v21, 0.0 }
 0x213   : > { %v2126_v60 = vpack.c.b16 %v2125_v59, %v2124_v23 }
 0x214   : > { %v1952_v28 = vsel %vm1888_vm9, %v1824_v21, %v1920_v12 }
 0x215   : > { %2135 = vmatpush.bf16.msrb.mxu2 %v2126_v60  ;;  %v1988_v57 = vadd.f32 %v4899_v11, %v1952_v28 }
 0x217   : > { %v1825_v55 = vpop.f32.mrf.mxu0  ;;  %v2020_v42 = vpack.c.bf16 %v1988_v57, %v1988_v57 }
 0x218   : > { %v1826_v40 = vadd.f32 %v4892_v35, %v1825_v55  ;;  %3080 = vmatmul.msk.bf16.vlgmr.msrb.gmra.mxu2 %vm416_vm2, %v4289_v58 }
 0x219   : > { %v2144_v44 = vunpack.c.l.b16 %v2020_v42 }
 0x21a   : > { %vm1889_vm5 = vcmp.ge.f32.partialorder %v1826_v40, 0.0  ;;  %v1921_v41 = vmul.f32 0.2, %v1826_v40 }
 0x21c   : > { %v1953_v20 = vsel %vm1889_vm5, %v1826_v40, %v1921_v41 }
 0x21d   : > { %v1989_v37 = vadd.f32 %v4899_v11, %v1953_v20 }
 0x21f   : > { %v2021_v0 = vpack.c.bf16 %v1989_v37, %v1989_v37  ;;  %v1828_v33 = vpop.f32.mrf.mxu0 }
 0x220   : > { %v1829_v32 = vadd.f32 %v4892_v35, %v1828_v33 }
 0x221   : > { %v2145_v54 = vunpack.c.l.b16 %v2021_v0 }
 0x222   : > { %v1922_v61 = vmul.f32 0.2, %v1829_v32  ;;  %vm1890_vm6 = vcmp.ge.f32.partialorder %v1829_v32, 0.0 }
 0x223   : > { %v2146_v46 = vpack.c.b16 %v2145_v54, %v2144_v44 }
 0x224   : > { %v1954_v63 = vsel %vm1890_vm6, %v1829_v32, %v1922_v61 }
 0x225   : > { %2155 = vmatpush.bf16.msra.mxu3 %v2146_v46  ;;  %v1990_v16 = vadd.f32 %v4899_v11, %v1954_v63 }
 0x227   : > { %v1830_v58 = vpop.f32.mrf.mxu0  ;;  %v2022_v36 = vpack.c.bf16 %v1990_v16, %v1990_v16 }
 0x228   : > { %v1831_v47 = vadd.f32 %v4892_v35, %v1830_v58  ;;  %3081 = vmatmul.msk.bf16.vlgmr.msra.gmra.mxu3 %vm416_vm2, %v4396_v6 }
 0x229   : > { %v2164_v53 = vunpack.c.l.b16 %v2022_v36 }
 0x22a   : > { %vm1891_vm8 = vcmp.ge.f32.partialorder %v1831_v47, 0.0  ;;  %v1923_v50 = vmul.f32 0.2, %v1831_v47 }
 0x22c   : > { %v1955_v26 = vsel %vm1891_vm8, %v1831_v47, %v1923_v50 }
 0x22d   : > { %v1991_v49 = vadd.f32 %v4899_v11, %v1955_v26 }
 0x22f   : > { %v2023_v19 = vpack.c.bf16 %v1991_v49, %v1991_v49  ;;  %v1833_v8 = vpop.f32.mrf.mxu0 }
 0x230   : > { %v1834_v27 = vadd.f32 %v4892_v35, %v1833_v8 }
 0x231   : > { %v2165_v15 = vunpack.c.l.b16 %v2023_v19 }
 0x232   : > { %v1924_v14 = vmul.f32 0.2, %v1834_v27  ;;  %vm1892_vm11 = vcmp.ge.f32.partialorder %v1834_v27, 0.0 }
 0x233   : > { %v2166_v7 = vpack.c.b16 %v2165_v15, %v2164_v53 }
 0x234   : > { %v1956_v48 = vsel %vm1892_vm11, %v1834_v27, %v1924_v14 }
 0x235   : > { %2175 = vmatpush.bf16.msra.mxu1 %v2166_v7  ;;  %v1992_v39 = vadd.f32 %v4899_v11, %v1956_v48 }
 0x237   : > { %v1835_v6 = vpop.f32.mrf.mxu0  ;;  %v2024_v52 = vpack.c.bf16 %v1992_v39, %v1992_v39 }
 0x238   : > { %v1836_v4 = vadd.f32 %v4892_v35, %v1835_v6  ;;  %3082 = vmatmul.msk.bf16.vlgmr.msra.gmra.mxu1 %vm416_vm2, %v4441_v45 }
 0x239   : > { %v2184_v2 = vunpack.c.l.b16 %v2024_v52 }
 0x23a   : > { %vm1893_vm12 = vcmp.ge.f32.partialorder %v1836_v4, 0.0  ;;  %v1925_v17 = vmul.f32 0.2, %v1836_v4 }
 0x23c   : > { %v1957_v31 = vsel %vm1893_vm12, %v1836_v4, %v1925_v17 }
 0x23d   : > { %v1993_v3 = vadd.f32 %v4899_v11, %v1957_v31  ;;  %v1863_v59 = vpop.f32.mrf.mxu3 }
 0x23e   : > { %v1864_v46 = vadd.f32 %v4892_v35, %v1863_v59 }
 0x23f   : > { %v2025_v62 = vpack.c.bf16 %v1993_v3, %v1993_v3  ;;  %v1838_v29 = vpop.f32.mrf.mxu0 }
 0x240   : > { %v1839_v9 = vadd.f32 %v4892_v35, %v1838_v29  ;;  %v1936_v49 = vmul.f32 0.2, %v1864_v46  ;;  %vm1904_vm1 = vcmp.ge.f32.partialorder %v1864_v46, 0.0 }
 0x241   : > { %v2185_v10 = vunpack.c.l.b16 %v2025_v62 }
 0x242   : > { %v1926_v43 = vmul.f32 0.2, %v1839_v9  ;;  %vm1894_vm13 = vcmp.ge.f32.partialorder %v1839_v9, 0.0  ;;  %v1968_v15 = vsel %vm1904_vm1, %v1864_v46, %v1936_v49 }
 0x243   : > { %v2186_v34 = vpack.c.b16 %v2185_v10, %v2184_v2  ;;  %v2004_v6 = vadd.f32 %v4899_v11, %v1968_v15 }
 0x244   : > { %v1958_v51 = vsel %vm1894_vm13, %v1839_v9, %v1926_v43 }
 0x245   : > { %2195 = vmatpush.bf16.msra.mxu2 %v2186_v34  ;;  %v1994_v21 = vadd.f32 %v4899_v11, %v1958_v51  ;;  %v1865_v0 = vpop.f32.mrf.mxu3  ;;  %v2036_v3 = vpack.c.bf16 %v2004_v6, %v2004_v6 }
 0x246   : > { %v1866_v58 = vadd.f32 %v4892_v35, %v1865_v0 }
 0x247   : > { %v1840_v45 = vpop.f32.mrf.mxu0  ;;  %v2026_v60 = vpack.c.bf16 %v1994_v21, %v1994_v21 }
 0x248   : > { %v1841_v5 = vadd.f32 %v4892_v35, %v1840_v45  ;;  %3083 = vmatmul.msk.bf16.vlgmr.msra.gmra.mxu2 %vm416_vm2, %v4539_v56  ;;  %vm1905_vm3 = vcmp.ge.f32.partialorder %v1866_v58, 0.0  ;;  %v2304_v45 = vunpack.c.l.b16 %v2036_v3 }
 0x249   : > { %v2204_v41 = vunpack.c.l.b16 %v2026_v60 }
 0x24a   : > { %vm1895_vm14 = vcmp.ge.f32.partialorder %v1841_v5, 0.0  ;;  %v1927_v23 = vmul.f32 0.2, %v1841_v5 }
 0x24c   : > { %v1959_v12 = vsel %vm1895_vm14, %v1841_v5, %v1927_v23 }
 0x24d   : > { %v1995_v28 = vadd.f32 %v4899_v11, %v1959_v12 }
 0x24f   : > { %v2027_v55 = vpack.c.bf16 %v1995_v28, %v1995_v28  ;;  %v1843_v40 = vpop.f32.mrf.mxu0 }
 0x250   : > { %v1844_v57 = vadd.f32 %v4892_v35, %v1843_v40 }
 0x251   : > { %v2205_v20 = vunpack.c.l.b16 %v2027_v55  ;;  %v1868_v16 = vpop.f32.mrf.mxu3 }
 0x252   : > { %v1928_v42 = vmul.f32 0.2, %v1844_v57  ;;  %vm1896_vm15 = vcmp.ge.f32.partialorder %v1844_v57, 0.0  ;;  %v1869_v9 = vadd.f32 %v4892_v35, %v1868_v16 }
 0x253   : > { %v2206_v37 = vpack.c.b16 %v2205_v20, %v2204_v41 }
 0x254   : > { %v1960_v56 = vsel %vm1896_vm15, %v1844_v57, %v1928_v42  ;;  %v1938_v21 = vmul.f32 0.2, %v1869_v9  ;;  %vm1906_vm10 = vcmp.ge.f32.partialorder %v1869_v9, 0.0 }
 0x255   : > { %2215 = vmatpush.bf16.msrb.mxu3 %v2206_v37  ;;  %v1996_v44 = vadd.f32 %v4899_v11, %v1960_v56 }
 0x256   : > { %v1970_v57 = vsel %vm1906_vm10, %v1869_v9, %v1938_v21  ;;  %v3185_v9 = vld [vmem:[%s5213_s2 + $0x58] sm:$0xff]  ;;  %v3183_v21 = vld [vmem:[%s5213_s2 + $0x48] sm:$0xff] }
 0x257   : > { %v1845_v33 = vpop.f32.mrf.mxu0  ;;  %v2028_v63 = vpack.c.bf16 %v1996_v44, %v1996_v44  ;;  %v2006_v37 = vadd.f32 %v4899_v11, %v1970_v57 }
 0x258   : > { %v1846_v32 = vadd.f32 %v4892_v35, %v1845_v33  ;;  %3084 = vmatmul.msk.bf16.vlgmr.msrb.gmra.mxu3 %vm416_vm2, %v4489_v22  ;;  %v1937_v22 = vmul.f32 0.2, %v1866_v58  ;;  %v4990_v33 = vld [vmem:[%s5213_s2 + $0x78] sm:$0xff] }
 0x259   : > { %v2224_v19 = vunpack.c.l.b16 %v2028_v63  ;;  %v1870_v39 = vpop.f32.mrf.mxu3 }
 0x25a   : > { %vm1897_vm0 = vcmp.ge.f32.partialorder %v1846_v32, 0.0  ;;  %v1929_v54 = vmul.f32 0.2, %v1846_v32  ;;  %v1969_v14 = vsel %vm1905_vm3, %v1866_v58, %v1937_v22  ;;  %v1871_v10 = vadd.f32 %v4892_v35, %v1870_v39  ;;  %v4997_v58 = vld [vmem:[%s5213_s2 + $0x70] sm:$0xff] }
 0x25b   : > { %v2005_v4 = vadd.f32 %v4899_v11, %v1969_v14 }
 0x25c   : > { %v1961_v61 = vsel %vm1897_vm0, %v1846_v32, %v1929_v54  ;;  %v1939_v59 = vmul.f32 0.2, %v1871_v10  ;;  %vm1907_vm9 = vcmp.ge.f32.partialorder %v1871_v10, 0.0  ;;  %v2038_v54 = vpack.c.bf16 %v2006_v37, %v2006_v37 }
 0x25d   : > { %v1997_v47 = vadd.f32 %v4899_v11, %v1961_v61  ;;  %v2037_v62 = vpack.c.bf16 %v2005_v4, %v2005_v4  ;;  %v3186_v4 = vld [vmem:[%s5213_s2 + $0x60] sm:$0xff] }
 0x25e   : > { %v1971_v41 = vsel %vm1907_vm9, %v1871_v10, %v1939_v59  ;;  %v2324_v49 = vunpack.c.l.b16 %v2038_v54 }
 0x25f   : > { %v2029_v50 = vpack.c.bf16 %v1997_v47, %v1997_v47  ;;  %v1848_v26 = vpop.f32.mrf.mxu0  ;;  %v2305_v5 = vunpack.c.l.b16 %v2037_v62  ;;  %v2007_v0 = vadd.f32 %v4899_v11, %v1971_v41 }
 0x260   : > { %v1849_v36 = vadd.f32 %v4892_v35, %v1848_v26 }
 0x261   : > { %v2225_v8 = vunpack.c.l.b16 %v2029_v50  ;;  %v2306_v40 = vpack.c.b16 %v2305_v5, %v2304_v45  ;;  %v2039_v61 = vpack.c.bf16 %v2007_v0, %v2007_v0 }
 0x262   : > { %v1930_v27 = vmul.f32 0.2, %v1849_v36  ;;  %vm1898_vm4 = vcmp.ge.f32.partialorder %v1849_v36, 0.0 }
 0x263   : > { %v2226_v53 = vpack.c.b16 %v2225_v8, %v2224_v19  ;;  %v1873_v60 = vpop.f32.mrf.mxu3  ;;  %v2325_v19 = vunpack.c.l.b16 %v2039_v61  ;;  %v3187_v8 = vld [vmem:[%s5213_s2 + $0x68] sm:$0xff] }
 0x264   : > { %v1962_v7 = vsel %vm1898_vm4, %v1849_v36, %v1930_v27 }
 0x265   : > { %2235 = vmatpush.bf16.msrb.mxu1 %v2226_v53  ;;  %v1998_v31 = vadd.f32 %v4899_v11, %v1962_v7  ;;  %v2326_v6 = vpack.c.b16 %v2325_v19, %v2324_v49 }
 0x267   : > { %v1850_v48 = vpop.f32.mrf.mxu0  ;;  %v2030_v2 = vpack.c.bf16 %v1998_v31, %v1998_v31 }
 0x268   : > { %v1851_v17 = vadd.f32 %v4892_v35, %v1850_v48  ;;  %3085 = vmatmul.msk.bf16.vlgmr.msrb.gmra.mxu1 %vm416_vm2, %v4784_v13 }
 0x269   : > { %v2244_v23 = vunpack.c.l.b16 %v2030_v2 }
 0x26a   : > { %vm1899_vm7 = vcmp.ge.f32.partialorder %v1851_v17, 0.0  ;;  %v1931_v52 = vmul.f32 0.2, %v1851_v17 }
 0x26b   : > { %v1875_v46 = vpop.f32.mrf.mxu3  ;;  %v2077_v57 = vpop.f32.mrf.mxu2 }
 0x26c   : > { %v1963_v29 = vsel %vm1899_vm7, %v1851_v17, %v1931_v52  ;;  %v1876_v16 = vadd.f32 %v4892_v35, %v1875_v46  ;;  %vm2850_vm7 = vcmask 1041409  }
 0x26d   : > { %v1999_v43 = vadd.f32 %v4899_v11, %v1963_v29 }
 0x26e   : > { %v1941_v15 = vmul.f32 0.2, %v1876_v16  ;;  %vm1909_vm11 = vcmp.ge.f32.partialorder %v1876_v16, 0.0 }
 0x26f   : > { %v2031_v34 = vpack.c.bf16 %v1999_v43, %v1999_v43  ;;  %v1853_v51 = vpop.f32.mrf.mxu0 }
 0x270   : > { %v1854_v13 = vadd.f32 %v4892_v35, %v1853_v51  ;;  %v1973_v17 = vsel %vm1909_vm11, %v1876_v16, %v1941_v15 }
 0x271   : > { %v2245_v12 = vunpack.c.l.b16 %v2031_v34  ;;  %v2009_v62 = vadd.f32 %v4899_v11, %v1973_v17 }
 0x272   : > { %v1932_v28 = vmul.f32 0.2, %v1854_v13  ;;  %vm1900_vm5 = vcmp.ge.f32.partialorder %v1854_v13, 0.0 }
 0x273   : > { %v2246_v55 = vpack.c.b16 %v2245_v12, %v2244_v23  ;;  %v2041_v34 = vpack.c.bf16 %v2009_v62, %v2009_v62  ;;  %v2057_v23 = vpop.f32.mrf.mxu1 }
 0x274   : > { %v1964_v20 = vsel %vm1900_vm5, %v1854_v13, %v1932_v28 }
 0x275   : > { %2255 = vmatpush.bf16.msrb.mxu2 %v2246_v55  ;;  %v2000_v32 = vadd.f32 %v4899_v11, %v1964_v20  ;;  %v2345_v13 = vunpack.c.l.b16 %v2041_v34 }
 0x277   : > { %v1855_v42 = vpop.f32.mrf.mxu0  ;;  %v2032_v47 = vpack.c.bf16 %v2000_v32, %v2000_v32 }
 0x278   : > { %v1856_v56 = vadd.f32 %v4892_v35, %v1855_v42  ;;  %3086 = vmatmul.msk.bf16.vlgmr.msrb.gmra.mxu2 %vm416_vm2, %v4802_v38  ;;  %v1874_v38 = vadd.f32 %v4892_v35, %v1873_v60 }
 0x279   : > { %2315 = vmatpush.bf16.msra.mxu2 %v2306_v40  ;;  %v2264_v53 = vunpack.c.l.b16 %v2032_v47 }
 0x27a   : > { %vm1901_vm6 = vcmp.ge.f32.partialorder %v1856_v56, 0.0  ;;  %v1933_v44 = vmul.f32 0.2, %v1856_v56  ;;  %v1940_v27 = vmul.f32 0.2, %v1874_v38  ;;  %vm1908_vm8 = vcmp.ge.f32.partialorder %v1874_v38, 0.0 }
 0x27b   : > { %v2059_v55 = vpop.f32.mrf.mxu1  ;;  %v2097_v42 = vpop.f32.mrf.mxu3 }
 0x27c   : > { %v1965_v63 = vsel %vm1901_vm6, %v1856_v56, %v1933_v44  ;;  %v1972_v39 = vsel %vm1908_vm8, %v1874_v38, %v1940_v27  ;;  %v2362_v20 = vpack.c.bf16 %v2059_v55, %v2057_v23 }
 0x27d   : > { %3200 = vmatpush.bf16.msrb.mxu2 %v4990_v33  ;;  %v2001_v50 = vadd.f32 %v4899_v11, %v1965_v63  ;;  %v2008_v3 = vadd.f32 %v4899_v11, %v1972_v39 }
 0x27f   : > { %v2033_v26 = vpack.c.bf16 %v2001_v50, %v2001_v50  ;;  %v1858_v36 = vpop.f32.mrf.mxu0  ;;  %v2040_v43 = vpack.c.bf16 %v2008_v3, %v2008_v3 }
 0x280   : > { %v1859_v22 = vadd.f32 %v4892_v35, %v1858_v36 }
 0x281   : > { %3202 = vmatpush.bf16.msrb.mxu2 %v4997_v58  ;;  %v2265_v14 = vunpack.c.l.b16 %v2033_v26  ;;  %v2344_v5 = vunpack.c.l.b16 %v2040_v43 }
 0x282   : > { %v1934_v7 = vmul.f32 0.2, %v1859_v22  ;;  %vm1902_vm12 = vcmp.ge.f32.partialorder %v1859_v22, 0.0 }
 0x283   : > { %v2266_v48 = vpack.c.b16 %v2265_v14, %v2264_v53  ;;  %v2346_v28 = vpack.c.b16 %v2345_v13, %v2344_v5 }
 0x284   : > { %v1966_v31 = vsel %vm1902_vm12, %v1859_v22, %v1934_v7 }
 0x285   : > { %3204 = vmatpush.bf16.msrb.mxu2 %v3187_v8  ;;  %2275 = vmatpush.bf16.msra.mxu3 %v2266_v48  ;;  %v2002_v2 = vadd.f32 %v4899_v11, %v1966_v31  ;;  %v2117_v40 = vpop.f32.mrf.mxu1 }
 0x287   : > { %v1860_v52 = vpop.f32.mrf.mxu0  ;;  %v2034_v51 = vpack.c.bf16 %v2002_v2, %v2002_v2 }
 0x288   : > { %v1861_v29 = vadd.f32 %v4892_v35, %v1860_v52  ;;  %3087 = vmatmul.msk.bf16.vlgmr.msra.gmra.mxu3 %vm416_vm2, %v4842_v18  ;;  %3089 = vmatmul.msk.bf16.vlgmr.msra.gmra.mxu2 %vm416_vm2, %v4818_v25  ;;  %v3184_v18 = vld [vmem:[%s5213_s2 + $0x50] sm:$0xff] }
 0x289   : > { %2335 = vmatpush.bf16.msrb.mxu3 %v2326_v6  ;;  %3206 = vmatpush.bf16.msrb.mxu2 %v3186_v4  ;;  %v2284_v59 = vunpack.c.l.b16 %v2034_v51 }
 0x28a   : > { %vm1903_vm13 = vcmp.ge.f32.partialorder %v1861_v29, 0.0  ;;  %v1935_v10 = vmul.f32 0.2, %v1861_v29 }
 0x28c   : > { %v1967_v35 = vsel %vm1903_vm13, %v1861_v29, %v1935_v10  ;;  %v5044_v10 = vld [vmem:[%s5214_s3 + $0x1] ss:$0 sm:$0xff] }
 0x28d   : > { %3201 = vmatpush.bf16.msra.mxu3 %v4990_v33  ;;  %3208 = vmatpush.bf16.msrb.mxu2 %v3185_v9  ;;  %v2003_v25 = vadd.f32 %v4899_v11, %v1967_v35  ;;  %v3182_v11 = vld [vmem:[%s5213_s2 + $0x40] sm:$0xff] }
 0x28f   : > { %v2035_v45 = vpack.c.bf16 %v2003_v25, %v2003_v25  ;;  %v5051_v25 = vld [vmem:[%s5215_s4 + $0x1] ss:$0 sm:$0xff] }
 0x291   : > { %3203 = vmatpush.bf16.msra.mxu3 %v4997_v58  ;;  %3210 = vmatpush.bf16.msrb.mxu2 %v3184_v18  ;;  %v2285_v12 = vunpack.c.l.b16 %v2035_v45 }
 0x293   : > { %v2286_v60 = vpack.c.b16 %v2285_v12, %v2284_v59 }
 0x295   : > { %3205 = vmatpush.bf16.msra.mxu3 %v3187_v8  ;;  %3212 = vmatpush.bf16.msrb.mxu2 %v3183_v21 }
 0x296   : > { %2295 = vmatpush.bf16.msra.mxu1 %v2286_v60 }
 0x298   : > { %3090 = vmatmul.msk.bf16.vlgmr.msrb.gmra.mxu3 %vm416_vm2, %v4864_v30  ;;  %v2079_v30 = vpop.f32.mrf.mxu2 }
 0x299   : > { %3207 = vmatpush.bf16.msra.mxu3 %v3186_v4  ;;  %3214 = vmatpush.bf16.msrb.mxu2 %v3182_v11  ;;  %v2363_v44 = vpack.c.bf16 %v2079_v30, %v2077_v57 }
 0x29a   : > { %2355 = vmatpush.bf16.msrb.mxu1 %v2346_v28 }
 0x29b   : > { %3088 = vmatmul.msk.bf16.vlgmr.msra.gmra.mxu1 %vm416_vm2, %v4643_v1  ;;  %v2119_v1 = vpop.f32.mrf.mxu1 }
 0x29c   : > { %v2365_v50 = vpack.c.bf16 %v2119_v1, %v2117_v40 }
 0x29d   : > { %3209 = vmatpush.bf16.msra.mxu3 %v3185_v9 }
 0x29e   : > { %2448 = vmatpush.bf16.msra.mxu1 %v4990_v33  ;;  %v2099_v33 = vpop.f32.mrf.mxu3 }
 0x2a0   : > { %v2137_v37 = vpop.f32.mrf.mxu2 }
 0x2a1   : > { %3211 = vmatpush.bf16.msra.mxu3 %v3184_v18 }
 0x2a2   : > { %2449 = vmatpush.bf16.msra.mxu1 %v4997_v58  ;;  %v2364_v58 = vpack.c.bf16 %v2099_v33, %v2097_v42 }
 0x2a5   : > { %3213 = vmatpush.bf16.msra.mxu3 %v3183_v21 }
 0x2a6   : > { %2450 = vmatpush.bf16.msra.mxu1 %v3187_v8 }
 0x2a8   : > { %v2139_v32 = vpop.f32.mrf.mxu2 }
 0x2a9   : > { %3215 = vmatpush.bf16.msra.mxu3 %v3182_v11  ;;  %v2366_v19 = vpack.c.bf16 %v2139_v32, %v2137_v37 }
 0x2aa   : > { %2451 = vmatpush.bf16.msra.mxu1 %v3186_v4 }
 0x2ab   : > { %3091 = vmatmul.msk.bf16.vlgmr.msrb.gmra.mxu1 %vm416_vm2, %v4873_v24  ;;  %v2157_v54 = vpop.f32.mrf.mxu3 }
 0x2ae   : > { %2452 = vmatpush.bf16.msra.mxu1 %v3185_v9 }
 0x2b2   : > { %2453 = vmatpush.bf16.msra.mxu1 %v3184_v18 }
 0x2b3   : > { %v2159_v61 = vpop.f32.mrf.mxu3 }
 0x2b4   : > { %v2367_v53 = vpack.c.bf16 %v2159_v61, %v2157_v54 }
 0x2b5   : > { %v2177_v41 = vpop.f32.mrf.mxu1 }
 0x2b6   : > { %2454 = vmatpush.bf16.msra.mxu1 %v3183_v21 }
 0x2ba   : > { %2455 = vmatpush.bf16.msra.mxu1 %v3182_v11 }
 0x2bd   : > { %2456 = vmatmul.bf16.vlgmr.msra.gmra.mxu1 %v2362_v20  ;;  %v2179_v0 = vpop.f32.mrf.mxu1 }
 0x2be   : > { %v2368_v56 = vpack.c.bf16 %v2179_v0, %v2177_v41 }
 0x2c0   : > { %2486 = vmatmul.bf16.vlgmr.msrb.gmra.mxu2 %v2368_v56 }
 0x2cb   : > { %v2197_v24 = vpop.f32.mrf.mxu2 }
 0x2cd   : > { %2461 = vmatmul.bf16.gmra.mxu1 %v2363_v44 }
 0x2d3   : > { %v2199_v46 = vpop.f32.mrf.mxu2 }
 0x2d4   : > { %v2369_v63 = vpack.c.bf16 %v2199_v46, %v2197_v24 }
 0x2d6   : > { %2491 = vmatmul.bf16.gmra.mxu2 %v2369_v63 }
 0x2db   : > { %v2217_v38 = vpop.f32.mrf.mxu3 }
 0x2dd   : > { %2466 = vmatmul.bf16.gmra.mxu1 %v2364_v58 }
 0x2e3   : > { %v2219_v47 = vpop.f32.mrf.mxu3 }
 0x2e4   : > { %v2370_v16 = vpack.c.bf16 %v2219_v47, %v2217_v38 }
 0x2e5   : > { %v2237_v26 = vpop.f32.mrf.mxu1 }
 0x2e6   : > { %2496 = vmatmul.bf16.gmra.mxu2 %v2370_v16 }
 0x2ed   : > { %2471 = vmatmul.bf16.gmra.mxu1 %v2365_v50  ;;  %v2239_v36 = vpop.f32.mrf.mxu1 }
 0x2ee   : > { %v2371_v49 = vpack.c.bf16 %v2239_v36, %v2237_v26 }
 0x2f6   : > { %2501 = vmatmul.bf16.gmra.mxu2 %v2371_v49 }
 0x2fb   : > { %v2257_v22 = vpop.f32.mrf.mxu2 }
 0x2fd   : > { %2476 = vmatmul.bf16.gmra.mxu1 %v2366_v19 }
 0x303   : > { %v2259_v8 = vpop.f32.mrf.mxu2 }
 0x304   : > { %v2372_v27 = vpack.c.bf16 %v2259_v8, %v2257_v22 }
 0x306   : > { %2506 = vmatmul.bf16.gmra.mxu2 %v2372_v27 }
 0x30b   : > { %v2277_v15 = vpop.f32.mrf.mxu3  ;;  %v2317_v14 = vpop.f32.mrf.mxu2 }
 0x30d   : > { %2481 = vmatmul.bf16.gmra.mxu1 %v2367_v53 }
 0x313   : > { %v2279_v7 = vpop.f32.mrf.mxu3  ;;  %v2319_v48 = vpop.f32.mrf.mxu2 }
 0x314   : > { %v2373_v6 = vpack.c.bf16 %v2279_v7, %v2277_v15  ;;  %v2375_v4 = vpack.c.bf16 %v2319_v48, %v2317_v14 }
 0x316   : > { %2511 = vmatmul.bf16.gmra.mxu2 %v2373_v6  ;;  %2521 = vmatmul.bf16.vlgmr.msra.gmra.mxu3 %v2375_v4 }
 0x318   : > { %v2297_v39 = vpop.f32.mrf.mxu1 }
 0x31b   : > { %v2337_v17 = vpop.f32.mrf.mxu3 }
 0x320   : > { %v2299_v31 = vpop.f32.mrf.mxu1 }
 0x321   : > { %v2374_v3 = vpack.c.bf16 %v2299_v31, %v2297_v39 }
 0x323   : > { %v2339_v52 = vpop.f32.mrf.mxu3 }
 0x324   : > { %v2376_v62 = vpack.c.bf16 %v2339_v52, %v2337_v17 }
 0x326   : > { %2516 = vmatmul.bf16.gmra.mxu2 %v2374_v3  ;;  %2526 = vmatmul.bf16.gmra.mxu3 %v2376_v62 }
 0x328   : > { %v2357_v29 = vpop.f32.mrf.mxu1 }
 0x330   : > { %v2359_v9 = vpop.f32.mrf.mxu1 }
 0x331   : > { %v2377_v2 = vpack.c.bf16 %v2359_v9, %v2357_v29 }
 0x336   : > { %2531 = vmatmul.bf16.gmra.mxu3 %v2377_v2 }
 0x33a   : > { %v2457_v43 = vpop.f32.mrf.mxu1 }
 0x33b   : > { %v2458_v34 = vadd.f32 %v5044_v10, %v2457_v43 }
 0x33d   : > { %v2569_v35 = vmul.f32 0.2, %v2458_v34  ;;  %vm2537_vm2 = vcmp.ge.f32.partialorder %v2458_v34, 0.0 }
 0x33f   : > { %v2601_v45 = vsel %vm2537_vm2, %v2458_v34, %v2569_v35 }
 0x340   : > { %v2638_v21 = vadd.f32 %v5051_v25, %v2601_v45 }
 0x342   : > { %v2459_v18 = vpop.f32.mrf.mxu1 }
 0x343   : > { %v2460_v51 = vadd.f32 %v5044_v10, %v2459_v18  ;;  %v2487_v59 = vpop.f32.mrf.mxu2 }
 0x344   : > { %v2488_v28 = vadd.f32 %v5044_v10, %v2487_v59 }
 0x345   : > { %vm2538_vm14 = vcmp.ge.f32.partialorder %v2460_v51, 0.0  ;;  %v2570_v5 = vmul.f32 0.2, %v2460_v51 }
 0x346   : > { %v2581_v40 = vmul.f32 0.2, %v2488_v28  ;;  %vm2549_vm15 = vcmp.ge.f32.partialorder %v2488_v28, 0.0 }
 0x347   : > { %v2602_v13 = vsel %vm2538_vm14, %v2460_v51, %v2570_v5  ;;  %vm2852_vm14 = vcmask 1042434  }
 0x348   : > { %v2639_v23 = vadd.f32 %v5051_v25, %v2602_v13  ;;  %v2613_v42 = vsel %vm2549_vm15, %v2488_v28, %v2581_v40 }
 0x349   : > { %v2650_v54 = vadd.f32 %v5051_v25, %v2613_v42 }
 0x34a   : > { %v2670_v12 = vadd.f32 %v2639_v23, %v2638_v21  ;;  %v2462_v60 = vpop.f32.mrf.mxu1 }
 0x34b   : > { %v2463_v11 = vadd.f32 %v5044_v10, %v2462_v60  ;;  %v2489_v57 = vpop.f32.mrf.mxu2 }
 0x34c   : > { %v2671_v55 = vrot.slane %v2670_v12, 4  ;;  %v2490_v30 = vadd.f32 %v5044_v10, %v2489_v57 }
 0x34d   : > { %v2571_v1 = vmul.f32 0.2, %v2463_v11  ;;  %vm2539_vm0 = vcmp.ge.f32.partialorder %v2463_v11, 0.0 }
 0x34e   : > { %v2672_v41 = vadd.f32 %v2671_v55, %v2670_v12  ;;  %vm2550_vm1 = vcmp.ge.f32.partialorder %v2490_v30, 0.0  ;;  %v2582_v37 = vmul.f32 0.2, %v2490_v30 }
 0x34f   : > { %v2603_v56 = vsel %vm2539_vm0, %v2463_v11, %v2571_v1 }
 0x350   : > { %v2614_v33 = vsel %vm2550_vm1, %v2490_v30, %v2582_v37  ;;  %v2673_v44 = vrot.slane %v2672_v41, 2  ;;  %v2640_v46 = vadd.f32 %v5051_v25, %v2603_v56  ;;  %vm2854_vm1 = vcmask 1043459  }
 0x351   : > { %v2651_v24 = vadd.f32 %v5051_v25, %v2614_v33 }
 0x352   : > { %v2464_v20 = vpop.f32.mrf.mxu1  ;;  %v2674_v38 = vadd.f32 %v2673_v44, %v2672_v41 }
 0x353   : > { %v2465_v0 = vadd.f32 %v5044_v10, %v2464_v20  ;;  %v5062_v63 = vadd.f32 %v2651_v24, %v2650_v54 }
 0x354   : > { %v2675_v26 = vrot.slane %v2674_v38, 1 }
 0x355   : > { %vm2540_vm3 = vcmp.ge.f32.partialorder %v2465_v0, 0.0  ;;  %v2572_v32 = vmul.f32 0.2, %v2465_v0  ;;  %v2713_v44 = vrot.slane %v5062_v63, 4 }
 0x356   : > { %v2676_v8 = vadd.f32 %v2675_v26, %v2674_v38 }
 0x357   : > { %v2604_v61 = vsel %vm2540_vm3, %v2465_v0, %v2572_v32 }
 0x358   : > { %v2641_v58 = vadd.f32 %v5051_v25, %v2604_v61  ;;  %v2782_v7 = vpack.c.bf16 %v2676_v8, %v2676_v8 }
 0x359   : > { %v2492_v49 = vpop.f32.mrf.mxu2 }
 0x35a   : > { %v2677_v47 = vadd.f32 %v2641_v58, %v2640_v46  ;;  %v2467_v16 = vpop.f32.mrf.mxu1  ;;  %v2493_v22 = vadd.f32 %v5044_v10, %v2492_v49  ;;  %v2834_v52 = vunpack.c.l.b16 %v2782_v7 }
 0x35b   : > { %v2468_v45 = vadd.f32 %v5044_v10, %v2467_v16 }
 0x35c   : > { %v2678_v50 = vrot.slane %v2677_v47, 4  ;;  %v2583_v14 = vmul.f32 0.2, %v2493_v22  ;;  %vm2551_vm4 = vcmp.ge.f32.partialorder %v2493_v22, 0.0 }
 0x35d   : > { %v2573_v59 = vmul.f32 0.2, %v2468_v45  ;;  %vm2541_vm5 = vcmp.ge.f32.partialorder %v2468_v45, 0.0 }
 0x35e   : > { %v2679_v36 = vadd.f32 %v2678_v50, %v2677_v47  ;;  %v2615_v17 = vsel %vm2551_vm4, %v2493_v22, %v2583_v14  ;;  %v2714_v47 = vadd.f32 %v2713_v44, %v5062_v63  ;;  %vm2856_vm4 = vcmask 1044484  }
 0x35f   : > { %v2652_v2 = vadd.f32 %v5051_v25, %v2615_v17  ;;  %v2605_v55 = vsel %vm2541_vm5, %v2468_v45, %v2573_v59 }
 0x360   : > { %v2680_v19 = vrot.slane %v2679_v36, 2  ;;  %v2642_v41 = vadd.f32 %v5051_v25, %v2605_v55  ;;  %v2715_v22 = vrot.slane %v2714_v47, 2 }
 0x361   : > { %v2494_v6 = vpop.f32.mrf.mxu2 }
 0x362   : > { %v2681_v27 = vadd.f32 %v2680_v19, %v2679_v36  ;;  %v2469_v53 = vpop.f32.mrf.mxu1  ;;  %v2495_v4 = vadd.f32 %v5044_v10, %v2494_v6  ;;  %v2716_v6 = vadd.f32 %v2715_v22, %v2714_v47 }
 0x363   : > { %v2470_v18 = vadd.f32 %v5044_v10, %v2469_v53 }
 0x364   : > { %v2682_v15 = vrot.slane %v2681_v27, 1  ;;  %vm2552_vm10 = vcmp.ge.f32.partialorder %v2495_v4, 0.0  ;;  %v2584_v31 = vmul.f32 0.2, %v2495_v4 }
 0x365   : > { %v2574_v13 = vmul.f32 0.2, %v2470_v18  ;;  %vm2542_vm9 = vcmp.ge.f32.partialorder %v2470_v18, 0.0 }
 0x366   : > { %v2683_v48 = vadd.f32 %v2682_v15, %v2681_v27  ;;  %v2616_v29 = vsel %vm2552_vm10, %v2495_v4, %v2584_v31 }
 0x367   : > { %v2653_v43 = vadd.f32 %v5051_v25, %v2616_v29  ;;  %v2606_v60 = vsel %vm2542_vm9, %v2470_v18, %v2574_v13 }
 0x368   : > { %v2783_v39 = vpack.c.bf16 %v2683_v48, %v2683_v48  ;;  %v2643_v40 = vadd.f32 %v5051_v25, %v2606_v60 }
 0x369   : > { %v2719_v34 = vadd.f32 %v2653_v43, %v2652_v2  ;;  %v5072_v35 = vpop.f32.mrf.mxu2 }
 0x36a   : > { %v2835_v3 = vunpack.c.l.b16 %v2783_v39  ;;  %v2472_v62 = vpop.f32.mrf.mxu1  ;;  %v2684_v37 = vadd.f32 %v2643_v40, %v2642_v41 }
 0x36b   : > { %v2473_v23 = vadd.f32 %v5044_v10, %v2472_v62  ;;  %v2720_v14 = vrot.slane %v2719_v34, 4  ;;  %v2717_v62 = vrot.slane %v2716_v6, 1 }
 0x36c   : > { %v5068_v9 = vsel %vm2850_vm7, %v2835_v3, %v2834_v52  ;;  %v2685_v24 = vrot.slane %v2684_v37, 4 }
 0x36d   : > { %v2575_v11 = vmul.f32 0.2, %v2473_v23  ;;  %vm2543_vm8 = vcmp.ge.f32.partialorder %v2473_v23, 0.0  ;;  %v2721_v17 = vadd.f32 %v2720_v14, %v2719_v34 }
 0x36e   : > { %v2686_v36 = vadd.f32 %v2685_v24, %v2684_v37 }
 0x36f   : > { %v2607_v20 = vsel %vm2543_vm8, %v2473_v23, %v2575_v11  ;;  %v2718_v23 = vadd.f32 %v2717_v62, %v2716_v6  ;;  %vm2858_vm8 = vcmask 1045509  }
 0x370   : > { %v2644_v56 = vadd.f32 %v5051_v25, %v2607_v20  ;;  %v2687_v53 = vrot.slane %v2686_v36, 2  ;;  %v2498_v20 = vadd.f32 %v5044_v10, %v5072_v35 }
 0x371   : > { %v5077_v21 = vpop.f32.mrf.mxu2  ;;  %v2788_v40 = vpack.c.bf16 %v2718_v23, %v2718_v23 }
 0x372   : > { %v2474_v51 = vpop.f32.mrf.mxu1  ;;  %v2688_v63 = vadd.f32 %v2687_v53, %v2686_v36  ;;  %vm2553_vm15 = vcmp.ge.f32.partialorder %v2498_v20, 0.0 }
 0x373   : > { %v2475_v5 = vadd.f32 %v5044_v10, %v2474_v51  ;;  %v2722_v51 = vrot.slane %v2721_v17, 2 }
 0x374   : > { %v2689_v2 = vrot.slane %v2688_v63, 1 }
 0x375   : > { %v2576_v12 = vmul.f32 0.2, %v2475_v5  ;;  %vm2544_vm6 = vcmp.ge.f32.partialorder %v2475_v5, 0.0 }
 0x376   : > { %v2690_v60 = vadd.f32 %v2689_v2, %v2688_v63 }
 0x377   : > { %v2608_v57 = vsel %vm2544_vm6, %v2475_v5, %v2576_v12 }
 0x378   : > { %v2645_v42 = vadd.f32 %v5051_v25, %v2608_v57  ;;  %v2784_v41 = vpack.c.bf16 %v2690_v60, %v2690_v60 }
 0x379   : > { %v5082_v30 = vpop.f32.mrf.mxu2 }
 0x37a   : > { %v2477_v28 = vpop.f32.mrf.mxu1  ;;  %v2691_v54 = vadd.f32 %v2645_v42, %v2644_v56  ;;  %v2500_v42 = vadd.f32 %v5044_v10, %v5077_v21  ;;  %v2503_v35 = vadd.f32 %v5044_v10, %v5082_v30 }
 0x37b   : > { %v2478_v1 = vadd.f32 %v5044_v10, %v2477_v28  ;;  %v2723_v28 = vadd.f32 %v2722_v51, %v2721_v17 }
 0x37c   : > { %v2692_v16 = vrot.slane %v2691_v54, 4  ;;  %v2586_v47 = vmul.f32 0.2, %v2500_v42  ;;  %vm2554_vm0 = vcmp.ge.f32.partialorder %v2500_v42, 0.0  ;;  %vm2555_vm10 = vcmp.ge.f32.partialorder %v2503_v35, 0.0 }
 0x37d   : > { %v2577_v0 = vmul.f32 0.2, %v2478_v1  ;;  %vm2545_vm11 = vcmp.ge.f32.partialorder %v2478_v1, 0.0  ;;  %v2724_v37 = vrot.slane %v2723_v28, 1  ;;  %v2587_v6 = vmul.f32 0.2, %v2503_v35 }
 0x37e   : > { %v2693_v8 = vadd.f32 %v2692_v16, %v2691_v54  ;;  %v2840_v54 = vunpack.c.l.b16 %v2788_v40 }
 0x37f   : > { %v2609_v61 = vsel %vm2545_vm11, %v2478_v1, %v2577_v0  ;;  %v2725_v16 = vadd.f32 %v2724_v37, %v2723_v28  ;;  %vm2860_vm11 = vcmask 1046534  }
 0x380   : > { %v2646_v50 = vadd.f32 %v5051_v25, %v2609_v61  ;;  %v2694_v4 = vrot.slane %v2693_v8, 2 }
 0x381   : > { %v2504_v58 = vpop.f32.mrf.mxu2  ;;  %v2789_v53 = vpack.c.bf16 %v2725_v16, %v2725_v16 }
 0x382   : > { %v2479_v33 = vpop.f32.mrf.mxu1  ;;  %v2695_v29 = vadd.f32 %v2694_v4, %v2693_v8  ;;  %v2505_v44 = vadd.f32 %v5044_v10, %v2504_v58 }
 0x383   : > { %v2480_v32 = vadd.f32 %v5044_v10, %v2479_v33 }
 0x384   : > { %v2696_v59 = vrot.slane %v2695_v29, 1  ;;  %vm2556_vm3 = vcmp.ge.f32.partialorder %v2505_v44, 0.0 }
 0x385   : > { %vm2546_vm12 = vcmp.ge.f32.partialorder %v2480_v32, 0.0  ;;  %v2578_v46 = vmul.f32 0.2, %v2480_v32 }
 0x386   : > { %v2697_v57 = vadd.f32 %v2696_v59, %v2695_v29 }
 0x387   : > { %v2610_v38 = vsel %vm2546_vm12, %v2480_v32, %v2578_v46  ;;  %v2836_v46 = vunpack.c.l.b16 %v2784_v41 }
 0x388   : > { %v2647_v26 = vadd.f32 %v5051_v25, %v2610_v38  ;;  %v2785_v24 = vpack.c.bf16 %v2697_v57, %v2697_v57  ;;  %v2585_v38 = vmul.f32 0.2, %v2498_v20 }
 0x389   : > { %v2507_v7 = vpop.f32.mrf.mxu2  ;;  %v2853_v22 = vsel %vm2852_vm14, %v2836_v46, %v5068_v9 }
 0x38a   : > { %v2698_v49 = vadd.f32 %v2647_v26, %v2646_v50  ;;  %v2482_v19 = vpop.f32.mrf.mxu1  ;;  %v2588_v26 = vmul.f32 0.2, %v2505_v44  ;;  %v2837_v36 = vunpack.c.l.b16 %v2785_v24  ;;  %v2508_v58 = vadd.f32 %v5044_v10, %v2507_v7 }
 0x38b   : > { %v2483_v15 = vadd.f32 %v5044_v10, %v2482_v19  ;;  %v2617_v8 = vsel %vm2553_vm15, %v2498_v20, %v2585_v38 }
 0x38c   : > { %v2699_v27 = vrot.slane %v2698_v49, 4  ;;  %v2620_v7 = vsel %vm2556_vm3, %v2505_v44, %v2588_v26  ;;  %vm2557_vm9 = vcmp.ge.f32.partialorder %v2508_v58, 0.0  ;;  %v2654_v40 = vadd.f32 %v5051_v25, %v2617_v8 }
 0x38d   : > { %v2579_v39 = vmul.f32 0.2, %v2483_v15  ;;  %vm2547_vm13 = vcmp.ge.f32.partialorder %v2483_v15, 0.0 }
 0x38e   : > { %v2700_v48 = vadd.f32 %v2699_v27, %v2698_v49  ;;  %v2618_v27 = vsel %vm2554_vm0, %v2500_v42, %v2586_v47 }
 0x38f   : > { %v2611_v43 = vsel %vm2547_vm13, %v2483_v15, %v2579_v39  ;;  %v2855_v39 = vsel %vm2854_vm1, %v2837_v36, %v2853_v22  ;;  %vm2862_vm13 = vcmask 1047559  }
 0x390   : > { %v2701_v52 = vrot.slane %v2700_v48, 2  ;;  %v2648_v12 = vadd.f32 %v5051_v25, %v2611_v43  ;;  %v2841_v43 = vunpack.c.l.b16 %v2789_v53 }
 0x391   : > { %v2509_v45 = vpop.f32.mrf.mxu2 }
 0x392   : > { %v2484_v31 = vpop.f32.mrf.mxu1  ;;  %v2702_v5 = vadd.f32 %v2701_v52, %v2700_v48  ;;  %v2510_v19 = vadd.f32 %v5044_v10, %v2509_v45  ;;  %v2589_v52 = vmul.f32 0.2, %v2508_v58 }
 0x393   : > { %v2485_v3 = vadd.f32 %v5044_v10, %v2484_v31 }
 0x394   : > { %v2703_v55 = vrot.slane %v2702_v5, 1  ;;  %v2590_v17 = vmul.f32 0.2, %v2510_v19  ;;  %vm2558_vm5 = vcmp.ge.f32.partialorder %v2510_v19, 0.0 }
 0x395   : > { %vm2548_vm2 = vcmp.ge.f32.partialorder %v2485_v3, 0.0  ;;  %v2580_v18 = vmul.f32 0.2, %v2485_v3 }
 0x396   : > { %v2704_v32 = vadd.f32 %v2703_v55, %v2702_v5  ;;  %v2655_v5 = vadd.f32 %v5051_v25, %v2618_v27 }
 0x397   : > { %v2612_v13 = vsel %vm2548_vm2, %v2485_v3, %v2580_v18  ;;  %v2622_v18 = vsel %vm2558_vm5, %v2510_v19, %v2590_v17 }
 0x398   : > { %v2649_v34 = vadd.f32 %v5051_v25, %v2612_v13  ;;  %v2786_v50 = vpack.c.bf16 %v2704_v32, %v2704_v32  ;;  %v2619_v13 = vsel %vm2555_vm10, %v2503_v35, %v2587_v6  ;;  %v2659_v57 = vadd.f32 %v5051_v25, %v2622_v18 }
 0x399   : > { %v2512_v56 = vpop.f32.mrf.mxu2  ;;  %v2522_v33 = vpop.f32.mrf.mxu3  ;;  %v2656_v20 = vadd.f32 %v5051_v25, %v2619_v13  ;;  %v2726_v44 = vadd.f32 %v2655_v5, %v2654_v40 }
 0x39a   : > { %v2705_v11 = vadd.f32 %v2649_v34, %v2648_v12  ;;  %v2513_v15 = vadd.f32 %v5044_v10, %v2512_v56  ;;  %v2838_v4 = vunpack.c.l.b16 %v2786_v50  ;;  %v2523_v23 = vadd.f32 %v5044_v10, %v2522_v33 }
 0x39b   : > { %v2657_v12 = vadd.f32 %v5051_v25, %v2620_v7  ;;  %v2621_v34 = vsel %vm2557_vm9, %v2508_v58, %v2589_v52  ;;  %v2727_v35 = vrot.slane %v2726_v44, 4  ;;  %v3196_v58 = vld [vmem:[%s5216_s5 + $0x30] sm:$0xff]  ;;  %v3195_v7 = vld [vmem:[%s5216_s5 + $0x28] sm:$0xff] }
 0x39c   : > { %v2706_v1 = vrot.slane %v2705_v11, 4  ;;  %v2591_v62 = vmul.f32 0.2, %v2513_v15  ;;  %v2857_v29 = vsel %vm2856_vm4, %v2838_v4, %v2855_v39  ;;  %vm2559_vm12 = vcmp.ge.f32.partialorder %v2513_v15, 0.0 }
 0x39d   : > { %v2658_v56 = vadd.f32 %v5051_v25, %v2621_v34  ;;  %v2595_v32 = vmul.f32 0.2, %v2523_v23  ;;  %vm2563_vm15 = vcmp.ge.f32.partialorder %v2523_v23, 0.0  ;;  %v3193_v34 = vld [vmem:[%s5216_s5 + $0x18] sm:$0xff] }
 0x39e   : > { %v2707_v0 = vadd.f32 %v2706_v1, %v2705_v11  ;;  %v2623_v60 = vsel %vm2559_vm12, %v2513_v15, %v2591_v62 }
 0x39f   : > { %v2660_v33 = vadd.f32 %v5051_v25, %v2623_v60  ;;  %v2740_v24 = vadd.f32 %v2659_v57, %v2658_v56  ;;  %v2627_v16 = vsel %vm2563_vm15, %v2523_v23, %v2595_v32 }
 0x3a0   : > { %v2708_v61 = vrot.slane %v2707_v0, 2  ;;  %v2664_v27 = vadd.f32 %v5051_v25, %v2627_v16 }
 0x3a1   : > { %v2514_v14 = vpop.f32.mrf.mxu2  ;;  %v2524_v48 = vpop.f32.mrf.mxu3 }
 0x3a2   : > { %v2709_v21 = vadd.f32 %v2708_v61, %v2707_v0  ;;  %v2515_v63 = vadd.f32 %v5044_v10, %v2514_v14  ;;  %v2525_v2 = vadd.f32 %v5044_v10, %v2524_v48  ;;  %v3197_v0 = vld [vmem:[%s5216_s5 + $0x38] sm:$0xff]  ;;  %v2728_v48 = vadd.f32 %v2727_v35, %v2726_v44 }
 0x3a3   : > { %2921 = vmatpush.bf16.msrb.mxu3 %v3197_v0 }
 0x3a4   : > { %v2710_v49 = vrot.slane %v2709_v21, 1  ;;  %vm2560_vm6 = vcmp.ge.f32.partialorder %v2515_v63, 0.0  ;;  %v2592_v31 = vmul.f32 0.2, %v2515_v63  ;;  %v2596_v41 = vmul.f32 0.2, %v2525_v2 }
 0x3a5   : > { %vm2564_vm2 = vcmp.ge.f32.partialorder %v2525_v2, 0.0  ;;  %v2729_v13 = vrot.slane %v2728_v48, 2 }
 0x3a6   : > { %v2711_v30 = vadd.f32 %v2710_v49, %v2709_v21  ;;  %v2624_v51 = vsel %vm2560_vm6, %v2515_v63, %v2592_v31  ;;  %v2628_v46 = vsel %vm2564_vm2, %v2525_v2, %v2596_v41  ;;  %v2741_v49 = vrot.slane %v2740_v24, 4 }
 0x3a7   : > { %v2661_v1 = vadd.f32 %v5051_v25, %v2624_v51  ;;  %v2665_v50 = vadd.f32 %v5051_v25, %v2628_v46  ;;  %2922 = vmatpush.bf16.msrb.mxu3 %v3196_v58 }
 0x3a8   : > { %v2787_v9 = vpack.c.bf16 %v2711_v30, %v2711_v30  ;;  %v2742_v63 = vadd.f32 %v2741_v49, %v2740_v24 }
 0x3a9   : > { %v2517_v28 = vpop.f32.mrf.mxu2  ;;  %v2527_v11 = vpop.f32.mrf.mxu3  ;;  %v2747_v61 = vadd.f32 %v2661_v1, %v2660_v33  ;;  %v2761_v4 = vadd.f32 %v2665_v50, %v2664_v27  ;;  %v2730_v1 = vadd.f32 %v2729_v13, %v2728_v48 }
 0x3aa   : > { %v2839_v3 = vunpack.c.l.b16 %v2787_v9  ;;  %v2518_v42 = vadd.f32 %v5044_v10, %v2517_v28  ;;  %v2528_v37 = vadd.f32 %v5044_v10, %v2527_v11  ;;  %v2743_v5 = vrot.slane %v2742_v63, 2 }
 0x3ab   : > { %v2748_v19 = vrot.slane %v2747_v61, 4  ;;  %2923 = vmatpush.bf16.msrb.mxu3 %v3195_v7  ;;  %v2762_v2 = vrot.slane %v2761_v4, 4 }
 0x3ac   : > { %v2859_v45 = vsel %vm2858_vm8, %v2839_v3, %v2857_v29  ;;  %v2593_v38 = vmul.f32 0.2, %v2518_v42  ;;  %v2597_v47 = vmul.f32 0.2, %v2528_v37  ;;  %vm2561_vm0 = vcmp.ge.f32.partialorder %v2518_v42, 0.0 }
 0x3ad   : > { %v2861_v59 = vsel %vm2860_vm11, %v2840_v54, %v2859_v45  ;;  %v2733_v54 = vadd.f32 %v2657_v12, %v2656_v20  ;;  %vm2565_vm3 = vcmp.ge.f32.partialorder %v2528_v37, 0.0  ;;  %v2749_v39 = vadd.f32 %v2748_v19, %v2747_v61  ;;  %v3194_v45 = vld [vmem:[%s5216_s5 + $0x20] sm:$0xff] }
 0x3ae   : > { %v5122_v55 = vsel %vm2862_vm13, %v2841_v43, %v2861_v59  ;;  %v2625_v53 = vsel %vm2561_vm0, %v2518_v42, %v2593_v38  ;;  %v2629_v30 = vsel %vm2565_vm3, %v2528_v37, %v2597_v47  ;;  %v2763_v11 = vadd.f32 %v2762_v2, %v2761_v4  ;;  %v3192_v37 = vld [vmem:[%s5216_s5 + $0x10] sm:$0xff]  ;;  %v3191_v47 = vld [vmem:[%s5216_s5 + $0x8] sm:$0xff] }
 0x3af   : > { %v2734_v21 = vrot.slane %v2733_v54, 4  ;;  %v2662_v31 = vadd.f32 %v5051_v25, %v2625_v53  ;;  %v2666_v52 = vadd.f32 %v5051_v25, %v2629_v30  ;;  %v2750_v23 = vrot.slane %v2749_v39, 2  ;;  %2924 = vmatpush.bf16.msrb.mxu3 %v3194_v45 }
 0x3b0   : > { %v2744_v57 = vadd.f32 %v2743_v5, %v2742_v63  ;;  %v2764_v33 = vrot.slane %v2763_v11, 2  ;;  %v2731_v61 = vrot.slane %v2730_v1, 1 }
 0x3b1   : > { %v2519_v26 = vpop.f32.mrf.mxu2  ;;  %v2529_v36 = vpop.f32.mrf.mxu3  ;;  %v2735_v6 = vadd.f32 %v2734_v21, %v2733_v54  ;;  %v2751_v41 = vadd.f32 %v2750_v23, %v2749_v39 }
 0x3b2   : > { %v2520_v22 = vadd.f32 %v5044_v10, %v2519_v26  ;;  %v2530_v8 = vadd.f32 %v5044_v10, %v2529_v36  ;;  %v2745_v54 = vrot.slane %v2744_v57, 1  ;;  %v2765_v26 = vadd.f32 %v2764_v33, %v2763_v11 }
 0x3b3   : > { %v2736_v29 = vrot.slane %v2735_v6, 2  ;;  %2925 = vmatpush.bf16.msrb.mxu3 %v3193_v34  ;;  %v2752_v46 = vrot.slane %v2751_v41, 1  ;;  %v2732_v49 = vadd.f32 %v2731_v61, %v2730_v1 }
 0x3b4   : > { %vm2562_vm10 = vcmp.ge.f32.partialorder %v2520_v22, 0.0  ;;  %v2594_v15 = vmul.f32 0.2, %v2520_v22  ;;  %vm2566_vm9 = vcmp.ge.f32.partialorder %v2530_v8, 0.0  ;;  %v2598_v14 = vmul.f32 0.2, %v2530_v8 }
 0x3b5   : > { %v2737_v28 = vadd.f32 %v2736_v29, %v2735_v6  ;;  %v2746_v36 = vadd.f32 %v2745_v54, %v2744_v57  ;;  %v2753_v19 = vadd.f32 %v2752_v46, %v2751_v41  ;;  %v2790_v6 = vpack.c.bf16 %v2732_v49, %v2732_v49 }
 0x3b6   : > { %v2626_v9 = vsel %vm2562_vm10, %v2520_v22, %v2594_v15  ;;  %v2630_v17 = vsel %vm2566_vm9, %v2530_v8, %v2598_v14  ;;  %v3190_v8 = vld [vmem:[%s5216_s5] sm:$0xff]  ;;  %v2766_v15 = vrot.slane %v2765_v26, 1 }
 0x3b7   : > { %v2663_v3 = vadd.f32 %v5051_v25, %v2626_v9  ;;  %v2667_v62 = vadd.f32 %v5051_v25, %v2630_v17  ;;  %v2738_v56 = vrot.slane %v2737_v28, 1  ;;  %2926 = vmatpush.bf16.msrb.mxu3 %v3192_v37  ;;  %v2792_v48 = vpack.c.bf16 %v2746_v36, %v2746_v36 }
 0x3b8   : > { %v2793_v4 = vpack.c.bf16 %v2753_v19, %v2753_v19  ;;  %v2767_v17 = vadd.f32 %v2766_v15, %v2765_v26 }
 0x3b9   : > { %v2754_v43 = vadd.f32 %v2663_v3, %v2662_v31  ;;  %v2768_v18 = vadd.f32 %v2667_v62, %v2666_v52  ;;  %v2532_v51 = vpop.f32.mrf.mxu3  ;;  %v2739_v50 = vadd.f32 %v2738_v56, %v2737_v28  ;;  %v2844_v31 = vunpack.c.l.b16 %v2792_v48 }
 0x3ba   : > { %v2533_v12 = vadd.f32 %v5044_v10, %v2532_v51  ;;  %v2842_v52 = vunpack.c.l.b16 %v2790_v6  ;;  %v2845_v3 = vunpack.c.l.b16 %v2793_v4 }
 0x3bb   : > { %v2755_v59 = vrot.slane %v2754_v43, 4  ;;  %v2769_v60 = vrot.slane %v2768_v18, 4  ;;  %2927 = vmatpush.bf16.msrb.mxu3 %v3191_v47  ;;  %v2791_v30 = vpack.c.bf16 %v2739_v50, %v2739_v50 }
 0x3bc   : > { %v2599_v42 = vmul.f32 0.2, %v2533_v12  ;;  %vm2567_vm5 = vcmp.ge.f32.partialorder %v2533_v12, 0.0 }
 0x3bd   : > { %v2756_v40 = vadd.f32 %v2755_v59, %v2754_v43  ;;  %v2770_v0 = vadd.f32 %v2769_v60, %v2768_v18  ;;  %v2843_v9 = vunpack.c.l.b16 %v2791_v30  ;;  %v2795_v18 = vpack.c.bf16 %v2767_v17, %v2767_v17 }
 0x3be   : > { %v2631_v38 = vsel %vm2567_vm5, %v2533_v12, %v2599_v42 }
 0x3bf   : > { %v2757_v20 = vrot.slane %v2756_v40, 2  ;;  %v2771_v35 = vrot.slane %v2770_v0, 2  ;;  %2928 = vmatpush.bf16.msrb.mxu3 %v3190_v8  ;;  %v2864_v43 = vsel %vm2850_vm7, %v2843_v9, %v2842_v52  ;;  %v2847_v12 = vunpack.c.l.b16 %v2795_v18 }
 0x3c0   : > { %v2865_v45 = vsel %vm2852_vm14, %v2844_v31, %v2864_v43 }
 0x3c1   : > { %v2758_v32 = vadd.f32 %v2757_v20, %v2756_v40  ;;  %v2534_v44 = vpop.f32.mrf.mxu3  ;;  %v2772_v53 = vadd.f32 %v2771_v35, %v2770_v0  ;;  %v2866_v5 = vsel %vm2854_vm1, %v2845_v3, %v2865_v45  ;;  %v3262_v20 = vld [vmem:[%s5217_s6] ss:$0 sm:$0xff] }
 0x3c2   : > { %v2535_v24 = vadd.f32 %v5044_v10, %v2534_v44  ;;  %v2668_v10 = vadd.f32 %v5051_v25, %v2631_v38 }
 0x3c3   : > { %v2759_v16 = vrot.slane %v2758_v32, 1  ;;  %v2773_v39 = vrot.slane %v2772_v53, 1 }
 0x3c4   : > { %vm2568_vm6 = vcmp.ge.f32.partialorder %v2535_v24, 0.0  ;;  %v2600_v21 = vmul.f32 0.2, %v2535_v24 }
 0x3c5   : > { %v2760_v27 = vadd.f32 %v2759_v16, %v2758_v32  ;;  %v2774_v2 = vadd.f32 %v2773_v39, %v2772_v53 }
 0x3c6   : > { %v2632_v58 = vsel %vm2568_vm6, %v2535_v24, %v2600_v21 }
 0x3c7   : > { %v2669_v22 = vadd.f32 %v5051_v25, %v2632_v58  ;;  %v2794_v63 = vpack.c.bf16 %v2760_v27, %v2760_v27  ;;  %v2796_v59 = vpack.c.bf16 %v2774_v2, %v2774_v2 }
 0x3c9   : > { %v2775_v14 = vadd.f32 %v2669_v22, %v2668_v10  ;;  %v2846_v29 = vunpack.c.l.b16 %v2794_v63  ;;  %v2848_v11 = vunpack.c.l.b16 %v2796_v59 }
 0x3cb   : > { %v2776_v7 = vrot.slane %v2775_v14, 4  ;;  %v2867_v23 = vsel %vm2856_vm4, %v2846_v29, %v2866_v5 }
 0x3cc   : > { %v2868_v28 = vsel %vm2858_vm8, %v2847_v12, %v2867_v23 }
 0x3cd   : > { %v2777_v25 = vadd.f32 %v2776_v7, %v2775_v14  ;;  %v2869_v57 = vsel %vm2860_vm11, %v2848_v11, %v2868_v28 }
 0x3cf   : > { %v2778_v62 = vrot.slane %v2777_v25, 2 }
 0x3d1   : > { %v2779_v51 = vadd.f32 %v2778_v62, %v2777_v25 }
 0x3d3   : > { %v2780_v13 = vrot.slane %v2779_v51, 1 }
 0x3d5   : > { %v2781_v34 = vadd.f32 %v2780_v13, %v2779_v51 }
 0x3d7   : > { %v2797_v60 = vpack.c.bf16 %v2781_v34, %v2781_v34 }
 0x3d9   : > { %v2849_v40 = vunpack.c.l.b16 %v2797_v60 }
 0x3db   : > { %v2870_v1 = vsel %vm2862_vm13, %v2849_v40, %v2869_v57 }
 0x3dc   : > { %v2871_v41 = vpack.c.b16 %v2870_v1, %v5122_v55 }
 0x3de   : > { %2929 = vmatmul.bf16.vlgmr.msrb.gmra.mxu3 %v2871_v41 }
 0x461   : > { %v2930_v42 = vpop.f32.mrf.mxu3 }
 0x462   : > { %v2931_v37 = vadd.f32 %v3262_v20, %v2930_v42 }
 0x464   : > { %2935 = vst [vmem:[%s292_s8] sm:$0xff] %v2931_v37 }
 0x469   : > { %v2932_v55 = vpop.f32.mrf.mxu3 }
 0x46a   : > { %v2933_v0 = vadd.f32 %v3262_v20, %v2932_v55 }
 0x46c   : > { %2936 = vst [vmem:[%s292_s8 + $0x8] sm:$0xff] %v2933_v0 }
 0x46d   : > { %3386 = shalt.err (!%p3383_p3)
}
 0x46e   : > { %s3424_s22 = smov 128   ;;  %s3425_s8 = smov 8  }
 0x46f   : > { %3216 = dma.vmem_to_hbm [thread:$0]  (%p3501_p5), %s2951_s16, 256, %s2953_s17, %s2938_s18, %s3424_s22, %s3424_s22, %s3425_s8  }
 0x470 PF: > { %p3222_p4 = scmp.ge.s32.totalorder %s3421_s27, 2  ;;  %s2967_s9 = sand.u32 1, %s3409_s24  }
 0x471   : > { %s2968_s14 = scalar_lea.sflag [#allocation3], %s2967_s9 }
 0x472   : > { %p3219_p7 = pnand %p3222_p4, %p3505_p6 }
 0x474   : > { %p3220_p8 = pneg %p3219_p7 }
 0x476   : > { %3404 = dma.done.wait (%p3220_p8), %s2968_s14, 256  }
 0x477   : > { %3406 = vsyncadd (%p3220_p8), %s2968_s14, 4294967040  ;;  %p17_p9 = scmp.ge.s32.totalorder %s3489_s30, 4   ;;  %s5375_s24 = smov %s3413_s25 }
 0x478   : > { %s5376_s25 = smov %s3417_s26  ;;  %s5377_s26 = smov %s3499_s10 }
 0x479   : > { %s5378_s27 = smov %s3489_s30  ;;  %19 = sbr.rel (!%p17_p9) target bundleno = 3 (0x3), region = 89 }
 0x47e   :  { %2974 = vsyncpa [#allocation3], 1 }
 0x47f   :  { %2976 = vsyncpa [#allocation3 + $0x1], 1 }

</bundles_post_ra>
